<compile_context>
chip_gen: v6e
topology: v6e:2x2x1
jax: 0.10.0
libtpu: 0.0.40
codegen_flags: <defaults>
</compile_context>

<pallas_src>
import numpy as np

import jax
import jax.numpy as jnp
from jax.experimental import pallas as pl
from jax.experimental.pallas import tpu as pltpu


# ----------------------------------------------------------------------------
# Fused kernel: entire forward pass, activations resident in VMEM.
# ----------------------------------------------------------------------------
def _cnn_fused_kernel(
        x_ref, shift_ref, sel_ref,
        c1i_w_ref, c1i_b_ref, c44_w_ref, c44_b_ref,
        c3i_w_ref, c3i_b_ref, c88_w_ref, c88_b_ref,
        fc0_w_ref, fc0_b_ref, fcf_w_ref, fcf_b_ref,
        fcn_w_ref, fcn_b_ref, fc128_w_ref, fc128_b_ref,
        fco_w_ref, fco_b_ref,
        out_ref):
    f32 = jnp.float32
    cdt = shift_ref.dtype                    # bf16 MXU operand dtype

    def mm(a, b):
        # bf16 operands on the MXU, f32 accumulate; epilogue stays f32.
        return jnp.dot(a.astype(cdt), b.astype(cdt),
                       preferred_element_type=f32)

    n_dy = shift_ref.shape[0]                # 3 (dy = -1, 0, +1)
    n_h = fc0_w_ref.shape[0]                 # H (= 16)

    # ------------------ conv stage ------------------
    # Activation slab: rows = (h, n) -> H*N rows; lanes = (w, c), zero-padded
    # up to W*8 lanes so every matmul is lane-aligned.
    act = x_ref[...].astype(f32)

    # x1init: Conv2d(Cin, 4, 1)  (no ReLU)
    act = mm(act, c1i_w_ref[...]) + c1i_b_ref[...]
    # x1conv4to4 (+ ReLU), same weights applied twice
    for _ in range(2):
        act = jnp.maximum(mm(act, c44_w_ref[...]) + c44_b_ref[...], 0.0)

    def conv3x3(a, w_ref, b_ref):
        acc = None
        for d in range(n_dy):
            shifted = mm(shift_ref[d], a)    # dy row shift (zero pad in H)
            part = mm(shifted, w_ref[d])     # dx band + Cin->Cout (zero pad in W)
            acc = part if acc is None else acc + part
        return acc + b_ref[...]

    # x3init: Conv2d(4, 8, 3, padding=1)  (no ReLU)
    act = conv3x3(act, c3i_w_ref, c3i_b_ref)
    # x3conv8to8 (+ ReLU), same weights applied twice
    for _ in range(2):
        act = jnp.maximum(conv3x3(act, c88_w_ref, c88_b_ref), 0.0)

    # ------------------ flatten + MLP ------------------
    # nn.Flatten + init_Neurons: the h part of the (c,h,w) contraction is done
    # with tiny row-selection matmuls (no in-kernel reshape/transpose); fc0's
    # weight rows were permuted at pack time to the (h, w, c) lane order.
    z = jnp.zeros((sel_ref.shape[1], fc0_w_ref.shape[2]), f32)
    for hh in range(n_h):
        rows = mm(sel_ref[hh], act)          # batch rows of image row hh
        z = z + mm(rows, fc0_w_ref[hh])
    z = z + fc0_b_ref[...]

    # TODO(synk): nn.Dropout(0.2) is stochastic in train mode; eval-mode
    # (identity) semantics are used here.
    for _ in range(2):                       # f_Neurons (+ ReLU) x2
        z = jnp.maximum(mm(z, fcf_w_ref[...]) + fcf_b_ref[...], 0.0)
    z = mm(z, fcn_w_ref[...]) + fcn_b_ref[...]      # linearNto128 (no ReLU)
    for _ in range(4):                       # linear128to128 (+ ReLU) x4
        z = jnp.maximum(mm(z, fc128_w_ref[...]) + fc128_b_ref[...], 0.0)
    res = mm(z, fco_w_ref[...]) + fco_b_ref[...]    # linear128toout (lane-padded)

    nb, no = out_ref.shape
    out_ref[...] = res[:nb, :no].astype(out_ref.dtype)


# ----------------------------------------------------------------------------
# One-time parameter packing (all transposes / layout work hoisted to init).
# ----------------------------------------------------------------------------
def _conv1x1_blockdiag(w, W):
    """(Cout,Cin,1,1) -> (W*Cin, W*Cout) block-diagonal lane matrix."""
    w2 = np.asarray(w, np.float32)[:, :, 0, 0]            # (Cout, Cin)
    return np.kron(np.eye(W, dtype=np.float32), w2.T)


def _conv3x3_banded(k, W):
    """(Cout,Cin,3,3) -> (3, W*Cin, W*Cout): index d handles dy=d-1; the band
    structure implements the dx sum plus zero padding in W."""
    k = np.asarray(k, np.float32)
    Cout, Cin = k.shape[0], k.shape[1]
    B = np.zeros((3, W * Cin, W * Cout), np.float32)
    for d in range(3):                       # d = ky, dy = d - 1
        for w in range(W):
            for dx in (-1, 0, 1):
                ws = w + dx
                if 0 <= ws < W:
                    B[d, ws * Cin:(ws + 1) * Cin,
                      w * Cout:(w + 1) * Cout] = k[:, :, d, dx + 1].T
    return B


def pack_params(params, *, batch, feature=16, input_ch=1,
                compute_dtype=jnp.bfloat16):
    H = W = feature
    N = batch
    lanes = W * 8                            # widest conv stage (8 channels)
    mrows = max(8, -(-N // 8) * 8)           # sublane-aligned MLP batch rows
    cd = compute_dtype
    f32 = jnp.float32
    p = {k: np.asarray(v, np.float32) for k, v in params.items()}

    def pad(a, shape):
        out = np.zeros(shape, np.float32)
        out[tuple(slice(0, d) for d in a.shape)] = a
        return out

    # Row-shift matrices for the 3x3 convs (dy shift + H zero padding).
    S = np.zeros((3, H * N, H * N), np.float32)
    for d, dy in enumerate((-1, 0, 1)):
        for h in range(H):
            if 0 <= h + dy < H:
                for n in range(N):
                    S[d, h * N + n, (h + dy) * N + n] = 1.0

    # Row-selection matrices: extract the batch rows of image row h.
    sel = np.zeros((H, mrows, H * N), np.float32)
    for h in range(H):
        for n in range(N):
            sel[h, n, h * N + n] = 1.0

    # fc0 (init_Neurons): permute input rows from PyTorch's NCHW flatten order
    # (c, h, w) to this kernel's (h, w, c) lane order, split per image row h.
    fc0 = p["fc0_w"]                                       # (out, 8*H*W)
    n0 = fc0.shape[0]
    fc0 = fc0.reshape(n0, 8, H, W).transpose(2, 3, 1, 0).reshape(H, W * 8, n0)

    out_dim = p["fcout_w"].shape[0]
    out_pad = max(128, -(-out_dim // 128) * 128)

    packed = [
        jnp.asarray(S, cd),                                          # shifts
        jnp.asarray(sel, cd),                                        # selectors
        jnp.asarray(pad(_conv1x1_blockdiag(p["x1init_w"], W),
                        (W * input_ch, lanes)), cd),
        jnp.asarray(pad(np.tile(p["x1init_b"], W)[None], (1, lanes)), f32),
        jnp.asarray(pad(_conv1x1_blockdiag(p["x1c44_w"], W),
                        (lanes, lanes)), cd),
        jnp.asarray(pad(np.tile(p["x1c44_b"], W)[None], (1, lanes)), f32),
        jnp.asarray(pad(_conv3x3_banded(p["x3init_w"], W),
                        (3, lanes, lanes)), cd),
        jnp.asarray(pad(np.tile(p["x3init_b"], W)[None], (1, lanes)), f32),
        jnp.asarray(pad(_conv3x3_banded(p["x3c88_w"], W),
                        (3, lanes, lanes)), cd),
        jnp.asarray(pad(np.tile(p["x3c88_b"], W)[None], (1, lanes)), f32),
        jnp.asarray(fc0, cd),                                        # (H, W*8, 256)
        jnp.asarray(p["fc0_b"][None], f32),
        jnp.asarray(p["fcf_w"].T, cd),
        jnp.asarray(p["fcf_b"][None], f32),
        jnp.asarray(p["fcn128_w"].T, cd),
        jnp.asarray(p["fcn128_b"][None], f32),
        jnp.asarray(p["fc128_w"].T, cd),
        jnp.asarray(p["fc128_b"][None], f32),
        jnp.asarray(pad(p["fcout_w"].T, (p["fcout_w"].shape[1], out_pad)), cd),
        jnp.asarray(pad(p["fcout_b"][None], (1, out_pad)), f32),
    ]
    return packed


# ----------------------------------------------------------------------------
# Deterministic parameter initialization (PyTorch module layouts).
# ----------------------------------------------------------------------------
def init_params(key, feature=16, input_ch=1, output=3):
    S = feature
    shapes = {
        "x1init_w": (4, input_ch, 1, 1), "x1init_b": (4,),
        "x1c44_w": (4, 4, 1, 1), "x1c44_b": (4,),
        "x3init_w": (8, 4, 3, 3), "x3init_b": (8,),
        "x3c88_w": (8, 8, 3, 3), "x3c88_b": (8,),
        "fc0_w": (S * S, S * S * 8), "fc0_b": (S * S,),
        "fcf_w": (S * S, S * S), "fcf_b": (S * S,),
        "fcn128_w": (128 * 4, S * S), "fcn128_b": (128 * 4,),
        "fc128_w": (128 * 4, 128 * 4), "fc128_b": (128 * 4,),
        "fcout_w": (output, 128 * 4), "fcout_b": (output,),
    }
    params = {}
    keys = jax.random.split(key, len(shapes))
    for k, (name, shp) in zip(keys, sorted(shapes.items())):
        params[name] = (0.05 * jax.random.normal(k, shp)).astype(jnp.float32)
    return params


# ----------------------------------------------------------------------------
# Forward wrapper: one tiny layout transform + one pallas_call.
# ----------------------------------------------------------------------------
def cnn_forward(packed, x_nchw, *, n_out=3):
    nb, ci, hh, ww = x_nchw.shape
    # NCHW -> (H*N, W*Ci) slab: rows ordered (h, n), lanes ordered (w, ci).
    x_rows = jnp.transpose(x_nchw, (2, 0, 3, 1)).reshape(hh * nb, ww * ci)
    x_rows = x_rows.astype(jnp.float32)

    vmem = pl.BlockSpec(memory_space=pltpu.MemorySpace.VMEM)
    return pl.pallas_call(
        _cnn_fused_kernel,
        out_shape=jax.ShapeDtypeStruct((nb, n_out), jnp.float32),
        in_specs=[vmem] * (1 + len(packed)),
        out_specs=vmem,
    )(x_rows, *packed)


if __name__ == "__main__":
    key = jax.random.PRNGKey(0)
    pkey, xkey = jax.random.split(key)

    feature = 16
    batch = 2
    params = init_params(pkey, feature=feature, input_ch=1, output=3)
    packed = pack_params(params, batch=batch, feature=feature, input_ch=1)

    x = jax.random.normal(xkey, (batch, 1, feature, feature),
                          dtype=jnp.float32)

    fwd = jax.jit(cnn_forward)
    out = jax.block_until_ready(fwd(packed, x))
    assert out.shape == (batch, 3), out.shape
    print("KERNEL_OK")
</pallas_src>

<mosaic_0001>
module attributes {stable_mosaic.version = 11 : i64} {
  func.func @_cnn_fused_kernel(%arg0: memref<32x16xf32, #tpu.memory_space<vmem>>, %arg1: memref<3x32x32xbf16, #tpu.memory_space<vmem>>, %arg2: memref<16x8x32xbf16, #tpu.memory_space<vmem>>, %arg3: memref<16x128xbf16, #tpu.memory_space<vmem>>, %arg4: memref<1x128xf32, #tpu.memory_space<vmem>>, %arg5: memref<128x128xbf16, #tpu.memory_space<vmem>>, %arg6: memref<1x128xf32, #tpu.memory_space<vmem>>, %arg7: memref<3x128x128xbf16, #tpu.memory_space<vmem>>, %arg8: memref<1x128xf32, #tpu.memory_space<vmem>>, %arg9: memref<3x128x128xbf16, #tpu.memory_space<vmem>>, %arg10: memref<1x128xf32, #tpu.memory_space<vmem>>, %arg11: memref<16x128x256xbf16, #tpu.memory_space<vmem>>, %arg12: memref<1x256xf32, #tpu.memory_space<vmem>>, %arg13: memref<256x256xbf16, #tpu.memory_space<vmem>>, %arg14: memref<1x256xf32, #tpu.memory_space<vmem>>, %arg15: memref<256x512xbf16, #tpu.memory_space<vmem>>, %arg16: memref<1x512xf32, #tpu.memory_space<vmem>>, %arg17: memref<512x512xbf16, #tpu.memory_space<vmem>>, %arg18: memref<1x512xf32, #tpu.memory_space<vmem>>, %arg19: memref<512x128xbf16, #tpu.memory_space<vmem>>, %arg20: memref<1x128xf32, #tpu.memory_space<vmem>>, %arg21: memref<2x3xf32, #tpu.memory_space<vmem>>) attributes {dimension_semantics = [], scalar_prefetch = 0 : i64, scratch_operands = 0 : i64, tpu.core_type = #tpu.core_type<tc>} {
    %c0 = arith.constant 0 : index
    %c0_0 = arith.constant 0 : index
    %0 = vector.load %arg0[%c0, %c0_0] : memref<32x16xf32, #tpu.memory_space<vmem>>, vector<32x16xf32>
    %c0_1 = arith.constant 0 : index
    %c0_2 = arith.constant 0 : index
    %1 = vector.load %arg3[%c0_1, %c0_2] : memref<16x128xbf16, #tpu.memory_space<vmem>>, vector<16x128xbf16>
    %2 = arith.truncf %0 : vector<32x16xf32> to vector<32x16xbf16>
    %cst = arith.constant dense<0.000000e+00> : vector<32x128xf32>
    %3 = tpu.matmul %2, %1, %cst {dimension_numbers = #tpu.dot_dimension_numbers<[1], [0], [0], [1], [0, 0, 1, 1], [], []>} : vector<32x16xbf16>, vector<16x128xbf16>, vector<32x128xf32> -> vector<32x128xf32>
    %c0_3 = arith.constant 0 : index
    %c0_4 = arith.constant 0 : index
    %4 = vector.load %arg4[%c0_3, %c0_4] : memref<1x128xf32, #tpu.memory_space<vmem>>, vector<1x128xf32>
    %5 = vector.broadcast %4 : vector<1x128xf32> to vector<32x128xf32>
    %6 = arith.addf %3, %5 : vector<32x128xf32>
    %c0_5 = arith.constant 0 : index
    %c0_6 = arith.constant 0 : index
    %7 = vector.load %arg5[%c0_5, %c0_6] : memref<128x128xbf16, #tpu.memory_space<vmem>>, vector<128x128xbf16>
    %8 = arith.truncf %6 : vector<32x128xf32> to vector<32x128xbf16>
    %cst_7 = arith.constant dense<0.000000e+00> : vector<32x128xf32>
    %9 = tpu.matmul %8, %7, %cst_7 {dimension_numbers = #tpu.dot_dimension_numbers<[1], [0], [0], [1], [0, 0, 1, 1], [], []>} : vector<32x128xbf16>, vector<128x128xbf16>, vector<32x128xf32> -> vector<32x128xf32>
    %c0_8 = arith.constant 0 : index
    %c0_9 = arith.constant 0 : index
    %10 = vector.load %arg6[%c0_8, %c0_9] : memref<1x128xf32, #tpu.memory_space<vmem>>, vector<1x128xf32>
    %11 = vector.broadcast %10 : vector<1x128xf32> to vector<32x128xf32>
    %12 = arith.addf %9, %11 : vector<32x128xf32>
    %cst_10 = arith.constant 0.000000e+00 : f32
    %13 = vector.broadcast %cst_10 : f32 to vector<32x128xf32>
    %14 = arith.maximumf %12, %13 : vector<32x128xf32>
    %c0_11 = arith.constant 0 : index
    %c0_12 = arith.constant 0 : index
    %15 = vector.load %arg5[%c0_11, %c0_12] : memref<128x128xbf16, #tpu.memory_space<vmem>>, vector<128x128xbf16>
    %16 = arith.truncf %14 : vector<32x128xf32> to vector<32x128xbf16>
    %cst_13 = arith.constant dense<0.000000e+00> : vector<32x128xf32>
    %17 = tpu.matmul %16, %15, %cst_13 {dimension_numbers = #tpu.dot_dimension_numbers<[1], [0], [0], [1], [0, 0, 1, 1], [], []>} : vector<32x128xbf16>, vector<128x128xbf16>, vector<32x128xf32> -> vector<32x128xf32>
    %c0_14 = arith.constant 0 : index
    %c0_15 = arith.constant 0 : index
    %18 = vector.load %arg6[%c0_14, %c0_15] : memref<1x128xf32, #tpu.memory_space<vmem>>, vector<1x128xf32>
    %19 = vector.broadcast %18 : vector<1x128xf32> to vector<32x128xf32>
    %20 = arith.addf %17, %19 : vector<32x128xf32>
    %cst_16 = arith.constant 0.000000e+00 : f32
    %21 = vector.broadcast %cst_16 : f32 to vector<32x128xf32>
    %22 = arith.maximumf %20, %21 : vector<32x128xf32>
    %c0_17 = arith.constant 0 : index
    %c0_18 = arith.constant 0 : index
    %c0_19 = arith.constant 0 : index
    %23 = vector.load %arg1[%c0_17, %c0_18, %c0_19] : memref<3x32x32xbf16, #tpu.memory_space<vmem>>, vector<1x32x32xbf16>
    %24 = vector.shape_cast %23 : vector<1x32x32xbf16> to vector<32x32xbf16>
    %25 = arith.truncf %22 : vector<32x128xf32> to vector<32x128xbf16>
    %cst_20 = arith.constant dense<0.000000e+00> : vector<32x128xf32>
    %26 = tpu.matmul %24, %25, %cst_20 {dimension_numbers = #tpu.dot_dimension_numbers<[1], [0], [0], [1], [0, 0, 1, 1], [], []>} : vector<32x32xbf16>, vector<32x128xbf16>, vector<32x128xf32> -> vector<32x128xf32>
    %c0_21 = arith.constant 0 : index
    %c0_22 = arith.constant 0 : index
    %c0_23 = arith.constant 0 : index
    %27 = vector.load %arg7[%c0_21, %c0_22, %c0_23] : memref<3x128x128xbf16, #tpu.memory_space<vmem>>, vector<1x128x128xbf16>
    %28 = vector.shape_cast %27 : vector<1x128x128xbf16> to vector<128x128xbf16>
    %29 = arith.truncf %26 : vector<32x128xf32> to vector<32x128xbf16>
    %cst_24 = arith.constant dense<0.000000e+00> : vector<32x128xf32>
    %30 = tpu.matmul %29, %28, %cst_24 {dimension_numbers = #tpu.dot_dimension_numbers<[1], [0], [0], [1], [0, 0, 1, 1], [], []>} : vector<32x128xbf16>, vector<128x128xbf16>, vector<32x128xf32> -> vector<32x128xf32>
    %c1 = arith.constant 1 : index
    %c0_25 = arith.constant 0 : index
    %c0_26 = arith.constant 0 : index
    %31 = vector.load %arg1[%c1, %c0_25, %c0_26] : memref<3x32x32xbf16, #tpu.memory_space<vmem>>, vector<1x32x32xbf16>
    %32 = vector.shape_cast %31 : vector<1x32x32xbf16> to vector<32x32xbf16>
    %33 = arith.truncf %22 : vector<32x128xf32> to vector<32x128xbf16>
    %cst_27 = arith.constant dense<0.000000e+00> : vector<32x128xf32>
    %34 = tpu.matmul %32, %33, %cst_27 {dimension_numbers = #tpu.dot_dimension_numbers<[1], [0], [0], [1], [0, 0, 1, 1], [], []>} : vector<32x32xbf16>, vector<32x128xbf16>, vector<32x128xf32> -> vector<32x128xf32>
    %c1_28 = arith.constant 1 : index
    %c0_29 = arith.constant 0 : index
    %c0_30 = arith.constant 0 : index
    %35 = vector.load %arg7[%c1_28, %c0_29, %c0_30] : memref<3x128x128xbf16, #tpu.memory_space<vmem>>, vector<1x128x128xbf16>
    %36 = vector.shape_cast %35 : vector<1x128x128xbf16> to vector<128x128xbf16>
    %37 = arith.truncf %34 : vector<32x128xf32> to vector<32x128xbf16>
    %cst_31 = arith.constant dense<0.000000e+00> : vector<32x128xf32>
    %38 = tpu.matmul %37, %36, %cst_31 {dimension_numbers = #tpu.dot_dimension_numbers<[1], [0], [0], [1], [0, 0, 1, 1], [], []>} : vector<32x128xbf16>, vector<128x128xbf16>, vector<32x128xf32> -> vector<32x128xf32>
    %39 = arith.addf %30, %38 : vector<32x128xf32>
    %c2 = arith.constant 2 : index
    %c0_32 = arith.constant 0 : index
    %c0_33 = arith.constant 0 : index
    %40 = vector.load %arg1[%c2, %c0_32, %c0_33] : memref<3x32x32xbf16, #tpu.memory_space<vmem>>, vector<1x32x32xbf16>
    %41 = vector.shape_cast %40 : vector<1x32x32xbf16> to vector<32x32xbf16>
    %42 = arith.truncf %22 : vector<32x128xf32> to vector<32x128xbf16>
    %cst_34 = arith.constant dense<0.000000e+00> : vector<32x128xf32>
    %43 = tpu.matmul %41, %42, %cst_34 {dimension_numbers = #tpu.dot_dimension_numbers<[1], [0], [0], [1], [0, 0, 1, 1], [], []>} : vector<32x32xbf16>, vector<32x128xbf16>, vector<32x128xf32> -> vector<32x128xf32>
    %c2_35 = arith.constant 2 : index
    %c0_36 = arith.constant 0 : index
    %c0_37 = arith.constant 0 : index
    %44 = vector.load %arg7[%c2_35, %c0_36, %c0_37] : memref<3x128x128xbf16, #tpu.memory_space<vmem>>, vector<1x128x128xbf16>
    %45 = vector.shape_cast %44 : vector<1x128x128xbf16> to vector<128x128xbf16>
    %46 = arith.truncf %43 : vector<32x128xf32> to vector<32x128xbf16>
    %cst_38 = arith.constant dense<0.000000e+00> : vector<32x128xf32>
    %47 = tpu.matmul %46, %45, %cst_38 {dimension_numbers = #tpu.dot_dimension_numbers<[1], [0], [0], [1], [0, 0, 1, 1], [], []>} : vector<32x128xbf16>, vector<128x128xbf16>, vector<32x128xf32> -> vector<32x128xf32>
    %48 = arith.addf %39, %47 : vector<32x128xf32>
    %c0_39 = arith.constant 0 : index
    %c0_40 = arith.constant 0 : index
    %49 = vector.load %arg8[%c0_39, %c0_40] : memref<1x128xf32, #tpu.memory_space<vmem>>, vector<1x128xf32>
    %50 = vector.broadcast %49 : vector<1x128xf32> to vector<32x128xf32>
    %51 = arith.addf %48, %50 : vector<32x128xf32>
    %c0_41 = arith.constant 0 : index
    %c0_42 = arith.constant 0 : index
    %c0_43 = arith.constant 0 : index
    %52 = vector.load %arg1[%c0_41, %c0_42, %c0_43] : memref<3x32x32xbf16, #tpu.memory_space<vmem>>, vector<1x32x32xbf16>
    %53 = vector.shape_cast %52 : vector<1x32x32xbf16> to vector<32x32xbf16>
    %54 = arith.truncf %51 : vector<32x128xf32> to vector<32x128xbf16>
    %cst_44 = arith.constant dense<0.000000e+00> : vector<32x128xf32>
    %55 = tpu.matmul %53, %54, %cst_44 {dimension_numbers = #tpu.dot_dimension_numbers<[1], [0], [0], [1], [0, 0, 1, 1], [], []>} : vector<32x32xbf16>, vector<32x128xbf16>, vector<32x128xf32> -> vector<32x128xf32>
    %c0_45 = arith.constant 0 : index
    %c0_46 = arith.constant 0 : index
    %c0_47 = arith.constant 0 : index
    %56 = vector.load %arg9[%c0_45, %c0_46, %c0_47] : memref<3x128x128xbf16, #tpu.memory_space<vmem>>, vector<1x128x128xbf16>
    %57 = vector.shape_cast %56 : vector<1x128x128xbf16> to vector<128x128xbf16>
    %58 = arith.truncf %55 : vector<32x128xf32> to vector<32x128xbf16>
    %cst_48 = arith.constant dense<0.000000e+00> : vector<32x128xf32>
    %59 = tpu.matmul %58, %57, %cst_48 {dimension_numbers = #tpu.dot_dimension_numbers<[1], [0], [0], [1], [0, 0, 1, 1], [], []>} : vector<32x128xbf16>, vector<128x128xbf16>, vector<32x128xf32> -> vector<32x128xf32>
    %c1_49 = arith.constant 1 : index
    %c0_50 = arith.constant 0 : index
    %c0_51 = arith.constant 0 : index
    %60 = vector.load %arg1[%c1_49, %c0_50, %c0_51] : memref<3x32x32xbf16, #tpu.memory_space<vmem>>, vector<1x32x32xbf16>
    %61 = vector.shape_cast %60 : vector<1x32x32xbf16> to vector<32x32xbf16>
    %62 = arith.truncf %51 : vector<32x128xf32> to vector<32x128xbf16>
    %cst_52 = arith.constant dense<0.000000e+00> : vector<32x128xf32>
    %63 = tpu.matmul %61, %62, %cst_52 {dimension_numbers = #tpu.dot_dimension_numbers<[1], [0], [0], [1], [0, 0, 1, 1], [], []>} : vector<32x32xbf16>, vector<32x128xbf16>, vector<32x128xf32> -> vector<32x128xf32>
    %c1_53 = arith.constant 1 : index
    %c0_54 = arith.constant 0 : index
    %c0_55 = arith.constant 0 : index
    %64 = vector.load %arg9[%c1_53, %c0_54, %c0_55] : memref<3x128x128xbf16, #tpu.memory_space<vmem>>, vector<1x128x128xbf16>
    %65 = vector.shape_cast %64 : vector<1x128x128xbf16> to vector<128x128xbf16>
    %66 = arith.truncf %63 : vector<32x128xf32> to vector<32x128xbf16>
    %cst_56 = arith.constant dense<0.000000e+00> : vector<32x128xf32>
    %67 = tpu.matmul %66, %65, %cst_56 {dimension_numbers = #tpu.dot_dimension_numbers<[1], [0], [0], [1], [0, 0, 1, 1], [], []>} : vector<32x128xbf16>, vector<128x128xbf16>, vector<32x128xf32> -> vector<32x128xf32>
    %68 = arith.addf %59, %67 : vector<32x128xf32>
    %c2_57 = arith.constant 2 : index
    %c0_58 = arith.constant 0 : index
    %c0_59 = arith.constant 0 : index
    %69 = vector.load %arg1[%c2_57, %c0_58, %c0_59] : memref<3x32x32xbf16, #tpu.memory_space<vmem>>, vector<1x32x32xbf16>
    %70 = vector.shape_cast %69 : vector<1x32x32xbf16> to vector<32x32xbf16>
    %71 = arith.truncf %51 : vector<32x128xf32> to vector<32x128xbf16>
    %cst_60 = arith.constant dense<0.000000e+00> : vector<32x128xf32>
    %72 = tpu.matmul %70, %71, %cst_60 {dimension_numbers = #tpu.dot_dimension_numbers<[1], [0], [0], [1], [0, 0, 1, 1], [], []>} : vector<32x32xbf16>, vector<32x128xbf16>, vector<32x128xf32> -> vector<32x128xf32>
    %c2_61 = arith.constant 2 : index
    %c0_62 = arith.constant 0 : index
    %c0_63 = arith.constant 0 : index
    %73 = vector.load %arg9[%c2_61, %c0_62, %c0_63] : memref<3x128x128xbf16, #tpu.memory_space<vmem>>, vector<1x128x128xbf16>
    %74 = vector.shape_cast %73 : vector<1x128x128xbf16> to vector<128x128xbf16>
    %75 = arith.truncf %72 : vector<32x128xf32> to vector<32x128xbf16>
    %cst_64 = arith.constant dense<0.000000e+00> : vector<32x128xf32>
    %76 = tpu.matmul %75, %74, %cst_64 {dimension_numbers = #tpu.dot_dimension_numbers<[1], [0], [0], [1], [0, 0, 1, 1], [], []>} : vector<32x128xbf16>, vector<128x128xbf16>, vector<32x128xf32> -> vector<32x128xf32>
    %77 = arith.addf %68, %76 : vector<32x128xf32>
    %c0_65 = arith.constant 0 : index
    %c0_66 = arith.constant 0 : index
    %78 = vector.load %arg10[%c0_65, %c0_66] : memref<1x128xf32, #tpu.memory_space<vmem>>, vector<1x128xf32>
    %79 = vector.broadcast %78 : vector<1x128xf32> to vector<32x128xf32>
    %80 = arith.addf %77, %79 : vector<32x128xf32>
    %cst_67 = arith.constant 0.000000e+00 : f32
    %81 = vector.broadcast %cst_67 : f32 to vector<32x128xf32>
    %82 = arith.maximumf %80, %81 : vector<32x128xf32>
    %c0_68 = arith.constant 0 : index
    %c0_69 = arith.constant 0 : index
    %c0_70 = arith.constant 0 : index
    %83 = vector.load %arg1[%c0_68, %c0_69, %c0_70] : memref<3x32x32xbf16, #tpu.memory_space<vmem>>, vector<1x32x32xbf16>
    %84 = vector.shape_cast %83 : vector<1x32x32xbf16> to vector<32x32xbf16>
    %85 = arith.truncf %82 : vector<32x128xf32> to vector<32x128xbf16>
    %cst_71 = arith.constant dense<0.000000e+00> : vector<32x128xf32>
    %86 = tpu.matmul %84, %85, %cst_71 {dimension_numbers = #tpu.dot_dimension_numbers<[1], [0], [0], [1], [0, 0, 1, 1], [], []>} : vector<32x32xbf16>, vector<32x128xbf16>, vector<32x128xf32> -> vector<32x128xf32>
    %c0_72 = arith.constant 0 : index
    %c0_73 = arith.constant 0 : index
    %c0_74 = arith.constant 0 : index
    %87 = vector.load %arg9[%c0_72, %c0_73, %c0_74] : memref<3x128x128xbf16, #tpu.memory_space<vmem>>, vector<1x128x128xbf16>
    %88 = vector.shape_cast %87 : vector<1x128x128xbf16> to vector<128x128xbf16>
    %89 = arith.truncf %86 : vector<32x128xf32> to vector<32x128xbf16>
    %cst_75 = arith.constant dense<0.000000e+00> : vector<32x128xf32>
    %90 = tpu.matmul %89, %88, %cst_75 {dimension_numbers = #tpu.dot_dimension_numbers<[1], [0], [0], [1], [0, 0, 1, 1], [], []>} : vector<32x128xbf16>, vector<128x128xbf16>, vector<32x128xf32> -> vector<32x128xf32>
    %c1_76 = arith.constant 1 : index
    %c0_77 = arith.constant 0 : index
    %c0_78 = arith.constant 0 : index
    %91 = vector.load %arg1[%c1_76, %c0_77, %c0_78] : memref<3x32x32xbf16, #tpu.memory_space<vmem>>, vector<1x32x32xbf16>
    %92 = vector.shape_cast %91 : vector<1x32x32xbf16> to vector<32x32xbf16>
    %93 = arith.truncf %82 : vector<32x128xf32> to vector<32x128xbf16>
    %cst_79 = arith.constant dense<0.000000e+00> : vector<32x128xf32>
    %94 = tpu.matmul %92, %93, %cst_79 {dimension_numbers = #tpu.dot_dimension_numbers<[1], [0], [0], [1], [0, 0, 1, 1], [], []>} : vector<32x32xbf16>, vector<32x128xbf16>, vector<32x128xf32> -> vector<32x128xf32>
    %c1_80 = arith.constant 1 : index
    %c0_81 = arith.constant 0 : index
    %c0_82 = arith.constant 0 : index
    %95 = vector.load %arg9[%c1_80, %c0_81, %c0_82] : memref<3x128x128xbf16, #tpu.memory_space<vmem>>, vector<1x128x128xbf16>
    %96 = vector.shape_cast %95 : vector<1x128x128xbf16> to vector<128x128xbf16>
    %97 = arith.truncf %94 : vector<32x128xf32> to vector<32x128xbf16>
    %cst_83 = arith.constant dense<0.000000e+00> : vector<32x128xf32>
    %98 = tpu.matmul %97, %96, %cst_83 {dimension_numbers = #tpu.dot_dimension_numbers<[1], [0], [0], [1], [0, 0, 1, 1], [], []>} : vector<32x128xbf16>, vector<128x128xbf16>, vector<32x128xf32> -> vector<32x128xf32>
    %99 = arith.addf %90, %98 : vector<32x128xf32>
    %c2_84 = arith.constant 2 : index
    %c0_85 = arith.constant 0 : index
    %c0_86 = arith.constant 0 : index
    %100 = vector.load %arg1[%c2_84, %c0_85, %c0_86] : memref<3x32x32xbf16, #tpu.memory_space<vmem>>, vector<1x32x32xbf16>
    %101 = vector.shape_cast %100 : vector<1x32x32xbf16> to vector<32x32xbf16>
    %102 = arith.truncf %82 : vector<32x128xf32> to vector<32x128xbf16>
    %cst_87 = arith.constant dense<0.000000e+00> : vector<32x128xf32>
    %103 = tpu.matmul %101, %102, %cst_87 {dimension_numbers = #tpu.dot_dimension_numbers<[1], [0], [0], [1], [0, 0, 1, 1], [], []>} : vector<32x32xbf16>, vector<32x128xbf16>, vector<32x128xf32> -> vector<32x128xf32>
    %c2_88 = arith.constant 2 : index
    %c0_89 = arith.constant 0 : index
    %c0_90 = arith.constant 0 : index
    %104 = vector.load %arg9[%c2_88, %c0_89, %c0_90] : memref<3x128x128xbf16, #tpu.memory_space<vmem>>, vector<1x128x128xbf16>
    %105 = vector.shape_cast %104 : vector<1x128x128xbf16> to vector<128x128xbf16>
    %106 = arith.truncf %103 : vector<32x128xf32> to vector<32x128xbf16>
    %cst_91 = arith.constant dense<0.000000e+00> : vector<32x128xf32>
    %107 = tpu.matmul %106, %105, %cst_91 {dimension_numbers = #tpu.dot_dimension_numbers<[1], [0], [0], [1], [0, 0, 1, 1], [], []>} : vector<32x128xbf16>, vector<128x128xbf16>, vector<32x128xf32> -> vector<32x128xf32>
    %108 = arith.addf %99, %107 : vector<32x128xf32>
    %c0_92 = arith.constant 0 : index
    %c0_93 = arith.constant 0 : index
    %109 = vector.load %arg10[%c0_92, %c0_93] : memref<1x128xf32, #tpu.memory_space<vmem>>, vector<1x128xf32>
    %110 = vector.broadcast %109 : vector<1x128xf32> to vector<32x128xf32>
    %111 = arith.addf %108, %110 : vector<32x128xf32>
    %cst_94 = arith.constant 0.000000e+00 : f32
    %112 = vector.broadcast %cst_94 : f32 to vector<32x128xf32>
    %113 = arith.maximumf %111, %112 : vector<32x128xf32>
    %cst_95 = arith.constant 0.000000e+00 : f32
    %114 = vector.broadcast %cst_95 : f32 to vector<8x256xf32>
    %c0_96 = arith.constant 0 : index
    %c0_97 = arith.constant 0 : index
    %c0_98 = arith.constant 0 : index
    %115 = vector.load %arg2[%c0_96, %c0_97, %c0_98] : memref<16x8x32xbf16, #tpu.memory_space<vmem>>, vector<1x8x32xbf16>
    %116 = vector.shape_cast %115 : vector<1x8x32xbf16> to vector<8x32xbf16>
    %117 = arith.truncf %113 : vector<32x128xf32> to vector<32x128xbf16>
    %cst_99 = arith.constant dense<0.000000e+00> : vector<8x128xf32>
    %118 = tpu.matmul %116, %117, %cst_99 {dimension_numbers = #tpu.dot_dimension_numbers<[1], [0], [0], [1], [0, 0, 1, 1], [], []>} : vector<8x32xbf16>, vector<32x128xbf16>, vector<8x128xf32> -> vector<8x128xf32>
    %c0_100 = arith.constant 0 : index
    %c0_101 = arith.constant 0 : index
    %c0_102 = arith.constant 0 : index
    %119 = vector.load %arg11[%c0_100, %c0_101, %c0_102] : memref<16x128x256xbf16, #tpu.memory_space<vmem>>, vector<1x128x256xbf16>
    %120 = vector.shape_cast %119 : vector<1x128x256xbf16> to vector<128x256xbf16>
    %121 = arith.truncf %118 : vector<8x128xf32> to vector<8x128xbf16>
    %cst_103 = arith.constant dense<0.000000e+00> : vector<8x256xf32>
    %122 = tpu.matmul %121, %120, %cst_103 {dimension_numbers = #tpu.dot_dimension_numbers<[1], [0], [0], [1], [0, 0, 1, 1], [], []>} : vector<8x128xbf16>, vector<128x256xbf16>, vector<8x256xf32> -> vector<8x256xf32>
    %123 = arith.addf %114, %122 : vector<8x256xf32>
    %c1_104 = arith.constant 1 : index
    %c0_105 = arith.constant 0 : index
    %c0_106 = arith.constant 0 : index
    %124 = vector.load %arg2[%c1_104, %c0_105, %c0_106] : memref<16x8x32xbf16, #tpu.memory_space<vmem>>, vector<1x8x32xbf16>
    %125 = vector.shape_cast %124 : vector<1x8x32xbf16> to vector<8x32xbf16>
    %126 = arith.truncf %113 : vector<32x128xf32> to vector<32x128xbf16>
    %cst_107 = arith.constant dense<0.000000e+00> : vector<8x128xf32>
    %127 = tpu.matmul %125, %126, %cst_107 {dimension_numbers = #tpu.dot_dimension_numbers<[1], [0], [0], [1], [0, 0, 1, 1], [], []>} : vector<8x32xbf16>, vector<32x128xbf16>, vector<8x128xf32> -> vector<8x128xf32>
    %c1_108 = arith.constant 1 : index
    %c0_109 = arith.constant 0 : index
    %c0_110 = arith.constant 0 : index
    %128 = vector.load %arg11[%c1_108, %c0_109, %c0_110] : memref<16x128x256xbf16, #tpu.memory_space<vmem>>, vector<1x128x256xbf16>
    %129 = vector.shape_cast %128 : vector<1x128x256xbf16> to vector<128x256xbf16>
    %130 = arith.truncf %127 : vector<8x128xf32> to vector<8x128xbf16>
    %cst_111 = arith.constant dense<0.000000e+00> : vector<8x256xf32>
    %131 = tpu.matmul %130, %129, %cst_111 {dimension_numbers = #tpu.dot_dimension_numbers<[1], [0], [0], [1], [0, 0, 1, 1], [], []>} : vector<8x128xbf16>, vector<128x256xbf16>, vector<8x256xf32> -> vector<8x256xf32>
    %132 = arith.addf %123, %131 : vector<8x256xf32>
    %c2_112 = arith.constant 2 : index
    %c0_113 = arith.constant 0 : index
    %c0_114 = arith.constant 0 : index
    %133 = vector.load %arg2[%c2_112, %c0_113, %c0_114] : memref<16x8x32xbf16, #tpu.memory_space<vmem>>, vector<1x8x32xbf16>
    %134 = vector.shape_cast %133 : vector<1x8x32xbf16> to vector<8x32xbf16>
    %135 = arith.truncf %113 : vector<32x128xf32> to vector<32x128xbf16>
    %cst_115 = arith.constant dense<0.000000e+00> : vector<8x128xf32>
    %136 = tpu.matmul %134, %135, %cst_115 {dimension_numbers = #tpu.dot_dimension_numbers<[1], [0], [0], [1], [0, 0, 1, 1], [], []>} : vector<8x32xbf16>, vector<32x128xbf16>, vector<8x128xf32> -> vector<8x128xf32>
    %c2_116 = arith.constant 2 : index
    %c0_117 = arith.constant 0 : index
    %c0_118 = arith.constant 0 : index
    %137 = vector.load %arg11[%c2_116, %c0_117, %c0_118] : memref<16x128x256xbf16, #tpu.memory_space<vmem>>, vector<1x128x256xbf16>
    %138 = vector.shape_cast %137 : vector<1x128x256xbf16> to vector<128x256xbf16>
    %139 = arith.truncf %136 : vector<8x128xf32> to vector<8x128xbf16>
    %cst_119 = arith.constant dense<0.000000e+00> : vector<8x256xf32>
    %140 = tpu.matmul %139, %138, %cst_119 {dimension_numbers = #tpu.dot_dimension_numbers<[1], [0], [0], [1], [0, 0, 1, 1], [], []>} : vector<8x128xbf16>, vector<128x256xbf16>, vector<8x256xf32> -> vector<8x256xf32>
    %141 = arith.addf %132, %140 : vector<8x256xf32>
    %c3 = arith.constant 3 : index
    %c0_120 = arith.constant 0 : index
    %c0_121 = arith.constant 0 : index
    %142 = vector.load %arg2[%c3, %c0_120, %c0_121] : memref<16x8x32xbf16, #tpu.memory_space<vmem>>, vector<1x8x32xbf16>
    %143 = vector.shape_cast %142 : vector<1x8x32xbf16> to vector<8x32xbf16>
    %144 = arith.truncf %113 : vector<32x128xf32> to vector<32x128xbf16>
    %cst_122 = arith.constant dense<0.000000e+00> : vector<8x128xf32>
    %145 = tpu.matmul %143, %144, %cst_122 {dimension_numbers = #tpu.dot_dimension_numbers<[1], [0], [0], [1], [0, 0, 1, 1], [], []>} : vector<8x32xbf16>, vector<32x128xbf16>, vector<8x128xf32> -> vector<8x128xf32>
    %c3_123 = arith.constant 3 : index
    %c0_124 = arith.constant 0 : index
    %c0_125 = arith.constant 0 : index
    %146 = vector.load %arg11[%c3_123, %c0_124, %c0_125] : memref<16x128x256xbf16, #tpu.memory_space<vmem>>, vector<1x128x256xbf16>
    %147 = vector.shape_cast %146 : vector<1x128x256xbf16> to vector<128x256xbf16>
    %148 = arith.truncf %145 : vector<8x128xf32> to vector<8x128xbf16>
    %cst_126 = arith.constant dense<0.000000e+00> : vector<8x256xf32>
    %149 = tpu.matmul %148, %147, %cst_126 {dimension_numbers = #tpu.dot_dimension_numbers<[1], [0], [0], [1], [0, 0, 1, 1], [], []>} : vector<8x128xbf16>, vector<128x256xbf16>, vector<8x256xf32> -> vector<8x256xf32>
    %150 = arith.addf %141, %149 : vector<8x256xf32>
    %c4 = arith.constant 4 : index
    %c0_127 = arith.constant 0 : index
    %c0_128 = arith.constant 0 : index
    %151 = vector.load %arg2[%c4, %c0_127, %c0_128] : memref<16x8x32xbf16, #tpu.memory_space<vmem>>, vector<1x8x32xbf16>
    %152 = vector.shape_cast %151 : vector<1x8x32xbf16> to vector<8x32xbf16>
    %153 = arith.truncf %113 : vector<32x128xf32> to vector<32x128xbf16>
    %cst_129 = arith.constant dense<0.000000e+00> : vector<8x128xf32>
    %154 = tpu.matmul %152, %153, %cst_129 {dimension_numbers = #tpu.dot_dimension_numbers<[1], [0], [0], [1], [0, 0, 1, 1], [], []>} : vector<8x32xbf16>, vector<32x128xbf16>, vector<8x128xf32> -> vector<8x128xf32>
    %c4_130 = arith.constant 4 : index
    %c0_131 = arith.constant 0 : index
    %c0_132 = arith.constant 0 : index
    %155 = vector.load %arg11[%c4_130, %c0_131, %c0_132] : memref<16x128x256xbf16, #tpu.memory_space<vmem>>, vector<1x128x256xbf16>
    %156 = vector.shape_cast %155 : vector<1x128x256xbf16> to vector<128x256xbf16>
    %157 = arith.truncf %154 : vector<8x128xf32> to vector<8x128xbf16>
    %cst_133 = arith.constant dense<0.000000e+00> : vector<8x256xf32>
    %158 = tpu.matmul %157, %156, %cst_133 {dimension_numbers = #tpu.dot_dimension_numbers<[1], [0], [0], [1], [0, 0, 1, 1], [], []>} : vector<8x128xbf16>, vector<128x256xbf16>, vector<8x256xf32> -> vector<8x256xf32>
    %159 = arith.addf %150, %158 : vector<8x256xf32>
    %c5 = arith.constant 5 : index
    %c0_134 = arith.constant 0 : index
    %c0_135 = arith.constant 0 : index
    %160 = vector.load %arg2[%c5, %c0_134, %c0_135] : memref<16x8x32xbf16, #tpu.memory_space<vmem>>, vector<1x8x32xbf16>
    %161 = vector.shape_cast %160 : vector<1x8x32xbf16> to vector<8x32xbf16>
    %162 = arith.truncf %113 : vector<32x128xf32> to vector<32x128xbf16>
    %cst_136 = arith.constant dense<0.000000e+00> : vector<8x128xf32>
    %163 = tpu.matmul %161, %162, %cst_136 {dimension_numbers = #tpu.dot_dimension_numbers<[1], [0], [0], [1], [0, 0, 1, 1], [], []>} : vector<8x32xbf16>, vector<32x128xbf16>, vector<8x128xf32> -> vector<8x128xf32>
    %c5_137 = arith.constant 5 : index
    %c0_138 = arith.constant 0 : index
    %c0_139 = arith.constant 0 : index
    %164 = vector.load %arg11[%c5_137, %c0_138, %c0_139] : memref<16x128x256xbf16, #tpu.memory_space<vmem>>, vector<1x128x256xbf16>
    %165 = vector.shape_cast %164 : vector<1x128x256xbf16> to vector<128x256xbf16>
    %166 = arith.truncf %163 : vector<8x128xf32> to vector<8x128xbf16>
    %cst_140 = arith.constant dense<0.000000e+00> : vector<8x256xf32>
    %167 = tpu.matmul %166, %165, %cst_140 {dimension_numbers = #tpu.dot_dimension_numbers<[1], [0], [0], [1], [0, 0, 1, 1], [], []>} : vector<8x128xbf16>, vector<128x256xbf16>, vector<8x256xf32> -> vector<8x256xf32>
    %168 = arith.addf %159, %167 : vector<8x256xf32>
    %c6 = arith.constant 6 : index
    %c0_141 = arith.constant 0 : index
    %c0_142 = arith.constant 0 : index
    %169 = vector.load %arg2[%c6, %c0_141, %c0_142] : memref<16x8x32xbf16, #tpu.memory_space<vmem>>, vector<1x8x32xbf16>
    %170 = vector.shape_cast %169 : vector<1x8x32xbf16> to vector<8x32xbf16>
    %171 = arith.truncf %113 : vector<32x128xf32> to vector<32x128xbf16>
    %cst_143 = arith.constant dense<0.000000e+00> : vector<8x128xf32>
    %172 = tpu.matmul %170, %171, %cst_143 {dimension_numbers = #tpu.dot_dimension_numbers<[1], [0], [0], [1], [0, 0, 1, 1], [], []>} : vector<8x32xbf16>, vector<32x128xbf16>, vector<8x128xf32> -> vector<8x128xf32>
    %c6_144 = arith.constant 6 : index
    %c0_145 = arith.constant 0 : index
    %c0_146 = arith.constant 0 : index
    %173 = vector.load %arg11[%c6_144, %c0_145, %c0_146] : memref<16x128x256xbf16, #tpu.memory_space<vmem>>, vector<1x128x256xbf16>
    %174 = vector.shape_cast %173 : vector<1x128x256xbf16> to vector<128x256xbf16>
    %175 = arith.truncf %172 : vector<8x128xf32> to vector<8x128xbf16>
    %cst_147 = arith.constant dense<0.000000e+00> : vector<8x256xf32>
    %176 = tpu.matmul %175, %174, %cst_147 {dimension_numbers = #tpu.dot_dimension_numbers<[1], [0], [0], [1], [0, 0, 1, 1], [], []>} : vector<8x128xbf16>, vector<128x256xbf16>, vector<8x256xf32> -> vector<8x256xf32>
    %177 = arith.addf %168, %176 : vector<8x256xf32>
    %c7 = arith.constant 7 : index
    %c0_148 = arith.constant 0 : index
    %c0_149 = arith.constant 0 : index
    %178 = vector.load %arg2[%c7, %c0_148, %c0_149] : memref<16x8x32xbf16, #tpu.memory_space<vmem>>, vector<1x8x32xbf16>
    %179 = vector.shape_cast %178 : vector<1x8x32xbf16> to vector<8x32xbf16>
    %180 = arith.truncf %113 : vector<32x128xf32> to vector<32x128xbf16>
    %cst_150 = arith.constant dense<0.000000e+00> : vector<8x128xf32>
    %181 = tpu.matmul %179, %180, %cst_150 {dimension_numbers = #tpu.dot_dimension_numbers<[1], [0], [0], [1], [0, 0, 1, 1], [], []>} : vector<8x32xbf16>, vector<32x128xbf16>, vector<8x128xf32> -> vector<8x128xf32>
    %c7_151 = arith.constant 7 : index
    %c0_152 = arith.constant 0 : index
    %c0_153 = arith.constant 0 : index
    %182 = vector.load %arg11[%c7_151, %c0_152, %c0_153] : memref<16x128x256xbf16, #tpu.memory_space<vmem>>, vector<1x128x256xbf16>
    %183 = vector.shape_cast %182 : vector<1x128x256xbf16> to vector<128x256xbf16>
    %184 = arith.truncf %181 : vector<8x128xf32> to vector<8x128xbf16>
    %cst_154 = arith.constant dense<0.000000e+00> : vector<8x256xf32>
    %185 = tpu.matmul %184, %183, %cst_154 {dimension_numbers = #tpu.dot_dimension_numbers<[1], [0], [0], [1], [0, 0, 1, 1], [], []>} : vector<8x128xbf16>, vector<128x256xbf16>, vector<8x256xf32> -> vector<8x256xf32>
    %186 = arith.addf %177, %185 : vector<8x256xf32>
    %c8 = arith.constant 8 : index
    %c0_155 = arith.constant 0 : index
    %c0_156 = arith.constant 0 : index
    %187 = vector.load %arg2[%c8, %c0_155, %c0_156] : memref<16x8x32xbf16, #tpu.memory_space<vmem>>, vector<1x8x32xbf16>
    %188 = vector.shape_cast %187 : vector<1x8x32xbf16> to vector<8x32xbf16>
    %189 = arith.truncf %113 : vector<32x128xf32> to vector<32x128xbf16>
    %cst_157 = arith.constant dense<0.000000e+00> : vector<8x128xf32>
    %190 = tpu.matmul %188, %189, %cst_157 {dimension_numbers = #tpu.dot_dimension_numbers<[1], [0], [0], [1], [0, 0, 1, 1], [], []>} : vector<8x32xbf16>, vector<32x128xbf16>, vector<8x128xf32> -> vector<8x128xf32>
    %c8_158 = arith.constant 8 : index
    %c0_159 = arith.constant 0 : index
    %c0_160 = arith.constant 0 : index
    %191 = vector.load %arg11[%c8_158, %c0_159, %c0_160] : memref<16x128x256xbf16, #tpu.memory_space<vmem>>, vector<1x128x256xbf16>
    %192 = vector.shape_cast %191 : vector<1x128x256xbf16> to vector<128x256xbf16>
    %193 = arith.truncf %190 : vector<8x128xf32> to vector<8x128xbf16>
    %cst_161 = arith.constant dense<0.000000e+00> : vector<8x256xf32>
    %194 = tpu.matmul %193, %192, %cst_161 {dimension_numbers = #tpu.dot_dimension_numbers<[1], [0], [0], [1], [0, 0, 1, 1], [], []>} : vector<8x128xbf16>, vector<128x256xbf16>, vector<8x256xf32> -> vector<8x256xf32>
    %195 = arith.addf %186, %194 : vector<8x256xf32>
    %c9 = arith.constant 9 : index
    %c0_162 = arith.constant 0 : index
    %c0_163 = arith.constant 0 : index
    %196 = vector.load %arg2[%c9, %c0_162, %c0_163] : memref<16x8x32xbf16, #tpu.memory_space<vmem>>, vector<1x8x32xbf16>
    %197 = vector.shape_cast %196 : vector<1x8x32xbf16> to vector<8x32xbf16>
    %198 = arith.truncf %113 : vector<32x128xf32> to vector<32x128xbf16>
    %cst_164 = arith.constant dense<0.000000e+00> : vector<8x128xf32>
    %199 = tpu.matmul %197, %198, %cst_164 {dimension_numbers = #tpu.dot_dimension_numbers<[1], [0], [0], [1], [0, 0, 1, 1], [], []>} : vector<8x32xbf16>, vector<32x128xbf16>, vector<8x128xf32> -> vector<8x128xf32>
    %c9_165 = arith.constant 9 : index
    %c0_166 = arith.constant 0 : index
    %c0_167 = arith.constant 0 : index
    %200 = vector.load %arg11[%c9_165, %c0_166, %c0_167] : memref<16x128x256xbf16, #tpu.memory_space<vmem>>, vector<1x128x256xbf16>
    %201 = vector.shape_cast %200 : vector<1x128x256xbf16> to vector<128x256xbf16>
    %202 = arith.truncf %199 : vector<8x128xf32> to vector<8x128xbf16>
    %cst_168 = arith.constant dense<0.000000e+00> : vector<8x256xf32>
    %203 = tpu.matmul %202, %201, %cst_168 {dimension_numbers = #tpu.dot_dimension_numbers<[1], [0], [0], [1], [0, 0, 1, 1], [], []>} : vector<8x128xbf16>, vector<128x256xbf16>, vector<8x256xf32> -> vector<8x256xf32>
    %204 = arith.addf %195, %203 : vector<8x256xf32>
    %c10 = arith.constant 10 : index
    %c0_169 = arith.constant 0 : index
    %c0_170 = arith.constant 0 : index
    %205 = vector.load %arg2[%c10, %c0_169, %c0_170] : memref<16x8x32xbf16, #tpu.memory_space<vmem>>, vector<1x8x32xbf16>
    %206 = vector.shape_cast %205 : vector<1x8x32xbf16> to vector<8x32xbf16>
    %207 = arith.truncf %113 : vector<32x128xf32> to vector<32x128xbf16>
    %cst_171 = arith.constant dense<0.000000e+00> : vector<8x128xf32>
    %208 = tpu.matmul %206, %207, %cst_171 {dimension_numbers = #tpu.dot_dimension_numbers<[1], [0], [0], [1], [0, 0, 1, 1], [], []>} : vector<8x32xbf16>, vector<32x128xbf16>, vector<8x128xf32> -> vector<8x128xf32>
    %c10_172 = arith.constant 10 : index
    %c0_173 = arith.constant 0 : index
    %c0_174 = arith.constant 0 : index
    %209 = vector.load %arg11[%c10_172, %c0_173, %c0_174] : memref<16x128x256xbf16, #tpu.memory_space<vmem>>, vector<1x128x256xbf16>
    %210 = vector.shape_cast %209 : vector<1x128x256xbf16> to vector<128x256xbf16>
    %211 = arith.truncf %208 : vector<8x128xf32> to vector<8x128xbf16>
    %cst_175 = arith.constant dense<0.000000e+00> : vector<8x256xf32>
    %212 = tpu.matmul %211, %210, %cst_175 {dimension_numbers = #tpu.dot_dimension_numbers<[1], [0], [0], [1], [0, 0, 1, 1], [], []>} : vector<8x128xbf16>, vector<128x256xbf16>, vector<8x256xf32> -> vector<8x256xf32>
    %213 = arith.addf %204, %212 : vector<8x256xf32>
    %c11 = arith.constant 11 : index
    %c0_176 = arith.constant 0 : index
    %c0_177 = arith.constant 0 : index
    %214 = vector.load %arg2[%c11, %c0_176, %c0_177] : memref<16x8x32xbf16, #tpu.memory_space<vmem>>, vector<1x8x32xbf16>
    %215 = vector.shape_cast %214 : vector<1x8x32xbf16> to vector<8x32xbf16>
    %216 = arith.truncf %113 : vector<32x128xf32> to vector<32x128xbf16>
    %cst_178 = arith.constant dense<0.000000e+00> : vector<8x128xf32>
    %217 = tpu.matmul %215, %216, %cst_178 {dimension_numbers = #tpu.dot_dimension_numbers<[1], [0], [0], [1], [0, 0, 1, 1], [], []>} : vector<8x32xbf16>, vector<32x128xbf16>, vector<8x128xf32> -> vector<8x128xf32>
    %c11_179 = arith.constant 11 : index
    %c0_180 = arith.constant 0 : index
    %c0_181 = arith.constant 0 : index
    %218 = vector.load %arg11[%c11_179, %c0_180, %c0_181] : memref<16x128x256xbf16, #tpu.memory_space<vmem>>, vector<1x128x256xbf16>
    %219 = vector.shape_cast %218 : vector<1x128x256xbf16> to vector<128x256xbf16>
    %220 = arith.truncf %217 : vector<8x128xf32> to vector<8x128xbf16>
    %cst_182 = arith.constant dense<0.000000e+00> : vector<8x256xf32>
    %221 = tpu.matmul %220, %219, %cst_182 {dimension_numbers = #tpu.dot_dimension_numbers<[1], [0], [0], [1], [0, 0, 1, 1], [], []>} : vector<8x128xbf16>, vector<128x256xbf16>, vector<8x256xf32> -> vector<8x256xf32>
    %222 = arith.addf %213, %221 : vector<8x256xf32>
    %c12 = arith.constant 12 : index
    %c0_183 = arith.constant 0 : index
    %c0_184 = arith.constant 0 : index
    %223 = vector.load %arg2[%c12, %c0_183, %c0_184] : memref<16x8x32xbf16, #tpu.memory_space<vmem>>, vector<1x8x32xbf16>
    %224 = vector.shape_cast %223 : vector<1x8x32xbf16> to vector<8x32xbf16>
    %225 = arith.truncf %113 : vector<32x128xf32> to vector<32x128xbf16>
    %cst_185 = arith.constant dense<0.000000e+00> : vector<8x128xf32>
    %226 = tpu.matmul %224, %225, %cst_185 {dimension_numbers = #tpu.dot_dimension_numbers<[1], [0], [0], [1], [0, 0, 1, 1], [], []>} : vector<8x32xbf16>, vector<32x128xbf16>, vector<8x128xf32> -> vector<8x128xf32>
    %c12_186 = arith.constant 12 : index
    %c0_187 = arith.constant 0 : index
    %c0_188 = arith.constant 0 : index
    %227 = vector.load %arg11[%c12_186, %c0_187, %c0_188] : memref<16x128x256xbf16, #tpu.memory_space<vmem>>, vector<1x128x256xbf16>
    %228 = vector.shape_cast %227 : vector<1x128x256xbf16> to vector<128x256xbf16>
    %229 = arith.truncf %226 : vector<8x128xf32> to vector<8x128xbf16>
    %cst_189 = arith.constant dense<0.000000e+00> : vector<8x256xf32>
    %230 = tpu.matmul %229, %228, %cst_189 {dimension_numbers = #tpu.dot_dimension_numbers<[1], [0], [0], [1], [0, 0, 1, 1], [], []>} : vector<8x128xbf16>, vector<128x256xbf16>, vector<8x256xf32> -> vector<8x256xf32>
    %231 = arith.addf %222, %230 : vector<8x256xf32>
    %c13 = arith.constant 13 : index
    %c0_190 = arith.constant 0 : index
    %c0_191 = arith.constant 0 : index
    %232 = vector.load %arg2[%c13, %c0_190, %c0_191] : memref<16x8x32xbf16, #tpu.memory_space<vmem>>, vector<1x8x32xbf16>
    %233 = vector.shape_cast %232 : vector<1x8x32xbf16> to vector<8x32xbf16>
    %234 = arith.truncf %113 : vector<32x128xf32> to vector<32x128xbf16>
    %cst_192 = arith.constant dense<0.000000e+00> : vector<8x128xf32>
    %235 = tpu.matmul %233, %234, %cst_192 {dimension_numbers = #tpu.dot_dimension_numbers<[1], [0], [0], [1], [0, 0, 1, 1], [], []>} : vector<8x32xbf16>, vector<32x128xbf16>, vector<8x128xf32> -> vector<8x128xf32>
    %c13_193 = arith.constant 13 : index
    %c0_194 = arith.constant 0 : index
    %c0_195 = arith.constant 0 : index
    %236 = vector.load %arg11[%c13_193, %c0_194, %c0_195] : memref<16x128x256xbf16, #tpu.memory_space<vmem>>, vector<1x128x256xbf16>
    %237 = vector.shape_cast %236 : vector<1x128x256xbf16> to vector<128x256xbf16>
    %238 = arith.truncf %235 : vector<8x128xf32> to vector<8x128xbf16>
    %cst_196 = arith.constant dense<0.000000e+00> : vector<8x256xf32>
    %239 = tpu.matmul %238, %237, %cst_196 {dimension_numbers = #tpu.dot_dimension_numbers<[1], [0], [0], [1], [0, 0, 1, 1], [], []>} : vector<8x128xbf16>, vector<128x256xbf16>, vector<8x256xf32> -> vector<8x256xf32>
    %240 = arith.addf %231, %239 : vector<8x256xf32>
    %c14 = arith.constant 14 : index
    %c0_197 = arith.constant 0 : index
    %c0_198 = arith.constant 0 : index
    %241 = vector.load %arg2[%c14, %c0_197, %c0_198] : memref<16x8x32xbf16, #tpu.memory_space<vmem>>, vector<1x8x32xbf16>
    %242 = vector.shape_cast %241 : vector<1x8x32xbf16> to vector<8x32xbf16>
    %243 = arith.truncf %113 : vector<32x128xf32> to vector<32x128xbf16>
    %cst_199 = arith.constant dense<0.000000e+00> : vector<8x128xf32>
    %244 = tpu.matmul %242, %243, %cst_199 {dimension_numbers = #tpu.dot_dimension_numbers<[1], [0], [0], [1], [0, 0, 1, 1], [], []>} : vector<8x32xbf16>, vector<32x128xbf16>, vector<8x128xf32> -> vector<8x128xf32>
    %c14_200 = arith.constant 14 : index
    %c0_201 = arith.constant 0 : index
    %c0_202 = arith.constant 0 : index
    %245 = vector.load %arg11[%c14_200, %c0_201, %c0_202] : memref<16x128x256xbf16, #tpu.memory_space<vmem>>, vector<1x128x256xbf16>
    %246 = vector.shape_cast %245 : vector<1x128x256xbf16> to vector<128x256xbf16>
    %247 = arith.truncf %244 : vector<8x128xf32> to vector<8x128xbf16>
    %cst_203 = arith.constant dense<0.000000e+00> : vector<8x256xf32>
    %248 = tpu.matmul %247, %246, %cst_203 {dimension_numbers = #tpu.dot_dimension_numbers<[1], [0], [0], [1], [0, 0, 1, 1], [], []>} : vector<8x128xbf16>, vector<128x256xbf16>, vector<8x256xf32> -> vector<8x256xf32>
    %249 = arith.addf %240, %248 : vector<8x256xf32>
    %c15 = arith.constant 15 : index
    %c0_204 = arith.constant 0 : index
    %c0_205 = arith.constant 0 : index
    %250 = vector.load %arg2[%c15, %c0_204, %c0_205] : memref<16x8x32xbf16, #tpu.memory_space<vmem>>, vector<1x8x32xbf16>
    %251 = vector.shape_cast %250 : vector<1x8x32xbf16> to vector<8x32xbf16>
    %252 = arith.truncf %113 : vector<32x128xf32> to vector<32x128xbf16>
    %cst_206 = arith.constant dense<0.000000e+00> : vector<8x128xf32>
    %253 = tpu.matmul %251, %252, %cst_206 {dimension_numbers = #tpu.dot_dimension_numbers<[1], [0], [0], [1], [0, 0, 1, 1], [], []>} : vector<8x32xbf16>, vector<32x128xbf16>, vector<8x128xf32> -> vector<8x128xf32>
    %c15_207 = arith.constant 15 : index
    %c0_208 = arith.constant 0 : index
    %c0_209 = arith.constant 0 : index
    %254 = vector.load %arg11[%c15_207, %c0_208, %c0_209] : memref<16x128x256xbf16, #tpu.memory_space<vmem>>, vector<1x128x256xbf16>
    %255 = vector.shape_cast %254 : vector<1x128x256xbf16> to vector<128x256xbf16>
    %256 = arith.truncf %253 : vector<8x128xf32> to vector<8x128xbf16>
    %cst_210 = arith.constant dense<0.000000e+00> : vector<8x256xf32>
    %257 = tpu.matmul %256, %255, %cst_210 {dimension_numbers = #tpu.dot_dimension_numbers<[1], [0], [0], [1], [0, 0, 1, 1], [], []>} : vector<8x128xbf16>, vector<128x256xbf16>, vector<8x256xf32> -> vector<8x256xf32>
    %258 = arith.addf %249, %257 : vector<8x256xf32>
    %c0_211 = arith.constant 0 : index
    %c0_212 = arith.constant 0 : index
    %259 = vector.load %arg12[%c0_211, %c0_212] : memref<1x256xf32, #tpu.memory_space<vmem>>, vector<1x256xf32>
    %260 = vector.broadcast %259 : vector<1x256xf32> to vector<8x256xf32>
    %261 = arith.addf %258, %260 : vector<8x256xf32>
    %c0_213 = arith.constant 0 : index
    %c0_214 = arith.constant 0 : index
    %262 = vector.load %arg13[%c0_213, %c0_214] : memref<256x256xbf16, #tpu.memory_space<vmem>>, vector<256x256xbf16>
    %263 = arith.truncf %261 : vector<8x256xf32> to vector<8x256xbf16>
    %cst_215 = arith.constant dense<0.000000e+00> : vector<8x256xf32>
    %264 = tpu.matmul %263, %262, %cst_215 {dimension_numbers = #tpu.dot_dimension_numbers<[1], [0], [0], [1], [0, 0, 1, 1], [], []>} : vector<8x256xbf16>, vector<256x256xbf16>, vector<8x256xf32> -> vector<8x256xf32>
    %c0_216 = arith.constant 0 : index
    %c0_217 = arith.constant 0 : index
    %265 = vector.load %arg14[%c0_216, %c0_217] : memref<1x256xf32, #tpu.memory_space<vmem>>, vector<1x256xf32>
    %266 = vector.broadcast %265 : vector<1x256xf32> to vector<8x256xf32>
    %267 = arith.addf %264, %266 : vector<8x256xf32>
    %cst_218 = arith.constant 0.000000e+00 : f32
    %268 = vector.broadcast %cst_218 : f32 to vector<8x256xf32>
    %269 = arith.maximumf %267, %268 : vector<8x256xf32>
    %c0_219 = arith.constant 0 : index
    %c0_220 = arith.constant 0 : index
    %270 = vector.load %arg13[%c0_219, %c0_220] : memref<256x256xbf16, #tpu.memory_space<vmem>>, vector<256x256xbf16>
    %271 = arith.truncf %269 : vector<8x256xf32> to vector<8x256xbf16>
    %cst_221 = arith.constant dense<0.000000e+00> : vector<8x256xf32>
    %272 = tpu.matmul %271, %270, %cst_221 {dimension_numbers = #tpu.dot_dimension_numbers<[1], [0], [0], [1], [0, 0, 1, 1], [], []>} : vector<8x256xbf16>, vector<256x256xbf16>, vector<8x256xf32> -> vector<8x256xf32>
    %c0_222 = arith.constant 0 : index
    %c0_223 = arith.constant 0 : index
    %273 = vector.load %arg14[%c0_222, %c0_223] : memref<1x256xf32, #tpu.memory_space<vmem>>, vector<1x256xf32>
    %274 = vector.broadcast %273 : vector<1x256xf32> to vector<8x256xf32>
    %275 = arith.addf %272, %274 : vector<8x256xf32>
    %cst_224 = arith.constant 0.000000e+00 : f32
    %276 = vector.broadcast %cst_224 : f32 to vector<8x256xf32>
    %277 = arith.maximumf %275, %276 : vector<8x256xf32>
    %c0_225 = arith.constant 0 : index
    %c0_226 = arith.constant 0 : index
    %278 = vector.load %arg15[%c0_225, %c0_226] : memref<256x512xbf16, #tpu.memory_space<vmem>>, vector<256x512xbf16>
    %279 = arith.truncf %277 : vector<8x256xf32> to vector<8x256xbf16>
    %cst_227 = arith.constant dense<0.000000e+00> : vector<8x512xf32>
    %280 = tpu.matmul %279, %278, %cst_227 {dimension_numbers = #tpu.dot_dimension_numbers<[1], [0], [0], [1], [0, 0, 1, 1], [], []>} : vector<8x256xbf16>, vector<256x512xbf16>, vector<8x512xf32> -> vector<8x512xf32>
    %c0_228 = arith.constant 0 : index
    %c0_229 = arith.constant 0 : index
    %281 = vector.load %arg16[%c0_228, %c0_229] : memref<1x512xf32, #tpu.memory_space<vmem>>, vector<1x512xf32>
    %282 = vector.broadcast %281 : vector<1x512xf32> to vector<8x512xf32>
    %283 = arith.addf %280, %282 : vector<8x512xf32>
    %c0_230 = arith.constant 0 : index
    %c0_231 = arith.constant 0 : index
    %284 = vector.load %arg17[%c0_230, %c0_231] : memref<512x512xbf16, #tpu.memory_space<vmem>>, vector<512x512xbf16>
    %285 = arith.truncf %283 : vector<8x512xf32> to vector<8x512xbf16>
    %cst_232 = arith.constant dense<0.000000e+00> : vector<8x512xf32>
    %286 = tpu.matmul %285, %284, %cst_232 {dimension_numbers = #tpu.dot_dimension_numbers<[1], [0], [0], [1], [0, 0, 1, 1], [], []>} : vector<8x512xbf16>, vector<512x512xbf16>, vector<8x512xf32> -> vector<8x512xf32>
    %c0_233 = arith.constant 0 : index
    %c0_234 = arith.constant 0 : index
    %287 = vector.load %arg18[%c0_233, %c0_234] : memref<1x512xf32, #tpu.memory_space<vmem>>, vector<1x512xf32>
    %288 = vector.broadcast %287 : vector<1x512xf32> to vector<8x512xf32>
    %289 = arith.addf %286, %288 : vector<8x512xf32>
    %cst_235 = arith.constant 0.000000e+00 : f32
    %290 = vector.broadcast %cst_235 : f32 to vector<8x512xf32>
    %291 = arith.maximumf %289, %290 : vector<8x512xf32>
    %c0_236 = arith.constant 0 : index
    %c0_237 = arith.constant 0 : index
    %292 = vector.load %arg17[%c0_236, %c0_237] : memref<512x512xbf16, #tpu.memory_space<vmem>>, vector<512x512xbf16>
    %293 = arith.truncf %291 : vector<8x512xf32> to vector<8x512xbf16>
    %cst_238 = arith.constant dense<0.000000e+00> : vector<8x512xf32>
    %294 = tpu.matmul %293, %292, %cst_238 {dimension_numbers = #tpu.dot_dimension_numbers<[1], [0], [0], [1], [0, 0, 1, 1], [], []>} : vector<8x512xbf16>, vector<512x512xbf16>, vector<8x512xf32> -> vector<8x512xf32>
    %c0_239 = arith.constant 0 : index
    %c0_240 = arith.constant 0 : index
    %295 = vector.load %arg18[%c0_239, %c0_240] : memref<1x512xf32, #tpu.memory_space<vmem>>, vector<1x512xf32>
    %296 = vector.broadcast %295 : vector<1x512xf32> to vector<8x512xf32>
    %297 = arith.addf %294, %296 : vector<8x512xf32>
    %cst_241 = arith.constant 0.000000e+00 : f32
    %298 = vector.broadcast %cst_241 : f32 to vector<8x512xf32>
    %299 = arith.maximumf %297, %298 : vector<8x512xf32>
    %c0_242 = arith.constant 0 : index
    %c0_243 = arith.constant 0 : index
    %300 = vector.load %arg17[%c0_242, %c0_243] : memref<512x512xbf16, #tpu.memory_space<vmem>>, vector<512x512xbf16>
    %301 = arith.truncf %299 : vector<8x512xf32> to vector<8x512xbf16>
    %cst_244 = arith.constant dense<0.000000e+00> : vector<8x512xf32>
    %302 = tpu.matmul %301, %300, %cst_244 {dimension_numbers = #tpu.dot_dimension_numbers<[1], [0], [0], [1], [0, 0, 1, 1], [], []>} : vector<8x512xbf16>, vector<512x512xbf16>, vector<8x512xf32> -> vector<8x512xf32>
    %c0_245 = arith.constant 0 : index
    %c0_246 = arith.constant 0 : index
    %303 = vector.load %arg18[%c0_245, %c0_246] : memref<1x512xf32, #tpu.memory_space<vmem>>, vector<1x512xf32>
    %304 = vector.broadcast %303 : vector<1x512xf32> to vector<8x512xf32>
    %305 = arith.addf %302, %304 : vector<8x512xf32>
    %cst_247 = arith.constant 0.000000e+00 : f32
    %306 = vector.broadcast %cst_247 : f32 to vector<8x512xf32>
    %307 = arith.maximumf %305, %306 : vector<8x512xf32>
    %c0_248 = arith.constant 0 : index
    %c0_249 = arith.constant 0 : index
    %308 = vector.load %arg17[%c0_248, %c0_249] : memref<512x512xbf16, #tpu.memory_space<vmem>>, vector<512x512xbf16>
    %309 = arith.truncf %307 : vector<8x512xf32> to vector<8x512xbf16>
    %cst_250 = arith.constant dense<0.000000e+00> : vector<8x512xf32>
    %310 = tpu.matmul %309, %308, %cst_250 {dimension_numbers = #tpu.dot_dimension_numbers<[1], [0], [0], [1], [0, 0, 1, 1], [], []>} : vector<8x512xbf16>, vector<512x512xbf16>, vector<8x512xf32> -> vector<8x512xf32>
    %c0_251 = arith.constant 0 : index
    %c0_252 = arith.constant 0 : index
    %311 = vector.load %arg18[%c0_251, %c0_252] : memref<1x512xf32, #tpu.memory_space<vmem>>, vector<1x512xf32>
    %312 = vector.broadcast %311 : vector<1x512xf32> to vector<8x512xf32>
    %313 = arith.addf %310, %312 : vector<8x512xf32>
    %cst_253 = arith.constant 0.000000e+00 : f32
    %314 = vector.broadcast %cst_253 : f32 to vector<8x512xf32>
    %315 = arith.maximumf %313, %314 : vector<8x512xf32>
    %c0_254 = arith.constant 0 : index
    %c0_255 = arith.constant 0 : index
    %316 = vector.load %arg19[%c0_254, %c0_255] : memref<512x128xbf16, #tpu.memory_space<vmem>>, vector<512x128xbf16>
    %317 = arith.truncf %315 : vector<8x512xf32> to vector<8x512xbf16>
    %cst_256 = arith.constant dense<0.000000e+00> : vector<8x128xf32>
    %318 = tpu.matmul %317, %316, %cst_256 {dimension_numbers = #tpu.dot_dimension_numbers<[1], [0], [0], [1], [0, 0, 1, 1], [], []>} : vector<8x512xbf16>, vector<512x128xbf16>, vector<8x128xf32> -> vector<8x128xf32>
    %c0_257 = arith.constant 0 : index
    %c0_258 = arith.constant 0 : index
    %319 = vector.load %arg20[%c0_257, %c0_258] : memref<1x128xf32, #tpu.memory_space<vmem>>, vector<1x128xf32>
    %320 = vector.broadcast %319 : vector<1x128xf32> to vector<8x128xf32>
    %321 = arith.addf %318, %320 : vector<8x128xf32>
    %322 = vector.extract_strided_slice %321 {offsets = [0, 0], sizes = [2, 3], strides = [1, 1]} : vector<8x128xf32> to vector<2x3xf32>
    %c0_259 = arith.constant 0 : index
    %c0_260 = arith.constant 0 : index
    %323 = vector.load %arg21[%c0_259, %c0_260] : memref<2x3xf32, #tpu.memory_space<vmem>>, vector<2x3xf32>
    tpu.vector_store %arg21[%c0_259, %c0_260], %322 {strides = array<i32>} : memref<2x3xf32, #tpu.memory_space<vmem>>, vector<2x3xf32>,
    return
  }
}

</mosaic_0001>

<bundles_post_ra>
// kernel: cnn_forward.1
= control target key start
LH: loop header
LB: loop body
LE: loop exit
PB: predicated region body
PF: predicated region fallthrough
CT: control target
= control target key end

     0   :  { %s11618_s0 = inlined_call_operand.vmem [shape: f32[32,16], index: 0, kind: input, shape index: {}]   ;;  %s11619_s1 = inlined_call_operand.hbm [shape: bf16[3,32,32], index: 1, kind: input, shape index: {}]   ;;  %s11620_s2 = inlined_call_operand.vmem [shape: bf16[16,8,32], index: 2, kind: input, shape index: {}]   ;;  %s11621_s3 = inlined_call_operand.hbm [shape: bf16[16,128], index: 3, kind: input, shape index: {}]   ;;  %s11622_s4 = inlined_call_operand.hbm [shape: f32[1,128], index: 4, kind: input, shape index: {}]   ;;  %s11623_s5 = inlined_call_operand.hbm [shape: bf16[128,128], index: 5, kind: input, shape index: {}]   ;;  %s11624_s6 = inlined_call_operand.hbm [shape: f32[1,128], index: 6, kind: input, shape index: {}]   ;;  %s11625_s7 = inlined_call_operand.hbm [shape: bf16[3,128,128], index: 7, kind: input, shape index: {}]   ;;  %s11626_s8 = inlined_call_operand.hbm [shape: f32[1,128], index: 8, kind: input, shape index: {}]   ;;  %s11627_s9 = inlined_call_operand.hbm [shape: bf16[3,128,128], index: 9, kind: input, shape index: {}]   ;;  %s11628_s10 = inlined_call_operand.hbm [shape: f32[1,128], index: 10, kind: input, shape index: {}]   ;;  %s11629_s11 = inlined_call_operand.hbm [shape: bf16[16,128,256], index: 11, kind: input, shape index: {}]   ;;  %s11630_s12 = inlined_call_operand.hbm [shape: f32[1,256], index: 12, kind: input, shape index: {}]   ;;  %s11631_s13 = inlined_call_operand.hbm [shape: bf16[256,256], index: 13, kind: input, shape index: {}]   ;;  %s11632_s14 = inlined_call_operand.hbm [shape: f32[1,256], index: 14, kind: input, shape index: {}]   ;;  %s11633_s15 = inlined_call_operand.hbm [shape: bf16[256,512], index: 15, kind: input, shape index: {}]   ;;  %s11634_s16 = inlined_call_operand.vmem [shape: f32[1,512], index: 16, kind: input, shape index: {}]   ;;  %s11635_s17 = inlined_call_operand.hbm [shape: bf16[512,512], index: 17, kind: input, shape index: {}]   ;;  %s11636_s18 = inlined_call_operand.vmem [shape: f32[1,512], index: 18, kind: input, shape index: {}]   ;;  %s11637_s19 = inlined_call_operand.hbm [shape: bf16[512,128], index: 19, kind: input, shape index: {}]   ;;  %s11638_s20 = inlined_call_operand.hbm [shape: f32[1,128], index: 20, kind: input, shape index: {}]   ;;  %s11639_s21 = inlined_call_operand.hbm [shape: f32[2,3], index: 21, kind: output, shape index: {}]  }
   0x1   :  { %11811 = sst [smem:[#allocation135_spill]] %s11618_s0 }
   0x2   :  { %11812 = sst [smem:[#allocation136_spill]] %s11619_s1 }
   0x3   :  { %11813 = sst [smem:[#allocation137_spill]] %s11620_s2 }
   0x4   :  { %11814 = sst [smem:[#allocation138_spill]] %s11621_s3 }
   0x5   :  { %11815 = sst [smem:[#allocation139_spill]] %s11622_s4 }
   0x6   :  { %11816 = sst [smem:[#allocation140_spill]] %s11623_s5 }
   0x7   :  { %26 = vsyncpa [#allocation3], 0 }
   0x8   :  { %27 = vsyncpa [#allocation6], 0 }
   0x9   :  { %28 = vsyncpa [#allocation9], 0 }
   0xa   :  { %29 = vsyncpa [#allocation12], 0 }
   0xb   :  { %30 = vsyncpa [#allocation15], 0 }
   0xc   :  { %31 = vsyncpa [#allocation18], 0 }
   0xd   :  { %32 = vsyncpa [#allocation21], 0 }
   0xe   :  { %33 = vsyncpa [#allocation24], 0 }
   0xf   :  { %34 = vsyncpa [#allocation27], 0 }
  0x10   :  { %35 = vsyncpa [#allocation4], 0  ;;  %s10200_s2 = smov [#allocation5]   ;;  %s10201_s26 = smov [#allocation8]  }
  0x11   :  { %s57_s25 = sshll.u32 %s10200_s2, 4  ;;  %s79_s27 = sshll.u32 %s10201_s26, 4  ;;  %s58_s25 = int_to_ptr.vmem [resolvable:$true] %s57_s25  ;;  %s80_s27 = int_to_ptr.vmem [resolvable:$true] %s79_s27 }
  0x12   :  { %s9828_s3 = scalar_lea.vmem %s58_s25, 128  ;;  %p9833_p1 = scmp.lt.s32.totalorder %s58_s25, %s58_s25 }
  0x13   :  { %p9829_p0 = scmp.ne.s32.totalorder %s58_s25, %s9828_s3  ;;  %p9834_p2 = scmp.lt.s32.totalorder %s9828_s3, %s9828_s3 }
  0x15   :  { %p9835_p3 = por %p9834_p2, %p9833_p1 }
  0x17   :  { %p9836_p4 = pnand %p9835_p3, %p9829_p0 }
  0x19   :  { %9839 = shalt.err (!%p9836_p4)
}
  0x1a   :  { %s10202_s28 = smov 64   ;;  %s10203_s29 = smov 4  }
  0x1b   :  { %s11817_s30 = sld [smem:[#allocation138_spill]]  ;;  %s9848_s5 = scalar_lea.vmem %s80_s27, 1024 }
  0x1c   :  { %p9849_p5 = scmp.ne.s32.totalorder %s80_s27, %s9848_s5  ;;  %p9853_p6 = scmp.lt.s32.totalorder %s80_s27, %s80_s27 }
  0x1d   :  { %p9854_p7 = scmp.lt.s32.totalorder %s9848_s5, %s9848_s5 }
  0x1f   :  { %p9855_p8 = por %p9854_p7, %p9853_p6 }
  0x21   :  { %63 = dma.hbm_to_vmem [thread:$0]  %s11817_s30, 128, %s58_s25, [#allocation6], %s10202_s28, %s10202_s28, %s10203_s29  }
  0x22   :  { %p9856_p9 = pnand %p9855_p8, %p9849_p5 }
  0x24   :  { %9859 = shalt.err (!%p9856_p9)
}
  0x25   :  { %s11818_s1 = sld [smem:[#allocation140_spill]]  ;;  %s10204_s24 = smov [#allocation11]  }
  0x26   :  { %s101_s2 = sshll.u32 %s10204_s24, 4  ;;  %s10205_s26 = smov [#allocation14]   ;;  %s102_s2 = int_to_ptr.vmem [resolvable:$true] %s101_s2 }
  0x27   :  { %s123_s3 = sshll.u32 %s10205_s26, 4  ;;  %s9868_s25 = scalar_lea.vmem %s102_s2, 3072  ;;  %s124_s3 = int_to_ptr.vmem [resolvable:$true] %s123_s3 }
  0x28   :  { %p9869_p10 = scmp.ne.s32.totalorder %s102_s2, %s9868_s25  ;;  %p9873_p11 = scmp.lt.s32.totalorder %s102_s2, %s102_s2 }
  0x29   :  { %p9874_p12 = scmp.lt.s32.totalorder %s9868_s25, %s9868_s25 }
  0x2b   :  { %85 = dma.hbm_to_vmem [thread:$0]  %s11818_s1, 1024, %s80_s27, [#allocation9], %s10202_s28, %s10202_s28, %s10203_s29  }
  0x2c   :  { %p9875_p13 = por %p9874_p12, %p9873_p11 }
  0x2e   :  { %p9876_p0 = pnand %p9875_p13, %p9869_p10 }
  0x30   :  { %9879 = shalt.err (!%p9876_p0)
}
  0x31   :  { %107 = dma.hbm_to_vmem [thread:$0]  %s11625_s7, 3072, %s102_s2, [#allocation12], %s10202_s28, %s10202_s28, %s10203_s29  }
  0x32   :  { %s9888_s27 = scalar_lea.vmem %s124_s3, 3072  ;;  %p9893_p2 = scmp.lt.s32.totalorder %s124_s3, %s124_s3 }
  0x33   :  { %p9889_p1 = scmp.ne.s32.totalorder %s124_s3, %s9888_s27  ;;  %p9894_p3 = scmp.lt.s32.totalorder %s9888_s27, %s9888_s27 }
  0x35   :  { %p9895_p4 = por %p9894_p3, %p9893_p2 }
  0x37   :  { %p9896_p5 = pnand %p9895_p4, %p9889_p1 }
  0x39   :  { %9899 = shalt.err (!%p9896_p5)
}
  0x3a   :  { %129 = dma.hbm_to_vmem [thread:$0]  %s11627_s9, 3072, %s124_s3, [#allocation15], %s10202_s28, %s10202_s28, %s10203_s29  }
  0x3b   :  { %s10206_s22 = smov [#allocation17]  }
  0x3c   :  { %s145_s23 = sshll.u32 %s10206_s22, 4  ;;  %s146_s23 = int_to_ptr.vmem [resolvable:$true] %s145_s23 }
  0x3d   :  { %s9908_s1 = scalar_lea.vmem %s146_s23, 32768  ;;  %p9913_p7 = scmp.lt.s32.totalorder %s146_s23, %s146_s23 }
  0x3e   :  { %p9909_p6 = scmp.ne.s32.totalorder %s146_s23, %s9908_s1  ;;  %p9914_p8 = scmp.lt.s32.totalorder %s9908_s1, %s9908_s1 }
  0x40   :  { %p9915_p9 = por %p9914_p8, %p9913_p7 }
  0x42   :  { %p9916_p10 = pnand %p9915_p9, %p9909_p6 }
  0x44   :  { %9919 = shalt.err (!%p9916_p10)
}
  0x45   :  { %s10207_s7 = smov 128   ;;  %s10208_s24 = smov 8  }
  0x46   :  { %151 = dma.hbm_to_vmem [thread:$0]  %s11629_s11, 32768, %s146_s23, [#allocation18], %s10207_s7, %s10207_s7, %s10208_s24  }
  0x47   :  { %s10209_s25 = smov [#allocation20]   ;;  %s10210_s9 = smov [#allocation23]  }
  0x48   :  { %s167_s0 = sshll.u32 %s10209_s25, 4  ;;  %s189_s3 = sshll.u32 %s10210_s9, 4  ;;  %s168_s0 = int_to_ptr.vmem [resolvable:$true] %s167_s0  ;;  %s190_s3 = int_to_ptr.vmem [resolvable:$true] %s189_s3 }
  0x49   :  { %s9928_s4 = scalar_lea.vmem %s168_s0, 4096  ;;  %p9933_p12 = scmp.lt.s32.totalorder %s168_s0, %s168_s0 }
  0x4a   :  { %p9929_p11 = scmp.ne.s32.totalorder %s168_s0, %s9928_s4  ;;  %p9934_p13 = scmp.lt.s32.totalorder %s9928_s4, %s9928_s4 }
  0x4c   :  { %p9935_p0 = por %p9934_p13, %p9933_p12 }
  0x4e   :  { %p9936_p1 = pnand %p9935_p0, %p9929_p11 }
  0x50   :  { %9939 = shalt.err (!%p9936_p1)
}
  0x51   :  { %173 = dma.hbm_to_vmem [thread:$0]  %s11631_s13, 4096, %s168_s0, [#allocation21], %s10207_s7, %s10207_s7, %s10208_s24  }
  0x52   :  { %s9948_s5 = scalar_lea.vmem %s190_s3, 8192  ;;  %p9953_p3 = scmp.lt.s32.totalorder %s190_s3, %s190_s3 }
  0x53   :  { %p9949_p2 = scmp.ne.s32.totalorder %s190_s3, %s9948_s5  ;;  %p9954_p4 = scmp.lt.s32.totalorder %s9948_s5, %s9948_s5 }
  0x55   :  { %p9955_p5 = por %p9954_p4, %p9953_p3 }
  0x57   :  { %p9956_p6 = pnand %p9955_p5, %p9949_p2 }
  0x59   :  { %9959 = shalt.err (!%p9956_p6)
}
  0x5a   :  { %s10211_s11 = smov 256   ;;  %s10212_s22 = smov 16  }
  0x5b   :  { %195 = dma.hbm_to_vmem [thread:$0]  %s11633_s15, 8192, %s190_s3, [#allocation24], %s10211_s11, %s10211_s11, %s10212_s22  }
  0x5c   :  { %s10213_s2 = smov [#allocation26]   ;;  %s10214_s13 = smov [#allocation2]  }
  0x5d   :  { %s217_s26 = sshll.u32 %s10213_s2, 4  ;;  %s43_s7 = sshll.u32 %s10214_s13, 4  ;;  %s218_s26 = int_to_ptr.vmem [resolvable:$true] %s217_s26  ;;  %s44_s7 = int_to_ptr.vmem [resolvable:$true] %s43_s7 }
  0x5e   :  { %s9968_s24 = scalar_lea.vmem %s218_s26, 4096  ;;  %p9973_p8 = scmp.lt.s32.totalorder %s218_s26, %s218_s26 }
  0x5f   :  { %p9969_p7 = scmp.ne.s32.totalorder %s218_s26, %s9968_s24  ;;  %p9974_p9 = scmp.lt.s32.totalorder %s9968_s24, %s9968_s24 }
  0x61   :  { %p9975_p10 = por %p9974_p9, %p9973_p8 }
  0x63   :  { %p9976_p11 = pnand %p9975_p10, %p9969_p7 }
  0x65   :  { %9979 = shalt.err (!%p9976_p11)
}
  0x66   :  { %223 = dma.hbm_to_vmem [thread:$0]  %s11637_s19, 4096, %s218_s26, [#allocation27], %s10202_s28, %s10202_s28, %s10203_s29  }
  0x67   :  { %s9988_s15 = scalar_lea.vmem %s44_s7, 768  ;;  %p9993_p13 = scmp.lt.s32.totalorder %s44_s7, %s44_s7 }
  0x68   :  { %p9989_p12 = scmp.ne.s32.totalorder %s44_s7, %s9988_s15  ;;  %p9994_p0 = scmp.lt.s32.totalorder %s9988_s15, %s9988_s15 }
  0x6a   :  { %p9995_p1 = por %p9994_p0, %p9993_p13 }
  0x6c   :  { %p9996_p2 = pnand %p9995_p1, %p9989_p12 }
  0x6e   :  { %9999 = shalt.err (!%p9996_p2)
}
  0x6f   :  { %s11819_s4 = sld [smem:[#allocation136_spill]]  ;;  %s10215_s27 = smov [#allocation7]  }
  0x70   :  { %s70_s30 = sshll.u32 %s10215_s27, 4  ;;  %s10216_s5 = smov [#allocation10]   ;;  %s71_s30 = int_to_ptr.vmem [resolvable:$true] %s70_s30 }
  0x71   :  { %s92_s19 = sshll.u32 %s10216_s5, 4  ;;  %s10008_s23 = scalar_lea.vmem %s71_s30, 16  ;;  %s93_s19 = int_to_ptr.vmem [resolvable:$true] %s92_s19 }
  0x72   :  { %p10009_p3 = scmp.ne.s32.totalorder %s71_s30, %s10008_s23  ;;  %s10012_s1 = scalar_lea.vmem %s71_s30, 32 }
  0x73   :  { %p10013_p4 = scmp.lt.s32.totalorder %s71_s30, %s71_s30  ;;  %p10014_p5 = scmp.lt.s32.totalorder %s10012_s1, %s10008_s23 }
  0x75   :  { %49 = dma.hbm_to_vmem [thread:$0]  %s11819_s4, 768, %s44_s7, [#allocation3], %s10202_s28, %s10202_s28, %s10203_s29  }
  0x76   :  { %p10015_p6 = por %p10014_p5, %p10013_p4 }
  0x78   :  { %p10016_p7 = pnand %p10015_p6, %p10009_p3 }
  0x7a   :  { %10019 = shalt.err (!%p10016_p7)
}
  0x7b   :  { %s11820_s13 = sld [smem:[#allocation139_spill]]  ;;  %s10028_s24 = scalar_lea.vmem %s93_s19, 16 }
  0x7c   :  { %p10029_p8 = scmp.ne.s32.totalorder %s93_s19, %s10028_s24  ;;  %s10032_s28 = scalar_lea.vmem %s93_s19, 32 }
  0x7d   :  { %p10033_p9 = scmp.lt.s32.totalorder %s93_s19, %s93_s19  ;;  %p10034_p10 = scmp.lt.s32.totalorder %s10032_s28, %s10028_s24 }
  0x7f   :  { %p10035_p11 = por %p10034_p10, %p10033_p9 }
  0x81   :  { %73 = dma.hbm_to_vmem [thread:$0]  %s11820_s13, 16, %s71_s30, [#allocation6]  }
  0x82   :  { %p10036_p12 = pnand %p10035_p11, %p10029_p8 }
  0x84   :  { %10039 = shalt.err (!%p10036_p12)
}
  0x85   :  { %95 = dma.hbm_to_vmem [thread:$0]  %s11624_s6, 16, %s93_s19, [#allocation9]  }
  0x86   :  { %s10217_s25 = smov [#allocation13]   ;;  %s10218_s15 = smov [#allocation16]  }
  0x87   :  { %s114_s0 = sshll.u32 %s10217_s25, 4  ;;  %s136_s9 = sshll.u32 %s10218_s15, 4  ;;  %s115_s0 = int_to_ptr.vmem [resolvable:$true] %s114_s0  ;;  %s137_s9 = int_to_ptr.vmem [resolvable:$true] %s136_s9 }
  0x88   :  { %s10048_s3 = scalar_lea.vmem %s115_s0, 16  ;;  %s10052_s4 = scalar_lea.vmem %s115_s0, 32 }
  0x89   :  { %p10049_p13 = scmp.ne.s32.totalorder %s115_s0, %s10048_s3  ;;  %p10053_p0 = scmp.lt.s32.totalorder %s115_s0, %s115_s0 }
  0x8a   :  { %p10054_p1 = scmp.lt.s32.totalorder %s10052_s4, %s10048_s3 }
  0x8c   :  { %p10055_p2 = por %p10054_p1, %p10053_p0 }
  0x8e   :  { %p10056_p3 = pnand %p10055_p2, %p10049_p13 }
  0x90   :  { %10059 = shalt.err (!%p10056_p3)
}
  0x91   :  { %117 = dma.hbm_to_vmem [thread:$0]  %s11626_s8, 16, %s115_s0, [#allocation12]  }
  0x92   :  { %s10068_s5 = scalar_lea.vmem %s137_s9, 16  ;;  %s10072_s6 = scalar_lea.vmem %s137_s9, 32 }
  0x93   :  { %p10069_p4 = scmp.ne.s32.totalorder %s137_s9, %s10068_s5  ;;  %p10073_p5 = scmp.lt.s32.totalorder %s137_s9, %s137_s9 }
  0x94   :  { %p10074_p6 = scmp.lt.s32.totalorder %s10072_s6, %s10068_s5 }
  0x96   :  { %p10075_p7 = por %p10074_p6, %p10073_p5 }
  0x98   :  { %p10076_p8 = pnand %p10075_p7, %p10069_p4 }
  0x9a   :  { %10079 = shalt.err (!%p10076_p8)
}
  0x9b   :  { %139 = dma.hbm_to_vmem [thread:$0]  %s11628_s10, 16, %s137_s9, [#allocation15]  }
  0x9c   :  { %s10219_s1 = smov [#allocation19]   ;;  %s10220_s26 = smov [#allocation22]  }
  0x9d   :  { %s158_s2 = sshll.u32 %s10219_s1, 4  ;;  %s180_s13 = sshll.u32 %s10220_s26, 4  ;;  %s159_s2 = int_to_ptr.vmem [resolvable:$true] %s158_s2  ;;  %s181_s13 = int_to_ptr.vmem [resolvable:$true] %s180_s13 }
  0x9e   :  { %s10088_s24 = scalar_lea.vmem %s159_s2, 32  ;;  %p10093_p10 = scmp.lt.s32.totalorder %s159_s2, %s159_s2 }
  0x9f   :  { %p10089_p9 = scmp.ne.s32.totalorder %s159_s2, %s10088_s24  ;;  %p10094_p11 = scmp.lt.s32.totalorder %s10088_s24, %s10088_s24 }
  0xa1   :  { %p10095_p12 = por %p10094_p11, %p10093_p10 }
  0xa3   :  { %p10096_p13 = pnand %p10095_p12, %p10089_p9 }
  0xa5   :  { %10099 = shalt.err (!%p10096_p13)
}
  0xa6   :  { %161 = dma.hbm_to_vmem [thread:$0]  %s11630_s12, 32, %s159_s2, [#allocation18]  }
  0xa7   :  { %s10108_s29 = scalar_lea.vmem %s181_s13, 32  ;;  %p10113_p1 = scmp.lt.s32.totalorder %s181_s13, %s181_s13 }
  0xa8   :  { %p10109_p0 = scmp.ne.s32.totalorder %s181_s13, %s10108_s29  ;;  %p10114_p2 = scmp.lt.s32.totalorder %s10108_s29, %s10108_s29 }
  0xaa   :  { %p10115_p3 = por %p10114_p2, %p10113_p1 }
  0xac   :  { %p10116_p4 = pnand %p10115_p3, %p10109_p0 }
  0xae   :  { %10119 = shalt.err (!%p10116_p4)
}
  0xaf   :  { %183 = dma.hbm_to_vmem [thread:$0]  %s11632_s14, 32, %s181_s13, [#allocation21]  }
  0xb0   :  { %s10221_s25 = smov [#allocation25]   ;;  %s10222_s15 = smov [#allocation28]  }
  0xb1   :  { %s203_s0 = sshll.u32 %s10221_s25, 4  ;;  %s230_s9 = sshll.u32 %s10222_s15, 4  ;;  %s204_s0 = int_to_ptr.vmem [resolvable:$true] %s203_s0  ;;  %s231_s9 = int_to_ptr.vmem [resolvable:$true] %s230_s9 }
  0xb2   :  { %s10128_s3 = scalar_lea.vmem %s204_s0, 16384  ;;  %p10133_p6 = scmp.lt.s32.totalorder %s204_s0, %s204_s0 }
  0xb3   :  { %p10129_p5 = scmp.ne.s32.totalorder %s204_s0, %s10128_s3  ;;  %p10134_p7 = scmp.lt.s32.totalorder %s10128_s3, %s10128_s3 }
  0xb5   :  { %p10135_p8 = por %p10134_p7, %p10133_p6 }
  0xb7   :  { %p10136_p9 = pnand %p10135_p8, %p10129_p5 }
  0xb9   :  { %10139 = shalt.err (!%p10136_p9)
}
  0xba   :  { %209 = dma.hbm_to_vmem [thread:$0]  %s11635_s17, 16384, %s204_s0, [#allocation24], %s10211_s11, %s10211_s11, %s10212_s22  }
  0xbb   :  { %s10148_s14 = scalar_lea.vmem %s231_s9, 16  ;;  %s10152_s27 = scalar_lea.vmem %s231_s9, 32 }
  0xbc   :  { %p10149_p10 = scmp.ne.s32.totalorder %s231_s9, %s10148_s14  ;;  %p10153_p11 = scmp.lt.s32.totalorder %s231_s9, %s231_s9 }
  0xbd   :  { %p10154_p12 = scmp.lt.s32.totalorder %s10152_s27, %s10148_s14 }
  0xbf   :  { %p10155_p13 = por %p10154_p12, %p10153_p11 }
  0xc1   :  { %p10156_p0 = pnand %p10155_p13, %p10149_p10 }
  0xc3   :  { %10159 = shalt.err (!%p10156_p0)
}
  0xc4   :  { %233 = dma.hbm_to_vmem [thread:$0]  %s11638_s20, 16, %s231_s9, [#allocation27]  }
  0xc5   :  { %10180 = dma.done.wait [#allocation3], 768  }
  0xc6   :  { %10181 = vsyncadd [#allocation3], 4294966528 }
  0xc7   :  { %10182 = dma.done.wait [#allocation6], 144  }
  0xc8   :  { %10183 = vsyncadd [#allocation6], 4294967152 }
  0xc9   :  { %10184 = dma.done.wait [#allocation9], 1040  }
  0xca   :  { %10185 = vsyncadd [#allocation9], 4294966256 }
  0xcb   :  { %10186 = dma.done.wait [#allocation12], 3088  }
  0xcc   :  { %10187 = vsyncadd [#allocation12], 4294964208 }
  0xcd   :  { %10188 = dma.done.wait [#allocation15], 3088  }
  0xce   :  { %10189 = vsyncadd [#allocation15], 4294964208 }
  0xcf   :  { %10190 = dma.done.wait [#allocation18], 32800  }
  0xd0   :  { %10191 = vsyncadd [#allocation18], 4294934496 }
  0xd1   :  { %10192 = dma.done.wait [#allocation21], 4128  }
  0xd2   :  { %10193 = vsyncadd [#allocation21], 4294963168 }
  0xd3   :  { %10194 = dma.done.wait [#allocation24], 24576  }
  0xd4   :  { %10195 = vsyncadd [#allocation24], 4294942720 }
  0xd5   :  { %10196 = dma.done.wait [#allocation27], 4112  }
  0xd6   :  { %10197 = vsyncadd [#allocation27], 4294963184  ;;  %v8892_v0 = vld [vmem:[#allocation5] sm:$0xff]   ;;  %s11821_s11 = sld [smem:[#allocation135_spill]]  ;;  %vm307_vm0 = vcmask 130048   ;;  %v8895_v9 = vld [vmem:[#allocation8 + $0x28] sm:$0xff]  }
  0xd7   :  { %8439 = vmatprep.subr.bf16.mxu1 %v8892_v0  ;;  %v8893_v7 = vld [vmem:[#allocation8 + $0x38] sm:$0xff]   ;;  %v8894_v8 = vld [vmem:[#allocation8 + $0x30] sm:$0xff]   ;;  %v8896_v10 = vld [vmem:[#allocation8 + $0x20] sm:$0xff]   ;;  %vm560_vm1 = vcmask 261120   ;;  %vm10224_vm2 = vmmov 0   ;;  %s11822_s24 = sld [smem:[#allocation137_spill]] }
  0xd8   :  { %8440 = vmatpush3.bf16.msra.mxu1 %v8892_v0  ;;  %8465 = vmatprep.subr.bf16.mxu0 %v8893_v7  ;;  %v8897_v11 = vld [vmem:[#allocation8 + $0x18] sm:$0xff]   ;;  %v8898_v12 = vld [vmem:[#allocation8 + $0x10] sm:$0xff]   ;;  %v8899_v13 = vld [vmem:[#allocation8 + $0x8] sm:$0xff]   ;;  %vm7542_vm3 = vcmask 17408  }
  0xd9   :  { %8445 = vmatprep.subr.bf16.mxu1 %v8893_v7  ;;  %8466 = vmatpush3.bf16.msra.mxu0 %v8893_v7  ;;  %v8900_v14 = vld [vmem:[#allocation8] sm:$0xff]   ;;  %v7567_v17 = vld [vmem:[#allocation7] ss:$0 sm:$0xff]  ;;  %v10426_v42 = vld [vmem:[#allocation2 + $0x10] sm:$0xff]  }
  0xda   :  { %8467 = vmatprep.subr.bf16.mxu0 %v8894_v8  ;;  %v7571_v28 = vld [vmem:[#allocation10] ss:$0 sm:$0xff]  ;;  %v10424_v41 = vld [vmem:[#allocation2] sm:$0xff]   ;;  %v10442_v59 = vld [vmem:[#allocation2 + $0x8] sm:$0xff]  }
  0xdb   :  { %v8905_v57 = vld [vmem:[#allocation11 + $0x78] sm:$0xff]   ;;  %v8906_v61 = vld [vmem:[#allocation11 + $0x70] sm:$0xff]   ;;  %v8907_v63 = vld [vmem:[#allocation11 + $0x68] sm:$0xff]  }
  0xdc   :  { %v286_v1 = vld [vmem:[%s11821_s11] sm:$0xff]  ;;  %v287_v2 = vld [vmem:[%s11821_s11 + $0x8] sm:$0xff]  ;;  %v288_v3 = vld [vmem:[%s11821_s11 + $0x10] sm:$0xff] }
  0xdd   :  { %v292_v4 = vpack.c.bf16 %v287_v2, %v286_v1  ;;  %v289_v5 = vld [vmem:[%s11821_s11 + $0x18] sm:$0xff]  ;;  %8468 = vmatpush3.bf16.msra.mxu0 %v8894_v8  ;;  %v8914_v62 = vld [vmem:[#allocation11 + $0x30] sm:$0xff]   ;;  %v8915_v0 = vld [vmem:[#allocation11 + $0x28] sm:$0xff]  }
  0xde   :  { %v293_v6 = vpack.c.bf16 %v289_v5, %v288_v3  ;;  %8469 = vmatprep.subr.bf16.mxu0 %v8895_v9  ;;  %v8913_v58 = vld [vmem:[#allocation11 + $0x38] sm:$0xff]   ;;  %v8908_v1 = vld [vmem:[#allocation11 + $0x60] sm:$0xff]   ;;  %v8910_v5 = vld [vmem:[#allocation11 + $0x50] sm:$0xff]  }
  0xdf   :  { %8441 = vmatprep.mubr.msk.bf16.mxu1 %vm307_vm0, %v292_v4  ;;  %v10444_v60 = vld [vmem:[#allocation2 + $0x18] sm:$0xff]  }
  0xe0   :  { %8442 = vmatmul.mubr.msk.bf16.vlgmr.msra.gmra.mxu1 %vm307_vm0, %v293_v6  ;;  %v8916_v2 = vld [vmem:[#allocation11 + $0x20] sm:$0xff]   ;;  %v8909_v3 = vld [vmem:[#allocation11 + $0x58] sm:$0xff]   ;;  %v8918_v6 = vld [vmem:[#allocation11 + $0x10] sm:$0xff]  }
  0xe1   :  { %8446 = vmatpush3.bf16.msra.mxu1 %v8893_v7  ;;  %8470 = vmatpush3.bf16.msra.mxu0 %v8895_v9  ;;  %v8917_v4 = vld [vmem:[#allocation11 + $0x18] sm:$0xff]   ;;  %v8911_v7 = vld [vmem:[#allocation11 + $0x48] sm:$0xff]  }
  0xe2   :  { %8447 = vmatprep.subr.bf16.mxu1 %v8894_v8  ;;  %8471 = vmatprep.subr.bf16.mxu0 %v8896_v10 }
  0xe5   :  { %8448 = vmatpush3.bf16.msra.mxu1 %v8894_v8  ;;  %8472 = vmatpush3.bf16.msra.mxu0 %v8896_v10  ;;  %v8912_v8 = vld [vmem:[#allocation11 + $0x40] sm:$0xff]  }
  0xe6   :  { %8449 = vmatprep.subr.bf16.mxu1 %v8895_v9  ;;  %8473 = vmatprep.subr.bf16.mxu0 %v8897_v11 }
  0xe9   :  { %8450 = vmatpush3.bf16.msra.mxu1 %v8895_v9  ;;  %8474 = vmatpush3.bf16.msra.mxu0 %v8897_v11  ;;  %v8919_v9 = vld [vmem:[#allocation11 + $0x8] sm:$0xff]  }
  0xea   :  { %8451 = vmatprep.subr.bf16.mxu1 %v8896_v10  ;;  %8475 = vmatprep.subr.bf16.mxu0 %v8898_v12 }
  0xed   :  { %8452 = vmatpush3.bf16.msra.mxu1 %v8896_v10  ;;  %8476 = vmatpush3.bf16.msra.mxu0 %v8898_v12  ;;  %v8920_v10 = vld [vmem:[#allocation11] sm:$0xff]  }
  0xee   :  { %8453 = vmatprep.subr.bf16.mxu1 %v8897_v11  ;;  %8477 = vmatprep.subr.bf16.mxu0 %v8899_v13 }
  0xf1   :  { %8454 = vmatpush3.bf16.msra.mxu1 %v8897_v11  ;;  %8478 = vmatpush3.bf16.msra.mxu0 %v8899_v13  ;;  %v8923_v11 = vld [vmem:[#allocation11 + $0xb8] sm:$0xff]  }
  0xf2   :  { %8455 = vmatprep.subr.bf16.mxu1 %v8898_v12  ;;  %8479 = vmatprep.subr.bf16.mxu0 %v8900_v14 }
  0xf5   :  { %8456 = vmatpush3.bf16.msra.mxu1 %v8898_v12  ;;  %8480 = vmatpush3.bf16.msra.mxu0 %v8900_v14 }
  0xf6   :  { %8457 = vmatprep.subr.bf16.mxu1 %v8899_v13 }
  0xf9   :  { %8458 = vmatpush3.bf16.msra.mxu1 %v8899_v13 }
  0xfa   :  { %8459 = vmatprep.subr.bf16.mxu1 %v8900_v14 }
  0xfd   :  { %8460 = vmatpush3.bf16.msra.mxu1 %v8900_v14 }
 0x1a0   :  { %v8443_v15 = vpop.f32.mrf.mxu1 }
 0x1a1   :  { %v357_v23 = vadd.f32 %v8443_v15, %v7567_v17 }
 0x1a2   :  { %v348_v16 = vpop.f32.mrf.mxu1 }
 0x1a3   :  { %v349_v21 = vadd.f32 %v7567_v17, %v348_v16 }
 0x1a4   :  { %v8444_v18 = vpop.f32.mrf.mxu1 }
 0x1a5   :  { %v360_v19 = vadd.f32 %v8444_v18, %v7567_v17 }
 0x1a6   :  { %v351_v20 = vpop.f32.mrf.mxu1 }
 0x1a7   :  { %v352_v22 = vadd.f32 %v7567_v17, %v351_v20  ;;  %v380_v25 = vpack.c.bf16 %v360_v19, %v357_v23  ;;  %v10453_v23 = vld [vmem:[#allocation2 + $0x20] sm:$0xff]  }
 0x1a9   :  { %v379_v24 = vpack.c.bf16 %v352_v22, %v349_v21 }
 0x1ab   :  { %8461 = vmatprep.mubr.bf16.mxu1 %v379_v24 }
 0x1ac   :  { %8462 = vmatmul.mubr.bf16.vlgmr.msra.gmra.mxu1 %v380_v25  ;;  %v8924_v25 = vld [vmem:[#allocation11 + $0xb0] sm:$0xff]  }
 0x1ad   :  { %8489 = vmatprep.mubr.msk.bf16.mxu1 %vm560_vm1, %v10424_v41 }
 0x26c   :  { %v8463_v26 = vpop.f32.mrf.mxu1 }
 0x26d   :  { %v479_v32 = vadd.f32 %v8463_v26, %v7571_v28  ;;  %v8925_v26 = vld [vmem:[#allocation11 + $0xa8] sm:$0xff]  }
 0x26e   :  { %v470_v27 = vpop.f32.mrf.mxu1 }
 0x26f   :  { %v471_v30 = vadd.f32 %v7571_v28, %v470_v27  ;;  %v487_v38 = vmax.f32 %v479_v32, 0.0  ;;  %v10459_v27 = vld [vmem:[#allocation2 + $0x28] sm:$0xff]   ;;  %v8930_v32 = vld [vmem:[#allocation11 + $0x80] sm:$0xff]  }
 0x270   :  { %v8464_v29 = vpop.f32.mrf.mxu1 }
 0x271   :  { %v482_v31 = vadd.f32 %v8464_v29, %v7571_v28  ;;  %v485_v36 = vmax.f32 %v471_v30, 0.0  ;;  %v8927_v29 = vld [vmem:[#allocation11 + $0x98] sm:$0xff]   ;;  %v8928_v30 = vld [vmem:[#allocation11 + $0x90] sm:$0xff]  }
 0x272   :  { %v473_v33 = vpop.f32.mrf.mxu1 }
 0x273   :  { %v474_v34 = vadd.f32 %v7571_v28, %v473_v33  ;;  %v488_v35 = vmax.f32 %v482_v31, 0.0  ;;  %v8929_v31 = vld [vmem:[#allocation11 + $0x88] sm:$0xff]  }
 0x275   :  { %v486_v37 = vmax.f32 %v474_v34, 0.0  ;;  %v490_v40 = vpack.c.bf16 %v488_v35, %v487_v38 }
 0x277   :  { %v489_v39 = vpack.c.bf16 %v486_v37, %v485_v36 }
 0x279   :  { %8481 = vmatprep.mubr.bf16.mxu0 %v489_v39 }
 0x27a   :  { %8482 = vmatmul.mubr.bf16.vlgmr.msra.gmra.mxu0 %v490_v40 }
 0x27b   :  { %8497 = vmatprep.mubr.msk.bf16.mxu0 %vm560_vm1, %v10426_v42 }
 0x33a   :  { %v8483_v43 = vpop.f32.mrf.mxu0 }
 0x33b   :  { %v534_v45 = vadd.f32 %v8483_v43, %v7571_v28 }
 0x33c   :  { %v525_v44 = vpop.f32.mrf.mxu0 }
 0x33d   :  { %v526_v47 = vadd.f32 %v7571_v28, %v525_v44  ;;  %v542_v50 = vmax.f32 %v534_v45, 0.0  ;;  %v10466_v45 = vld [vmem:[#allocation14 + $0x38] sm:$0xff]  }
 0x33e   :  { %v8484_v46 = vpop.f32.mrf.mxu0 }
 0x33f   :  { %v537_v48 = vadd.f32 %v8484_v46, %v7571_v28  ;;  %v540_v53 = vmax.f32 %v526_v47, 0.0  ;;  %v10468_v46 = vld [vmem:[#allocation14 + $0x30] sm:$0xff]   ;;  %v10473_v47 = vld [vmem:[#allocation14 + $0x28] sm:$0xff]  }
 0x340   :  { %v528_v49 = vpop.f32.mrf.mxu0 }
 0x341   :  { %v543_v51 = vmax.f32 %v537_v48, 0.0  ;;  %v529_v52 = vadd.f32 %v7571_v28, %v528_v49  ;;  %v8926_v28 = vld [vmem:[#allocation11 + $0xa0] sm:$0xff]  }
 0x342   :  { %v10477_v48 = vld [vmem:[#allocation14 + $0x20] sm:$0xff]   ;;  %v10481_v49 = vld [vmem:[#allocation14 + $0x18] sm:$0xff]  }
 0x343   :  { %v10432_v54 = vpack.c.bf16 %v543_v51, %v542_v50  ;;  %v541_v55 = vmax.f32 %v529_v52, 0.0  ;;  %v10485_v50 = vld [vmem:[#allocation14 + $0x10] sm:$0xff]  }
 0x345   :  { %v10434_v56 = vpack.c.bf16 %v541_v55, %v540_v53  ;;  %8485 = vmatprep.subr.bf16.mxu1 %v10432_v54  ;;  %8493 = vmatprep.subr.bf16.mxu0 %v10432_v54 }
 0x346   :  { %8486 = vmatpush3.bf16.msra.mxu1 %v10432_v54  ;;  %8494 = vmatpush3.bf16.msra.mxu0 %v10432_v54 }
 0x347   :  { %8487 = vmatprep.subr.bf16.mxu1 %v10434_v56  ;;  %8495 = vmatprep.subr.bf16.mxu0 %v10434_v56 }
 0x34a   :  { %8488 = vmatpush3.bf16.msra.mxu1 %v10434_v56  ;;  %8496 = vmatpush3.bf16.msra.mxu0 %v10434_v56 }
 0x34b   :  { %8501 = vmatprep.subr.bf16.mxu1 %v8905_v57  ;;  %8521 = vmatprep.subr.bf16.mxu0 %v8913_v58 }
 0x34d   :  { %8490 = vmatmul.mubr.msk.bf16.vlgmr.msra.gmra.mxu1 %vm560_vm1, %v10442_v59  ;;  %8498 = vmatmul.mubr.msk.bf16.vlgmr.msra.gmra.mxu0 %vm560_vm1, %v10444_v60 }
 0x34e   :  { %8502 = vmatpush3.bf16.msra.mxu1 %v8905_v57  ;;  %8522 = vmatpush3.bf16.msra.mxu0 %v8913_v58 }
 0x34f   :  { %8503 = vmatprep.subr.bf16.mxu1 %v8906_v61  ;;  %8523 = vmatprep.subr.bf16.mxu0 %v8914_v62 }
 0x352   :  { %8504 = vmatpush3.bf16.msra.mxu1 %v8906_v61  ;;  %8524 = vmatpush3.bf16.msra.mxu0 %v8914_v62 }
 0x353   :  { %8505 = vmatprep.subr.bf16.mxu1 %v8907_v63  ;;  %8525 = vmatprep.subr.bf16.mxu0 %v8915_v0 }
 0x356   :  { %8506 = vmatpush3.bf16.msra.mxu1 %v8907_v63  ;;  %8526 = vmatpush3.bf16.msra.mxu0 %v8915_v0  ;;  %v7616_v63 = vld [vmem:[#allocation13] ss:$0 sm:$0xff] }
 0x357   :  { %8507 = vmatprep.subr.bf16.mxu1 %v8908_v1  ;;  %8527 = vmatprep.subr.bf16.mxu0 %v8916_v2 }
 0x35a   :  { %8508 = vmatpush3.bf16.msra.mxu1 %v8908_v1  ;;  %8528 = vmatpush3.bf16.msra.mxu0 %v8916_v2 }
 0x35b   :  { %8509 = vmatprep.subr.bf16.mxu1 %v8909_v3  ;;  %8529 = vmatprep.subr.bf16.mxu0 %v8917_v4 }
 0x35e   :  { %8510 = vmatpush3.bf16.msra.mxu1 %v8909_v3  ;;  %8530 = vmatpush3.bf16.msra.mxu0 %v8917_v4 }
 0x35f   :  { %8511 = vmatprep.subr.bf16.mxu1 %v8910_v5  ;;  %8531 = vmatprep.subr.bf16.mxu0 %v8918_v6 }
 0x362   :  { %8512 = vmatpush3.bf16.msra.mxu1 %v8910_v5  ;;  %8532 = vmatpush3.bf16.msra.mxu0 %v8918_v6 }
 0x363   :  { %8513 = vmatprep.subr.bf16.mxu1 %v8911_v7  ;;  %8533 = vmatprep.subr.bf16.mxu0 %v8919_v9 }
 0x366   :  { %8514 = vmatpush3.bf16.msra.mxu1 %v8911_v7  ;;  %8534 = vmatpush3.bf16.msra.mxu0 %v8919_v9 }
 0x367   :  { %8515 = vmatprep.subr.bf16.mxu1 %v8912_v8  ;;  %8535 = vmatprep.subr.bf16.mxu0 %v8920_v10 }
 0x36a   :  { %8516 = vmatpush3.bf16.msra.mxu1 %v8912_v8  ;;  %8536 = vmatpush3.bf16.msra.mxu0 %v8920_v10 }
 0x36b   :  { %8541 = vmatprep.subr.bf16.mxu1 %v10432_v54  ;;  %8549 = vmatprep.subr.bf16.mxu0 %v8923_v11 }
 0x40d   :  { %v8491_v12 = vpop.f32.mrf.mxu1  ;;  %v8499_v13 = vpop.f32.mrf.mxu0 }
 0x40f   :  { %v601_v14 = vpop.f32.mrf.mxu1  ;;  %v689_v15 = vpop.f32.mrf.mxu0 }
 0x411   :  { %v8492_v16 = vpop.f32.mrf.mxu1  ;;  %v8500_v17 = vpop.f32.mrf.mxu0 }
 0x412   :  { %v633_v18 = vpack.c.bf16 %v8492_v16, %v8491_v12  ;;  %v722_v24 = vpack.c.bf16 %v8500_v17, %v8499_v13  ;;  %v10499_v12 = vld [vmem:[#allocation14 + $0x78] sm:$0xff]   ;;  %v10503_v13 = vld [vmem:[#allocation14 + $0x70] sm:$0xff]  }
 0x413   :  { %v604_v19 = vpop.f32.mrf.mxu1  ;;  %v692_v20 = vpop.f32.mrf.mxu0  ;;  %v10517_v16 = vld [vmem:[#allocation14 + $0x58] sm:$0xff]   ;;  %v10521_v17 = vld [vmem:[#allocation14 + $0x50] sm:$0xff]  }
 0x414   :  { %v632_v21 = vpack.c.bf16 %v604_v19, %v601_v14  ;;  %v721_v22 = vpack.c.bf16 %v692_v20, %v689_v15  ;;  %v10509_v14 = vld [vmem:[#allocation14 + $0x68] sm:$0xff]   ;;  %v10513_v15 = vld [vmem:[#allocation14 + $0x60] sm:$0xff]  }
 0x415   :  { %v10529_v19 = vld [vmem:[#allocation14 + $0x40] sm:$0xff]   ;;  %v10534_v20 = vld [vmem:[#allocation14 + $0x8] sm:$0xff]  }
 0x416   :  { %8517 = vmatprep.mubr.bf16.mxu1 %v721_v22  ;;  %8537 = vmatprep.mubr.bf16.mxu0 %v632_v21  ;;  %v10538_v21 = vld [vmem:[#allocation14] sm:$0xff]  }
 0x417   :  { %8518 = vmatmul.mubr.bf16.vlgmr.msra.gmra.mxu1 %v722_v24  ;;  %8538 = vmatmul.mubr.bf16.vlgmr.msra.gmra.mxu0 %v633_v18  ;;  %v10525_v18 = vld [vmem:[#allocation14 + $0x48] sm:$0xff]  }
 0x418   :  { %8542 = vmatpush3.bf16.msra.mxu1 %v10432_v54  ;;  %8545 = vmatprep.mubr.msk.bf16.mxu1 %vm560_vm1, %v10453_v23 }
 0x419   :  { %8543 = vmatprep.subr.bf16.mxu1 %v10434_v56  ;;  %8550 = vmatpush3.bf16.msra.mxu0 %v8923_v11 }
 0x41a   :  { %8551 = vmatprep.subr.bf16.mxu0 %v8924_v25 }
 0x41c   :  { %8544 = vmatpush3.bf16.msra.mxu1 %v10434_v56 }
 0x41d   :  { %8552 = vmatpush3.bf16.msra.mxu0 %v8924_v25 }
 0x41e   :  { %8553 = vmatprep.subr.bf16.mxu0 %v8925_v26 }
 0x41f   :  { %8546 = vmatmul.mubr.msk.bf16.vlgmr.msra.gmra.mxu1 %vm560_vm1, %v10459_v27 }
 0x420   :  { %8573 = vmatprep.mubr.msk.bf16.mxu1 %vm560_vm1, %v10424_v41 }
 0x421   :  { %8554 = vmatpush3.bf16.msra.mxu0 %v8925_v26 }
 0x422   :  { %8555 = vmatprep.subr.bf16.mxu0 %v8926_v28 }
 0x425   :  { %8556 = vmatpush3.bf16.msra.mxu0 %v8926_v28 }
 0x426   :  { %8557 = vmatprep.subr.bf16.mxu0 %v8927_v29 }
 0x429   :  { %8558 = vmatpush3.bf16.msra.mxu0 %v8927_v29 }
 0x42a   :  { %8559 = vmatprep.subr.bf16.mxu0 %v8928_v30 }
 0x42d   :  { %8560 = vmatpush3.bf16.msra.mxu0 %v8928_v30 }
 0x42e   :  { %8561 = vmatprep.subr.bf16.mxu0 %v8929_v31 }
 0x431   :  { %8562 = vmatpush3.bf16.msra.mxu0 %v8929_v31 }
 0x432   :  { %8563 = vmatprep.subr.bf16.mxu0 %v8930_v32 }
 0x435   :  { %8564 = vmatpush3.bf16.msra.mxu0 %v8930_v32 }
 0x436   :  { %8605 = vmatprep.subr.bf16.mxu0 %v10466_v45 }
 0x4d7   :  { %v8519_v33 = vpop.f32.mrf.mxu1  ;;  %v8539_v51 = vpop.f32.mrf.mxu0 }
 0x4d8   :  { %v911_v56 = vadd.f32 %v8539_v51, %v8519_v33 }
 0x4d9   :  { %v805_v34 = vpop.f32.mrf.mxu1  ;;  %v902_v52 = vpop.f32.mrf.mxu0 }
 0x4da   :  { %v903_v58 = vadd.f32 %v902_v52, %v805_v34 }
 0x4db   :  { %v8520_v35 = vpop.f32.mrf.mxu1  ;;  %v8540_v53 = vpop.f32.mrf.mxu0 }
 0x4dc   :  { %v914_v61 = vadd.f32 %v8540_v53, %v8520_v35 }
 0x4dd   :  { %v808_v36 = vpop.f32.mrf.mxu1  ;;  %v905_v54 = vpop.f32.mrf.mxu0 }
 0x4de   :  { %v906_v1 = vadd.f32 %v905_v54, %v808_v36  ;;  %v10547_v36 = vld [vmem:[#allocation14 + $0xb8] sm:$0xff]  }
 0x4df   :  { %v8547_v37 = vpop.f32.mrf.mxu1 }
 0x4e1   :  { %v972_v38 = vpop.f32.mrf.mxu1 }
 0x4e3   :  { %v8548_v39 = vpop.f32.mrf.mxu1 }
 0x4e4   :  { %v1005_v44 = vpack.c.bf16 %v8548_v39, %v8547_v37  ;;  %v10551_v37 = vld [vmem:[#allocation14 + $0xb0] sm:$0xff]   ;;  %v10566_v39 = vld [vmem:[#allocation14 + $0x98] sm:$0xff]  }
 0x4e5   :  { %v975_v40 = vpop.f32.mrf.mxu1 }
 0x4e6   :  { %v1004_v43 = vpack.c.bf16 %v975_v40, %v972_v38  ;;  %v10562_v38 = vld [vmem:[#allocation14 + $0xa0] sm:$0xff]   ;;  %v10570_v40 = vld [vmem:[#allocation14 + $0x90] sm:$0xff]  }
 0x4e8   :  { %8565 = vmatprep.mubr.bf16.mxu0 %v1004_v43  ;;  %v10574_v43 = vld [vmem:[#allocation14 + $0x88] sm:$0xff]  }
 0x4e9   :  { %8566 = vmatmul.mubr.bf16.vlgmr.msra.gmra.mxu0 %v1005_v44  ;;  %v10578_v44 = vld [vmem:[#allocation14 + $0x80] sm:$0xff]  }
 0x4ea   :  { %8606 = vmatpush3.bf16.msra.mxu0 %v10466_v45 }
 0x4eb   :  { %8607 = vmatprep.subr.bf16.mxu0 %v10468_v46 }
 0x4ee   :  { %8608 = vmatpush3.bf16.msra.mxu0 %v10468_v46 }
 0x4ef   :  { %8609 = vmatprep.subr.bf16.mxu0 %v10473_v47 }
 0x4f2   :  { %8610 = vmatpush3.bf16.msra.mxu0 %v10473_v47 }
 0x4f3   :  { %8611 = vmatprep.subr.bf16.mxu0 %v10477_v48 }
 0x4f6   :  { %8612 = vmatpush3.bf16.msra.mxu0 %v10477_v48 }
 0x4f7   :  { %8613 = vmatprep.subr.bf16.mxu0 %v10481_v49 }
 0x4fa   :  { %8614 = vmatpush3.bf16.msra.mxu0 %v10481_v49 }
 0x4fb   :  { %8615 = vmatprep.subr.bf16.mxu0 %v10485_v50 }
 0x4fe   :  { %8616 = vmatpush3.bf16.msra.mxu0 %v10485_v50 }
 0x4ff   :  { %8617 = vmatprep.subr.bf16.mxu0 %v10534_v20 }
 0x502   :  { %8618 = vmatpush3.bf16.msra.mxu0 %v10534_v20 }
 0x503   :  { %8619 = vmatprep.subr.bf16.mxu0 %v10538_v21 }
 0x506   :  { %8620 = vmatpush3.bf16.msra.mxu0 %v10538_v21 }
 0x5a9   :  { %v8567_v55 = vpop.f32.mrf.mxu0 }
 0x5aa   :  { %v1105_v62 = vadd.f32 %v8567_v55, %v911_v56 }
 0x5ab   :  { %v1088_v57 = vpop.f32.mrf.mxu0 }
 0x5ac   :  { %v1103_v2 = vadd.f32 %v1088_v57, %v903_v58  ;;  %v1116_v5 = vadd.f32 %v7616_v63, %v1105_v62 }
 0x5ad   :  { %v8568_v0 = vpop.f32.mrf.mxu0 }
 0x5ae   :  { %v1106_v3 = vadd.f32 %v8568_v0, %v914_v61  ;;  %v1114_v8 = vadd.f32 %v7616_v63, %v1103_v2 }
 0x5af   :  { %v1091_v4 = vpop.f32.mrf.mxu0 }
 0x5b0   :  { %v1117_v6 = vadd.f32 %v7616_v63, %v1106_v3  ;;  %v1104_v7 = vadd.f32 %v1091_v4, %v906_v1 }
 0x5b2   :  { %v1119_v9 = vpack.c.bf16 %v1117_v6, %v1116_v5  ;;  %v1115_v10 = vadd.f32 %v7616_v63, %v1104_v7 }
 0x5b4   :  { %v10490_v11 = vpack.c.bf16 %v1115_v10, %v1114_v8  ;;  %8569 = vmatprep.subr.bf16.mxu1 %v1119_v9 }
 0x5b5   :  { %8570 = vmatpush3.bf16.msra.mxu1 %v1119_v9 }
 0x5b6   :  { %8571 = vmatprep.subr.bf16.mxu1 %v10490_v11 }
 0x5b9   :  { %8572 = vmatpush3.bf16.msra.mxu1 %v10490_v11 }
 0x5ba   :  { %8577 = vmatprep.subr.bf16.mxu1 %v1119_v9 }
 0x5bc   :  { %8574 = vmatmul.mubr.msk.bf16.vlgmr.msra.gmra.mxu1 %vm560_vm1, %v10442_v59 }
 0x5bd   :  { %8578 = vmatpush3.bf16.msra.mxu1 %v1119_v9  ;;  %8581 = vmatprep.mubr.msk.bf16.mxu1 %vm560_vm1, %v10426_v42 }
 0x5be   :  { %8579 = vmatprep.subr.bf16.mxu1 %v10490_v11 }
 0x5c1   :  { %8580 = vmatpush3.bf16.msra.mxu1 %v10490_v11 }
 0x5c2   :  { %8585 = vmatprep.subr.bf16.mxu1 %v10499_v12 }
 0x5c4   :  { %8582 = vmatmul.mubr.msk.bf16.vlgmr.msra.gmra.mxu1 %vm560_vm1, %v10444_v60 }
 0x5c5   :  { %8586 = vmatpush3.bf16.msra.mxu1 %v10499_v12 }
 0x5c6   :  { %8587 = vmatprep.subr.bf16.mxu1 %v10503_v13 }
 0x5c9   :  { %8588 = vmatpush3.bf16.msra.mxu1 %v10503_v13 }
 0x5ca   :  { %8589 = vmatprep.subr.bf16.mxu1 %v10509_v14 }
 0x5cd   :  { %8590 = vmatpush3.bf16.msra.mxu1 %v10509_v14 }
 0x5ce   :  { %8591 = vmatprep.subr.bf16.mxu1 %v10513_v15 }
 0x5d1   :  { %8592 = vmatpush3.bf16.msra.mxu1 %v10513_v15 }
 0x5d2   :  { %8593 = vmatprep.subr.bf16.mxu1 %v10517_v16 }
 0x5d5   :  { %8594 = vmatpush3.bf16.msra.mxu1 %v10517_v16 }
 0x5d6   :  { %8595 = vmatprep.subr.bf16.mxu1 %v10521_v17 }
 0x5d9   :  { %8596 = vmatpush3.bf16.msra.mxu1 %v10521_v17 }
 0x5da   :  { %8597 = vmatprep.subr.bf16.mxu1 %v10525_v18 }
 0x5dd   :  { %8598 = vmatpush3.bf16.msra.mxu1 %v10525_v18 }
 0x5de   :  { %8599 = vmatprep.subr.bf16.mxu1 %v10529_v19 }
 0x5e1   :  { %8600 = vmatpush3.bf16.msra.mxu1 %v10529_v19 }
 0x5e2   :  { %8625 = vmatprep.subr.bf16.mxu1 %v1119_v9 }
 0x67c   :  { %v8575_v22 = vpop.f32.mrf.mxu1 }
 0x67e   :  { %v1154_v24 = vpop.f32.mrf.mxu1 }
 0x680   :  { %v8576_v25 = vpop.f32.mrf.mxu1 }
 0x681   :  { %v1186_v29 = vpack.c.bf16 %v8576_v25, %v8575_v22 }
 0x682   :  { %v1157_v26 = vpop.f32.mrf.mxu1 }
 0x683   :  { %v1185_v28 = vpack.c.bf16 %v1157_v26, %v1154_v24 }
 0x684   :  { %v8583_v30 = vpop.f32.mrf.mxu1 }
 0x685   :  { %8621 = vmatprep.mubr.bf16.mxu0 %v1185_v28 }
 0x686   :  { %v1221_v31 = vpop.f32.mrf.mxu1  ;;  %8622 = vmatmul.mubr.bf16.vlgmr.msra.gmra.mxu0 %v1186_v29 }
 0x687   :  { %8657 = vmatprep.mubr.msk.bf16.mxu0 %vm560_vm1, %v10424_v41  ;;  %v10558_v41 = vld [vmem:[#allocation14 + $0xa8] sm:$0xff]  }
 0x688   :  { %v8584_v32 = vpop.f32.mrf.mxu1 }
 0x689   :  { %v1254_v35 = vpack.c.bf16 %v8584_v32, %v8583_v30 }
 0x68a   :  { %v1224_v33 = vpop.f32.mrf.mxu1 }
 0x68b   :  { %v1253_v34 = vpack.c.bf16 %v1224_v33, %v1221_v31 }
 0x68d   :  { %8601 = vmatprep.mubr.bf16.mxu1 %v1253_v34 }
 0x68e   :  { %8602 = vmatmul.mubr.bf16.vlgmr.msra.gmra.mxu1 %v1254_v35 }
 0x68f   :  { %8626 = vmatpush3.bf16.msra.mxu1 %v1119_v9  ;;  %8629 = vmatprep.mubr.msk.bf16.mxu1 %vm560_vm1, %v10453_v23 }
 0x690   :  { %8627 = vmatprep.subr.bf16.mxu1 %v10490_v11 }
 0x693   :  { %8628 = vmatpush3.bf16.msra.mxu1 %v10490_v11 }
 0x694   :  { %8633 = vmatprep.subr.bf16.mxu1 %v10547_v36 }
 0x696   :  { %8630 = vmatmul.mubr.msk.bf16.vlgmr.msra.gmra.mxu1 %vm560_vm1, %v10459_v27 }
 0x697   :  { %8634 = vmatpush3.bf16.msra.mxu1 %v10547_v36 }
 0x698   :  { %8635 = vmatprep.subr.bf16.mxu1 %v10551_v37 }
 0x69b   :  { %8636 = vmatpush3.bf16.msra.mxu1 %v10551_v37 }
 0x69c   :  { %8637 = vmatprep.subr.bf16.mxu1 %v10558_v41 }
 0x69f   :  { %8638 = vmatpush3.bf16.msra.mxu1 %v10558_v41 }
 0x6a0   :  { %8639 = vmatprep.subr.bf16.mxu1 %v10562_v38 }
 0x6a3   :  { %8640 = vmatpush3.bf16.msra.mxu1 %v10562_v38 }
 0x6a4   :  { %8641 = vmatprep.subr.bf16.mxu1 %v10566_v39 }
 0x6a7   :  { %8642 = vmatpush3.bf16.msra.mxu1 %v10566_v39 }
 0x6a8   :  { %8643 = vmatprep.subr.bf16.mxu1 %v10570_v40 }
 0x6ab   :  { %8644 = vmatpush3.bf16.msra.mxu1 %v10570_v40 }
 0x6ac   :  { %8645 = vmatprep.subr.bf16.mxu1 %v10574_v43 }
 0x6af   :  { %8646 = vmatpush3.bf16.msra.mxu1 %v10574_v43 }
 0x6b0   :  { %8647 = vmatprep.subr.bf16.mxu1 %v10578_v44 }
 0x6b3   :  { %8648 = vmatpush3.bf16.msra.mxu1 %v10578_v44 }
 0x6b4   :  { %8689 = vmatprep.subr.bf16.mxu1 %v10466_v45 }
 0x74e   :  { %v8603_v51 = vpop.f32.mrf.mxu1 }
 0x750   :  { %v1337_v52 = vpop.f32.mrf.mxu1 }
 0x752   :  { %v8604_v53 = vpop.f32.mrf.mxu1 }
 0x754   :  { %v1340_v54 = vpop.f32.mrf.mxu1 }
 0x756   :  { %v8631_v55 = vpop.f32.mrf.mxu1 }
 0x758   :  { %v1483_v56 = vpop.f32.mrf.mxu1 }
 0x75a   :  { %v8632_v57 = vpop.f32.mrf.mxu1 }
 0x75b   :  { %v1516_v62 = vpack.c.bf16 %v8632_v57, %v8631_v55  ;;  %v8978_v55 = vld [vmem:[#allocation17 + $0x34] ss:$8 sps:$4 sm:$0xff]   ;;  %v8984_v57 = vld [vmem:[#allocation17 + $0x24] ss:$8 sps:$4 sm:$0xff]  }
 0x75c   :  { %v1486_v58 = vpop.f32.mrf.mxu1 }
 0x75d   :  { %v1515_v61 = vpack.c.bf16 %v1486_v58, %v1483_v56  ;;  %v8976_v56 = vld [vmem:[#allocation17 + $0x30] ss:$8 sps:$4 sm:$0xff]   ;;  %v8982_v58 = vld [vmem:[#allocation17 + $0x20] ss:$8 sps:$4 sm:$0xff]  }
 0x75f   :  { %8649 = vmatprep.mubr.bf16.mxu1 %v1515_v61  ;;  %v8990_v61 = vld [vmem:[#allocation17 + $0x14] ss:$8 sps:$4 sm:$0xff]  }
 0x760   :  { %8650 = vmatmul.mubr.bf16.vlgmr.msra.gmra.mxu1 %v1516_v62  ;;  %v8988_v62 = vld [vmem:[#allocation17 + $0x10] ss:$8 sps:$4 sm:$0xff]  }
 0x761   :  { %8690 = vmatpush3.bf16.msra.mxu1 %v10466_v45  ;;  %v8623_v45 = vpop.f32.mrf.mxu0 }
 0x762   :  { %8691 = vmatprep.subr.bf16.mxu1 %v10468_v46 }
 0x765   :  { %8692 = vmatpush3.bf16.msra.mxu1 %v10468_v46  ;;  %v1434_v46 = vpop.f32.mrf.mxu0 }
 0x766   :  { %8693 = vmatprep.subr.bf16.mxu1 %v10473_v47  ;;  %v1435_v0 = vadd.f32 %v1434_v46, %v1337_v52  ;;  %v8964_v52 = vld [vmem:[#allocation17 + $0x50] ss:$8 sps:$4 sm:$0xff]   ;;  %v8994_v46 = vld [vmem:[#allocation17] ss:$8 sps:$4 sm:$0xff]  }
 0x769   :  { %8694 = vmatpush3.bf16.msra.mxu1 %v10473_v47  ;;  %v1443_v47 = vadd.f32 %v8623_v45, %v8603_v51  ;;  %v8966_v51 = vld [vmem:[#allocation17 + $0x54] ss:$8 sps:$4 sm:$0xff]   ;;  %v8996_v45 = vld [vmem:[#allocation17 + $0x4] ss:$8 sps:$4 sm:$0xff]  }
 0x76a   :  { %8695 = vmatprep.subr.bf16.mxu1 %v10477_v48 }
 0x76d   :  { %8696 = vmatpush3.bf16.msra.mxu1 %v10477_v48  ;;  %v8624_v48 = vpop.f32.mrf.mxu0 }
 0x76e   :  { %8697 = vmatprep.subr.bf16.mxu1 %v10481_v49  ;;  %v1446_v3 = vadd.f32 %v8624_v48, %v8604_v53  ;;  %v8972_v53 = vld [vmem:[#allocation17 + $0x44] ss:$8 sps:$4 sm:$0xff]  }
 0x76f   :  { %v1437_v4 = vpop.f32.mrf.mxu0 }
 0x770   :  { %v1438_v6 = vadd.f32 %v1437_v4, %v1340_v54  ;;  %v8970_v54 = vld [vmem:[#allocation17 + $0x40] ss:$8 sps:$4 sm:$0xff]  }
 0x771   :  { %8698 = vmatpush3.bf16.msra.mxu1 %v10481_v49  ;;  %v10598_v49 = vld [vmem:[#allocation16] ss:$0 sm:$0xff] }
 0x772   :  { %8699 = vmatprep.subr.bf16.mxu1 %v10485_v50 }
 0x775   :  { %8700 = vmatpush3.bf16.msra.mxu1 %v10485_v50 }
 0x776   :  { %8701 = vmatprep.subr.bf16.mxu1 %v10534_v20 }
 0x779   :  { %8702 = vmatpush3.bf16.msra.mxu1 %v10534_v20 }
 0x77a   :  { %8703 = vmatprep.subr.bf16.mxu1 %v10538_v21 }
 0x77d   :  { %8704 = vmatpush3.bf16.msra.mxu1 %v10538_v21 }
 0x820   :  { %v8651_v63 = vpop.f32.mrf.mxu1 }
 0x821   :  { %v1616_v1 = vadd.f32 %v8651_v63, %v1443_v47 }
 0x822   :  { %v1599_v2 = vpop.f32.mrf.mxu1 }
 0x823   :  { %v1614_v50 = vadd.f32 %v1599_v2, %v1435_v0  ;;  %v1627_v7 = vadd.f32 %v10598_v49, %v1616_v1 }
 0x824   :  { %v8652_v5 = vpop.f32.mrf.mxu1 }
 0x825   :  { %v1617_v8 = vadd.f32 %v8652_v5, %v1446_v3  ;;  %v1625_v10 = vadd.f32 %v10598_v49, %v1614_v50  ;;  %v1631_v21 = vmax.f32 %v1627_v7, 0.0 }
 0x826   :  { %v1602_v9 = vpop.f32.mrf.mxu1 }
 0x827   :  { %v1628_v11 = vadd.f32 %v10598_v49, %v1617_v8  ;;  %v1615_v20 = vadd.f32 %v1602_v9, %v1438_v6  ;;  %v1629_v25 = vmax.f32 %v1625_v10, 0.0 }
 0x829   :  { %v1632_v22 = vmax.f32 %v1628_v11, 0.0  ;;  %v1626_v24 = vadd.f32 %v10598_v49, %v1615_v20 }
 0x82b   :  { %v1634_v26 = vpack.c.bf16 %v1632_v22, %v1631_v21  ;;  %v1630_v28 = vmax.f32 %v1626_v24, 0.0 }
 0x82d   :  { %v1633_v29 = vpack.c.bf16 %v1630_v28, %v1629_v25  ;;  %8653 = vmatprep.subr.bf16.mxu0 %v1634_v26 }
 0x82e   :  { %8654 = vmatpush3.bf16.msra.mxu0 %v1634_v26 }
 0x82f   :  { %8655 = vmatprep.subr.bf16.mxu0 %v1633_v29 }
 0x832   :  { %8656 = vmatpush3.bf16.msra.mxu0 %v1633_v29 }
 0x833   :  { %8661 = vmatprep.subr.bf16.mxu0 %v1634_v26 }
 0x835   :  { %8658 = vmatmul.mubr.msk.bf16.vlgmr.msra.gmra.mxu0 %vm560_vm1, %v10442_v59 }
 0x836   :  { %8662 = vmatpush3.bf16.msra.mxu0 %v1634_v26  ;;  %8665 = vmatprep.mubr.msk.bf16.mxu0 %vm560_vm1, %v10426_v42 }
 0x837   :  { %8663 = vmatprep.subr.bf16.mxu0 %v1633_v29 }
 0x83a   :  { %8664 = vmatpush3.bf16.msra.mxu0 %v1633_v29 }
 0x83b   :  { %8669 = vmatprep.subr.bf16.mxu0 %v10499_v12 }
 0x83d   :  { %8666 = vmatmul.mubr.msk.bf16.vlgmr.msra.gmra.mxu0 %vm560_vm1, %v10444_v60 }
 0x83e   :  { %8670 = vmatpush3.bf16.msra.mxu0 %v10499_v12 }
 0x83f   :  { %8671 = vmatprep.subr.bf16.mxu0 %v10503_v13 }
 0x842   :  { %8672 = vmatpush3.bf16.msra.mxu0 %v10503_v13 }
 0x843   :  { %8673 = vmatprep.subr.bf16.mxu0 %v10509_v14 }
 0x846   :  { %8674 = vmatpush3.bf16.msra.mxu0 %v10509_v14 }
 0x847   :  { %8675 = vmatprep.subr.bf16.mxu0 %v10513_v15 }
 0x84a   :  { %8676 = vmatpush3.bf16.msra.mxu0 %v10513_v15 }
 0x84b   :  { %8677 = vmatprep.subr.bf16.mxu0 %v10517_v16 }
 0x84e   :  { %8678 = vmatpush3.bf16.msra.mxu0 %v10517_v16 }
 0x84f   :  { %8679 = vmatprep.subr.bf16.mxu0 %v10521_v17 }
 0x852   :  { %8680 = vmatpush3.bf16.msra.mxu0 %v10521_v17 }
 0x853   :  { %8681 = vmatprep.subr.bf16.mxu0 %v10525_v18 }
 0x856   :  { %8682 = vmatpush3.bf16.msra.mxu0 %v10525_v18 }
 0x857   :  { %8683 = vmatprep.subr.bf16.mxu0 %v10529_v19 }
 0x85a   :  { %8684 = vmatpush3.bf16.msra.mxu0 %v10529_v19 }
 0x85b   :  { %8709 = vmatprep.subr.bf16.mxu0 %v1634_v26 }
 0x8f5   :  { %v8659_v42 = vpop.f32.mrf.mxu0 }
 0x8f7   :  { %v1669_v59 = vpop.f32.mrf.mxu0 }
 0x8f9   :  { %v8660_v60 = vpop.f32.mrf.mxu0 }
 0x8fa   :  { %v1685_v14 = vpack.c.bf16 %v8660_v60, %v8659_v42  ;;  %v1947_v60 = vld [vmem:[%s11822_s24] sm:$0xf] }
 0x8fb   :  { %v1672_v12 = vpop.f32.mrf.mxu0 }
 0x8fc   :  { %v1684_v13 = vpack.c.bf16 %v1672_v12, %v1669_v59  ;;  %v7655_v12 = vld [vmem:[%s11822_s24 + $0x4] sm:$0xf] }
 0x8fd   :  { %v8667_v15 = vpop.f32.mrf.mxu0 }
 0x8fe   :  { %8705 = vmatprep.mubr.bf16.mxu1 %v1684_v13  ;;  %v8961_v13 = vld [vmem:[#allocation17 + $0xf0] ss:$8 sps:$4 sm:$0xff]  }
 0x8ff   :  { %v1720_v16 = vpop.f32.mrf.mxu0  ;;  %8706 = vmatmul.mubr.bf16.vlgmr.msra.gmra.mxu1 %v1685_v14  ;;  %v8969_v14 = vld [vmem:[#allocation17 + $0xe4] ss:$8 sps:$4 sm:$0xff]  }
 0x901   :  { %v8668_v17 = vpop.f32.mrf.mxu0 }
 0x902   :  { %v1736_v32 = vpack.c.bf16 %v8668_v17, %v8667_v15  ;;  %v8967_v15 = vld [vmem:[#allocation17 + $0xe0] ss:$8 sps:$4 sm:$0xff]   ;;  %v8973_v17 = vld [vmem:[#allocation17 + $0xd0] ss:$8 sps:$4 sm:$0xff]  }
 0x903   :  { %v1723_v30 = vpop.f32.mrf.mxu0 }
 0x904   :  { %v1735_v31 = vpack.c.bf16 %v1723_v30, %v1720_v16  ;;  %v8975_v16 = vld [vmem:[#allocation17 + $0xd4] ss:$8 sps:$4 sm:$0xff]   ;;  %v8981_v30 = vld [vmem:[#allocation17 + $0xc4] ss:$8 sps:$4 sm:$0xff]  }
 0x906   :  { %8685 = vmatprep.mubr.bf16.mxu0 %v1735_v31  ;;  %v8979_v31 = vld [vmem:[#allocation17 + $0xc0] ss:$8 sps:$4 sm:$0xff]  }
 0x907   :  { %8686 = vmatmul.mubr.bf16.vlgmr.msra.gmra.mxu0 %v1736_v32  ;;  %v8987_v32 = vld [vmem:[#allocation17 + $0xb4] ss:$8 sps:$4 sm:$0xff]  }
 0x908   :  { %8710 = vmatpush3.bf16.msra.mxu0 %v1634_v26  ;;  %8713 = vmatprep.mubr.msk.bf16.mxu0 %vm560_vm1, %v10453_v23 }
 0x909   :  { %8711 = vmatprep.subr.bf16.mxu0 %v1633_v29 }
 0x90c   :  { %8712 = vmatpush3.bf16.msra.mxu0 %v1633_v29 }
 0x90d   :  { %8717 = vmatprep.subr.bf16.mxu0 %v10547_v36 }
 0x90f   :  { %8714 = vmatmul.mubr.msk.bf16.vlgmr.msra.gmra.mxu0 %vm560_vm1, %v10459_v27 }
 0x910   :  { %8718 = vmatpush3.bf16.msra.mxu0 %v10547_v36 }
 0x911   :  { %8719 = vmatprep.subr.bf16.mxu0 %v10551_v37 }
 0x914   :  { %8720 = vmatpush3.bf16.msra.mxu0 %v10551_v37 }
 0x915   :  { %8721 = vmatprep.subr.bf16.mxu0 %v10558_v41 }
 0x918   :  { %8722 = vmatpush3.bf16.msra.mxu0 %v10558_v41 }
 0x919   :  { %8723 = vmatprep.subr.bf16.mxu0 %v10562_v38 }
 0x91c   :  { %8724 = vmatpush3.bf16.msra.mxu0 %v10562_v38  ;;  %v10223_v38 = vmov 0.0  }
 0x91d   :  { %8725 = vmatprep.subr.bf16.mxu0 %v10566_v39  ;;  %8737 = vmatprep.subr.bf16.mxu1 %v10223_v38 }
 0x91e   :  { %8741 = vmatprep.mubr.msk.bf16.mxu1 %vm10224_vm2, %v10223_v38 }
 0x920   :  { %8726 = vmatpush3.bf16.msra.mxu0 %v10566_v39  ;;  %v8955_v39 = vld [vmem:[#allocation17 + $0x70] ss:$8 sps:$4 sm:$0xff]  }
 0x921   :  { %8727 = vmatprep.subr.bf16.mxu0 %v10570_v40 }
 0x924   :  { %8728 = vmatpush3.bf16.msra.mxu0 %v10570_v40  ;;  %v8957_v40 = vld [vmem:[#allocation17 + $0x74] ss:$8 sps:$4 sm:$0xff]  }
 0x925   :  { %8729 = vmatprep.subr.bf16.mxu0 %v10574_v43 }
 0x928   :  { %8730 = vmatpush3.bf16.msra.mxu0 %v10574_v43  ;;  %v8960_v43 = vld [vmem:[#allocation17 + $0x64] ss:$8 sps:$4 sm:$0xff]  }
 0x929   :  { %8731 = vmatprep.subr.bf16.mxu0 %v10578_v44 }
 0x92c   :  { %8732 = vmatpush3.bf16.msra.mxu0 %v10578_v44  ;;  %v8958_v44 = vld [vmem:[#allocation17 + $0x60] ss:$8 sps:$4 sm:$0xff]  }
 0x92d   :  { %2274 = vmatprep.subr.bf16.mxu0 %v8957_v40 }
 0x9bf   :  { %v8707_v47 = vpop.f32.mrf.mxu1 }
 0x9c1   :  { %v1820_v48 = vpop.f32.mrf.mxu1 }
 0x9c3   :  { %v8708_v0 = vpop.f32.mrf.mxu1 }
 0x9c5   :  { %v1823_v5 = vpop.f32.mrf.mxu1 }
 0x9c7   :  { %v8687_v23 = vpop.f32.mrf.mxu0 }
 0x9c8   :  { %v1829_v63 = vadd.f32 %v8707_v47, %v8687_v23  ;;  %v8985_v23 = vld [vmem:[#allocation17 + $0xb0] ss:$8 sps:$4 sm:$0xff]  }
 0x9c9   :  { %v1771_v27 = vpop.f32.mrf.mxu0  ;;  %v9009_v47 = vld [vmem:[#allocation17 + $0x170] ss:$8 sps:$4 sm:$0xff]  }
 0x9ca   :  { %v1821_v50 = vadd.f32 %v1820_v48, %v1771_v27  ;;  %v8993_v27 = vld [vmem:[#allocation17 + $0xa4] ss:$8 sps:$4 sm:$0xff]   ;;  %v9012_v48 = vld [vmem:[#allocation17 + $0x1d0] ss:$8 sps:$4 sm:$0xff]  }
 0x9cb   :  { %v8688_v18 = vpop.f32.mrf.mxu0 }
 0x9cc   :  { %v1832_v4 = vadd.f32 %v8708_v0, %v8688_v18  ;;  %v8991_v18 = vld [vmem:[#allocation17 + $0xa0] ss:$8 sps:$4 sm:$0xff]   ;;  %v9020_v0 = vld [vmem:[#allocation17 + $0x1c4] ss:$8 sps:$4 sm:$0xff]  }
 0x9cd   :  { %v1774_v19 = vpop.f32.mrf.mxu0 }
 0x9ce   :  { %v1824_v7 = vadd.f32 %v1823_v5, %v1774_v19  ;;  %v8999_v19 = vld [vmem:[#allocation17 + $0x94] ss:$8 sps:$4 sm:$0xff]   ;;  %v9024_v5 = vld [vmem:[#allocation17 + $0x1b0] ss:$8 sps:$4 sm:$0xff]  }
 0x9cf   :  { %v8715_v33 = vpop.f32.mrf.mxu0 }
 0x9d1   :  { %v1869_v34 = vpop.f32.mrf.mxu0 }
 0x9d3   :  { %v8716_v35 = vpop.f32.mrf.mxu0 }
 0x9d4   :  { %v1885_v41 = vpack.c.bf16 %v8716_v35, %v8715_v33  ;;  %v8997_v33 = vld [vmem:[#allocation17 + $0x90] ss:$8 sps:$4 sm:$0xff]   ;;  %v9002_v35 = vld [vmem:[#allocation17 + $0x84] ss:$8 sps:$4 sm:$0xff]  }
 0x9d5   :  { %v1872_v36 = vpop.f32.mrf.mxu0 }
 0x9d6   :  { %v1884_v37 = vpack.c.bf16 %v1872_v36, %v1869_v34  ;;  %v10225_v34 = vmov 0   ;;  %v9000_v36 = vld [vmem:[#allocation17 + $0x80] ss:$8 sps:$4 sm:$0xff]  }
 0x9d8   :  { %8733 = vmatprep.mubr.bf16.mxu0 %v1884_v37 }
 0x9d9   :  { %8734 = vmatmul.mubr.bf16.vlgmr.msra.gmra.mxu0 %v1885_v41 }
 0x9da   :  { %2275 = vmatpush1.bf16.msra.mxu0 %v8955_v39  ;;  %2306 = vmatprep.mubr.bf16.mxu0 %v10225_v34 }
 0x9db   :  { %2276 = vmatprep.subr.bf16.mxu0 %v8960_v43  ;;  %v9005_v43 = vld [vmem:[#allocation17 + $0x1f4] ss:$8 sps:$4 sm:$0xff]  }
 0x9de   :  { %2277 = vmatpush1.bf16.msra.mxu0 %v8958_v44 }
 0x9df   :  { %2278 = vmatprep.subr.bf16.mxu0 %v8966_v51 }
 0x9e2   :  { %2279 = vmatpush1.bf16.msra.mxu0 %v8964_v52  ;;  %v7707_v52 = vld [vmem:[%s11822_s24 + $0xc] sm:$0xf] }
 0x9e3   :  { %2280 = vmatprep.subr.bf16.mxu0 %v8972_v53 }
 0x9e6   :  { %2281 = vmatpush1.bf16.msra.mxu0 %v8970_v54  ;;  %v9003_v54 = vld [vmem:[#allocation17 + $0x1f0] ss:$8 sps:$4 sm:$0xff]  }
 0x9e7   :  { %2282 = vmatprep.subr.bf16.mxu0 %v8978_v55 }
 0x9ea   :  { %2283 = vmatpush1.bf16.msra.mxu0 %v8976_v56  ;;  %v9008_v56 = vld [vmem:[#allocation17 + $0x1e4] ss:$8 sps:$4 sm:$0xff]  }
 0x9eb   :  { %2284 = vmatprep.subr.bf16.mxu0 %v8984_v57 }
 0x9ee   :  { %2285 = vmatpush1.bf16.msra.mxu0 %v8982_v58  ;;  %v9006_v58 = vld [vmem:[#allocation17 + $0x1e0] ss:$8 sps:$4 sm:$0xff]  }
 0x9ef   :  { %2286 = vmatprep.subr.bf16.mxu0 %v8990_v61  ;;  %v9011_v61 = vld [vmem:[#allocation17 + $0x174] ss:$8 sps:$4 sm:$0xff]  }
 0x9f2   :  { %2287 = vmatpush1.bf16.msra.mxu0 %v8988_v62 }
 0x9f3   :  { %2288 = vmatprep.subr.bf16.mxu0 %v8996_v45  ;;  %v9014_v45 = vld [vmem:[#allocation17 + $0x1d4] ss:$8 sps:$4 sm:$0xff]  }
 0x9f6   :  { %2289 = vmatpush1.bf16.msra.mxu0 %v8994_v46  ;;  %v7689_v46 = vld [vmem:[%s11822_s24 + $0x8] sm:$0xf] }
 0x9f7   :  { %8761 = vmatprep.subr.bf16.mxu0 %v10223_v38 }
 0xa99   :  { %v8735_v1 = vpop.f32.mrf.mxu0 }
 0xa9a   :  { %v1937_v2 = vadd.f32 %v8735_v1, %v1829_v63  ;;  %v9017_v63 = vld [vmem:[#allocation17 + $0x164] ss:$8 sps:$4 sm:$0xff]   ;;  %v9015_v1 = vld [vmem:[#allocation17 + $0x160] ss:$8 sps:$4 sm:$0xff]  }
 0xa9b   :  { %v1920_v3 = vpop.f32.mrf.mxu0 }
 0xa9c   :  { %v1941_v8 = vadd.f32 %v10598_v49, %v1937_v2  ;;  %v1935_v9 = vadd.f32 %v1920_v3, %v1821_v50  ;;  %v9018_v2 = vld [vmem:[#allocation17 + $0x1c0] ss:$8 sps:$4 sm:$0xff]   ;;  %v9023_v3 = vld [vmem:[#allocation17 + $0x154] ss:$8 sps:$4 sm:$0xff]  }
 0xa9d   :  { %v8736_v6 = vpop.f32.mrf.mxu0  ;;  %v9026_v50 = vld [vmem:[#allocation17 + $0x1b4] ss:$8 sps:$4 sm:$0xff]  }
 0xa9e   :  { %v1938_v10 = vadd.f32 %v8736_v6, %v1832_v4  ;;  %v1945_v22 = vmax.f32 %v1941_v8, 0.0  ;;  %v1939_v24 = vadd.f32 %v10598_v49, %v1935_v9  ;;  %v9021_v4 = vld [vmem:[#allocation17 + $0x150] ss:$8 sps:$4 sm:$0xff]   ;;  %v9029_v6 = vld [vmem:[#allocation17 + $0x144] ss:$8 sps:$4 sm:$0xff]  }
 0xa9f   :  { %v1923_v11 = vpop.f32.mrf.mxu0  ;;  %v9027_v8 = vld [vmem:[#allocation17 + $0x140] ss:$8 sps:$4 sm:$0xff]  }
 0xaa0   :  { %v1942_v20 = vadd.f32 %v10598_v49, %v1938_v10  ;;  %v1936_v21 = vadd.f32 %v1923_v11, %v1824_v7  ;;  %v1943_v42 = vmax.f32 %v1939_v24, 0.0  ;;  %v9032_v7 = vld [vmem:[#allocation17 + $0x1a4] ss:$8 sps:$4 sm:$0xff]   ;;  %v9030_v9 = vld [vmem:[#allocation17 + $0x1a0] ss:$8 sps:$4 sm:$0xff]  }
 0xaa1   :  { %v9035_v10 = vld [vmem:[#allocation17 + $0x134] ss:$8 sps:$4 sm:$0xff]   ;;  %v9044_v24 = vld [vmem:[#allocation17 + $0x184] ss:$8 sps:$4 sm:$0xff]  }
 0xaa2   :  { %v1946_v25 = vmax.f32 %v1942_v20, 0.0  ;;  %v1940_v26 = vadd.f32 %v10598_v49, %v1936_v21  ;;  %v8963_v49 = vld [vmem:[#allocation17 + $0xf4] ss:$8 sps:$4 sm:$0xff]   ;;  %v9033_v20 = vld [vmem:[#allocation17 + $0x130] ss:$8 sps:$4 sm:$0xff]  }
 0xaa3   :  { %v9038_v11 = vld [vmem:[#allocation17 + $0x194] ss:$8 sps:$4 sm:$0xff]   ;;  %v9036_v21 = vld [vmem:[#allocation17 + $0x190] ss:$8 sps:$4 sm:$0xff]  }
 0xaa4   :  { %v10654_v28 = vpack.c.bf16 %v1946_v25, %v1945_v22  ;;  %v1944_v29 = vmax.f32 %v1940_v26, 0.0  ;;  %v9041_v22 = vld [vmem:[#allocation17 + $0x124] ss:$8 sps:$4 sm:$0xff]   ;;  %v9039_v25 = vld [vmem:[#allocation17 + $0x120] ss:$8 sps:$4 sm:$0xff]  }
 0xaa5   :  { %v9042_v26 = vld [vmem:[#allocation17 + $0x180] ss:$8 sps:$4 sm:$0xff]  }
 0xaa6   :  { %8738 = vmatpush3.bf16.msra.mxu1 %v10654_v28  ;;  %v10658_v59 = vpack.c.bf16 %v1944_v29, %v1943_v42  ;;  %v9047_v29 = vld [vmem:[#allocation17 + $0x114] ss:$8 sps:$4 sm:$0xff]   ;;  %v9045_v42 = vld [vmem:[#allocation17 + $0x110] ss:$8 sps:$4 sm:$0xff]  }
 0xaa7   :  { %8739 = vmatprep.subr.bf16.mxu1 %v10223_v38 }
 0xaaa   :  { %8740 = vmatpush3.bf16.msra.mxu1 %v10658_v59 }
 0xaab   :  { %8745 = vmatprep.subr.bf16.mxu1 %v10223_v38 }
 0xaad   :  { %8742 = vmatmul.mubr.msk.bf16.vlgmr.msra.gmra.mxu1 %vm560_vm1, %v1947_v60  ;;  %v9050_v60 = vld [vmem:[#allocation17 + $0x104] ss:$8 sps:$4 sm:$0xff]  }
 0xaae   :  { %8746 = vmatpush3.bf16.msra.mxu1 %v10654_v28  ;;  %8749 = vmatprep.mubr.msk.bf16.mxu1 %vm10224_vm2, %v10223_v38 }
 0xaaf   :  { %8747 = vmatprep.subr.bf16.mxu1 %v10223_v38 }
 0xab2   :  { %8748 = vmatpush3.bf16.msra.mxu1 %v10658_v59 }
 0xab3   :  { %2153 = vmatprep.subr.bf16.mxu1 %v8963_v49  ;;  %v9048_v49 = vld [vmem:[#allocation17 + $0x100] ss:$8 sps:$4 sm:$0xff]  }
 0xab5   :  { %8750 = vmatmul.mubr.msk.bf16.vlgmr.msra.gmra.mxu1 %vm560_vm1, %v7655_v12 }
 0xab6   :  { %2154 = vmatpush1.bf16.msra.mxu1 %v8961_v13  ;;  %2185 = vmatprep.mubr.bf16.mxu1 %v10225_v34 }
 0xab7   :  { %2155 = vmatprep.subr.bf16.mxu1 %v8969_v14 }
 0xaba   :  { %2156 = vmatpush1.bf16.msra.mxu1 %v8967_v15 }
 0xabb   :  { %2157 = vmatprep.subr.bf16.mxu1 %v8975_v16 }
 0xabe   :  { %2158 = vmatpush1.bf16.msra.mxu1 %v8973_v17 }
 0xabf   :  { %2159 = vmatprep.subr.bf16.mxu1 %v8981_v30 }
 0xac2   :  { %2160 = vmatpush1.bf16.msra.mxu1 %v8979_v31 }
 0xac3   :  { %2161 = vmatprep.subr.bf16.mxu1 %v8987_v32 }
 0xac6   :  { %2162 = vmatpush1.bf16.msra.mxu1 %v8985_v23 }
 0xac7   :  { %2163 = vmatprep.subr.bf16.mxu1 %v8993_v27 }
 0xaca   :  { %2164 = vmatpush1.bf16.msra.mxu1 %v8991_v18 }
 0xacb   :  { %2165 = vmatprep.subr.bf16.mxu1 %v8999_v19 }
 0xace   :  { %2166 = vmatpush1.bf16.msra.mxu1 %v8997_v33  ;;  %v9053_v33 = vld [vmem:[#allocation17 + $0x2f4] ss:$8 sps:$4 sm:$0xff]  }
 0xacf   :  { %2167 = vmatprep.subr.bf16.mxu1 %v9002_v35 }
 0xad2   :  { %2168 = vmatpush1.bf16.msra.mxu1 %v9000_v36 }
 0xad3   :  { %8753 = vmatprep.subr.bf16.mxu1 %v10223_v38 }
 0xb6d   :  { %v1987_v37 = vpop.f32.mrf.mxu1 }
 0xb6e   :  { %v2009_v41 = vpack.c.bf16 %v1987_v37, %v1987_v37 }
 0xb6f   :  { %v8743_v39 = vpop.f32.mrf.mxu1 }
 0xb70   :  { %2307 = vmatmul.mubr.bf16.vlgmr.msra.gmra.mxu0 %v2009_v41  ;;  %v7743_v41 = vld [vmem:[%s11822_s24 + $0x14] sm:$0xf] }
 0xb71   :  { %8762 = vmatpush3.bf16.msra.mxu0 %v10654_v28  ;;  %v1990_v40 = vpop.f32.mrf.mxu1  ;;  %8765 = vmatprep.mubr.msk.bf16.mxu0 %vm10224_vm2, %v10223_v38 }
 0xb72   :  { %8763 = vmatprep.subr.bf16.mxu0 %v10223_v38  ;;  %v9051_v40 = vld [vmem:[#allocation17 + $0x2f0] ss:$8 sps:$4 sm:$0xff]  }
 0xb73   :  { %v8744_v44 = vpop.f32.mrf.mxu1 }
 0xb74   :  { %v9056_v44 = vld [vmem:[#allocation17 + $0x2e4] ss:$8 sps:$4 sm:$0xff]  }
 0xb75   :  { %8764 = vmatpush3.bf16.msra.mxu0 %v10658_v59  ;;  %v2049_v51 = vpop.f32.mrf.mxu1 }
 0xb76   :  { %v2072_v53 = vpack.c.bf16 %v2049_v51, %v2049_v51  ;;  %2644 = vmatprep.subr.bf16.mxu0 %v9005_v43 }
 0xb77   :  { %v8751_v55 = vpop.f32.mrf.mxu1 }
 0xb78   :  { %2186 = vmatmul.mubr.bf16.vlgmr.msra.gmra.mxu1 %v2072_v53  ;;  %8766 = vmatmul.mubr.msk.bf16.vlgmr.msra.gmra.mxu0 %vm560_vm1, %v7707_v52  ;;  %v9054_v52 = vld [vmem:[#allocation17 + $0x2e0] ss:$8 sps:$4 sm:$0xff]   ;;  %v9059_v53 = vld [vmem:[#allocation17 + $0x274] ss:$8 sps:$4 sm:$0xff]  }
 0xb79   :  { %8754 = vmatpush3.bf16.msra.mxu1 %v10654_v28  ;;  %v2052_v57 = vpop.f32.mrf.mxu1  ;;  %8757 = vmatprep.mubr.msk.bf16.mxu1 %vm10224_vm2, %v10223_v38  ;;  %v9062_v55 = vld [vmem:[#allocation17 + $0x2d4] ss:$8 sps:$4 sm:$0xff]  }
 0xb7a   :  { %8755 = vmatprep.subr.bf16.mxu1 %v10223_v38  ;;  %2645 = vmatpush1.bf16.msra.mxu0 %v9003_v54  ;;  %v9057_v57 = vld [vmem:[#allocation17 + $0x270] ss:$8 sps:$4 sm:$0xff]  }
 0xb7b   :  { %v8752_v62 = vpop.f32.mrf.mxu1  ;;  %2646 = vmatprep.subr.bf16.mxu0 %v9008_v56  ;;  %2676 = vmatprep.mubr.bf16.mxu0 %v10225_v34  ;;  %v7725_v56 = vld [vmem:[%s11822_s24 + $0x10] sm:$0xf] }
 0xb7c   :  { %v9068_v62 = vld [vmem:[#allocation17 + $0x2c4] ss:$8 sps:$4 sm:$0xff]  }
 0xb7d   :  { %8756 = vmatpush3.bf16.msra.mxu1 %v10658_v59 }
 0xb7e   :  { %2647 = vmatpush1.bf16.msra.mxu0 %v9006_v58  ;;  %2458 = vmatprep.subr.bf16.mxu1 %v9011_v61  ;;  %v9060_v58 = vld [vmem:[#allocation17 + $0x2d0] ss:$8 sps:$4 sm:$0xff]   ;;  %v9065_v61 = vld [vmem:[#allocation17 + $0x264] ss:$8 sps:$4 sm:$0xff]  }
 0xb7f   :  { %2648 = vmatprep.subr.bf16.mxu0 %v9014_v45  ;;  %v9063_v45 = vld [vmem:[#allocation17 + $0x260] ss:$8 sps:$4 sm:$0xff]  }
 0xb80   :  { %8758 = vmatmul.mubr.msk.bf16.vlgmr.msra.gmra.mxu1 %vm560_vm1, %v7689_v46  ;;  %v9066_v46 = vld [vmem:[#allocation17 + $0x2c0] ss:$8 sps:$4 sm:$0xff]  }
 0xb81   :  { %2459 = vmatpush1.bf16.msra.mxu1 %v9009_v47  ;;  %2490 = vmatprep.mubr.bf16.mxu1 %v10225_v34  ;;  %v9071_v47 = vld [vmem:[#allocation17 + $0x254] ss:$8 sps:$4 sm:$0xff]  }
 0xb82   :  { %2649 = vmatpush1.bf16.msra.mxu0 %v9012_v48  ;;  %2460 = vmatprep.subr.bf16.mxu1 %v9017_v63  ;;  %v9074_v48 = vld [vmem:[#allocation17 + $0x2b4] ss:$8 sps:$4 sm:$0xff]   ;;  %v9069_v63 = vld [vmem:[#allocation17 + $0x250] ss:$8 sps:$4 sm:$0xff]  }
 0xb83   :  { %2650 = vmatprep.subr.bf16.mxu0 %v9020_v0  ;;  %v9072_v0 = vld [vmem:[#allocation17 + $0x2b0] ss:$8 sps:$4 sm:$0xff]  }
 0xb85   :  { %2461 = vmatpush1.bf16.msra.mxu1 %v9015_v1  ;;  %v9077_v1 = vld [vmem:[#allocation17 + $0x244] ss:$8 sps:$4 sm:$0xff]  }
 0xb86   :  { %2651 = vmatpush1.bf16.msra.mxu0 %v9018_v2  ;;  %2462 = vmatprep.subr.bf16.mxu1 %v9023_v3  ;;  %v9080_v2 = vld [vmem:[#allocation17 + $0x2a4] ss:$8 sps:$4 sm:$0xff]   ;;  %v9075_v3 = vld [vmem:[#allocation17 + $0x240] ss:$8 sps:$4 sm:$0xff]  }
 0xb87   :  { %2652 = vmatprep.subr.bf16.mxu0 %v9026_v50  ;;  %v9078_v50 = vld [vmem:[#allocation17 + $0x2a0] ss:$8 sps:$4 sm:$0xff]  }
 0xb89   :  { %2463 = vmatpush1.bf16.msra.mxu1 %v9021_v4  ;;  %v9083_v4 = vld [vmem:[#allocation17 + $0x234] ss:$8 sps:$4 sm:$0xff]  }
 0xb8a   :  { %2653 = vmatpush1.bf16.msra.mxu0 %v9024_v5  ;;  %2464 = vmatprep.subr.bf16.mxu1 %v9029_v6  ;;  %v9086_v5 = vld [vmem:[#allocation17 + $0x294] ss:$8 sps:$4 sm:$0xff]   ;;  %v9081_v6 = vld [vmem:[#allocation17 + $0x230] ss:$8 sps:$4 sm:$0xff]  }
 0xb8b   :  { %2654 = vmatprep.subr.bf16.mxu0 %v9032_v7  ;;  %v9084_v7 = vld [vmem:[#allocation17 + $0x290] ss:$8 sps:$4 sm:$0xff]  }
 0xb8d   :  { %2465 = vmatpush1.bf16.msra.mxu1 %v9027_v8  ;;  %v9089_v8 = vld [vmem:[#allocation17 + $0x224] ss:$8 sps:$4 sm:$0xff]  }
 0xb8e   :  { %2655 = vmatpush1.bf16.msra.mxu0 %v9030_v9  ;;  %2466 = vmatprep.subr.bf16.mxu1 %v9035_v10  ;;  %v9092_v9 = vld [vmem:[#allocation17 + $0x284] ss:$8 sps:$4 sm:$0xff]   ;;  %v9087_v10 = vld [vmem:[#allocation17 + $0x220] ss:$8 sps:$4 sm:$0xff]  }
 0xb8f   :  { %2656 = vmatprep.subr.bf16.mxu0 %v9038_v11  ;;  %v9090_v11 = vld [vmem:[#allocation17 + $0x280] ss:$8 sps:$4 sm:$0xff]  }
 0xb91   :  { %2467 = vmatpush1.bf16.msra.mxu1 %v9033_v20  ;;  %v9095_v20 = vld [vmem:[#allocation17 + $0x214] ss:$8 sps:$4 sm:$0xff]  }
 0xb92   :  { %2657 = vmatpush1.bf16.msra.mxu0 %v9036_v21  ;;  %2468 = vmatprep.subr.bf16.mxu1 %v9041_v22  ;;  %v9093_v21 = vld [vmem:[#allocation17 + $0x210] ss:$8 sps:$4 sm:$0xff]   ;;  %v9098_v22 = vld [vmem:[#allocation17 + $0x204] ss:$8 sps:$4 sm:$0xff]  }
 0xb93   :  { %2658 = vmatprep.subr.bf16.mxu0 %v9044_v24  ;;  %v9096_v24 = vld [vmem:[#allocation17 + $0x200] ss:$8 sps:$4 sm:$0xff]  }
 0xb95   :  { %2469 = vmatpush1.bf16.msra.mxu1 %v9039_v25 }
 0xb96   :  { %2659 = vmatpush1.bf16.msra.mxu0 %v9042_v26  ;;  %2470 = vmatprep.subr.bf16.mxu1 %v9047_v29 }
 0xb97   :  { %8777 = vmatprep.subr.bf16.mxu0 %v10223_v38 }
 0xb99   :  { %2471 = vmatpush1.bf16.msra.mxu1 %v9045_v42 }
 0xb9a   :  { %2472 = vmatprep.subr.bf16.mxu1 %v9050_v60 }
 0xb9d   :  { %2473 = vmatpush1.bf16.msra.mxu1 %v9048_v49 }
 0xb9e   :  { %8769 = vmatprep.subr.bf16.mxu1 %v10223_v38 }
 0xc30   :  { %v2308_v12 = vpop.f32.mrf.mxu0 }
 0xc32   :  { %v2310_v13 = vpop.f32.mrf.mxu0 }
 0xc34   :  { %v2312_v14 = vpop.f32.mrf.mxu0 }
 0xc36   :  { %v2313_v15 = vpop.f32.mrf.mxu0 }
 0xc38   :  { %v2187_v16 = vpop.f32.mrf.mxu1  ;;  %v2540_v17 = vpop.f32.mrf.mxu0 }
 0xc39   :  { %v10700_v30 = vadd.f32 %v2308_v12, %v2187_v16  ;;  %v2563_v31 = vpack.c.bf16 %v2540_v17, %v2540_v17 }
 0xc3a   :  { %v2189_v32 = vpop.f32.mrf.mxu1  ;;  %v8767_v23 = vpop.f32.mrf.mxu0 }
 0xc3b   :  { %v10702_v27 = vadd.f32 %v2310_v13, %v2189_v32  ;;  %2677 = vmatmul.mubr.bf16.vlgmr.msra.gmra.mxu0 %v2563_v31  ;;  %v9101_v23 = vld [vmem:[#allocation17 + $0x3f4] ss:$8 sps:$4 sm:$0xff]  }
 0xc3c   :  { %8778 = vmatpush3.bf16.msra.mxu0 %v10654_v28  ;;  %v2191_v18 = vpop.f32.mrf.mxu1  ;;  %v2543_v19 = vpop.f32.mrf.mxu0  ;;  %8781 = vmatprep.mubr.msk.bf16.mxu0 %vm10224_vm2, %v10223_v38 }
 0xc3d   :  { %8779 = vmatprep.subr.bf16.mxu0 %v10223_v38 }
 0xc3e   :  { %v2192_v35 = vpop.f32.mrf.mxu1  ;;  %v8768_v36 = vpop.f32.mrf.mxu0 }
 0xc3f   :  { %v9099_v36 = vld [vmem:[#allocation17 + $0x3f0] ss:$8 sps:$4 sm:$0xff]  }
 0xc40   :  { %8780 = vmatpush3.bf16.msra.mxu0 %v10658_v59  ;;  %v2354_v37 = vpop.f32.mrf.mxu1 }
 0xc41   :  { %v2377_v39 = vpack.c.bf16 %v2354_v37, %v2354_v37  ;;  %3016 = vmatprep.subr.bf16.mxu0 %v9053_v33  ;;  %v7779_v33 = vld [vmem:[%s11822_s24 + $0x1c] sm:$0xf] }
 0xc42   :  { %v8759_v43 = vpop.f32.mrf.mxu1 }
 0xc43   :  { %2491 = vmatmul.mubr.bf16.vlgmr.msra.gmra.mxu1 %v2377_v39  ;;  %8782 = vmatmul.mubr.msk.bf16.vlgmr.msra.gmra.mxu0 %vm560_vm1, %v7743_v41  ;;  %v9104_v41 = vld [vmem:[#allocation17 + $0x3e4] ss:$8 sps:$4 sm:$0xff]   ;;  %v9107_v43 = vld [vmem:[#allocation17 + $0x374] ss:$8 sps:$4 sm:$0xff]  }
 0xc44   :  { %8770 = vmatpush3.bf16.msra.mxu1 %v10654_v28  ;;  %v2357_v51 = vpop.f32.mrf.mxu1  ;;  %8773 = vmatprep.mubr.msk.bf16.mxu1 %vm10224_vm2, %v10223_v38 }
 0xc45   :  { %8771 = vmatprep.subr.bf16.mxu1 %v10223_v38  ;;  %3017 = vmatpush1.bf16.msra.mxu0 %v9051_v40  ;;  %v9102_v40 = vld [vmem:[#allocation17 + $0x3e0] ss:$8 sps:$4 sm:$0xff]   ;;  %v9110_v51 = vld [vmem:[#allocation17 + $0x3d4] ss:$8 sps:$4 sm:$0xff]  }
 0xc46   :  { %v8760_v54 = vpop.f32.mrf.mxu1  ;;  %3018 = vmatprep.subr.bf16.mxu0 %v9056_v44  ;;  %3048 = vmatprep.mubr.bf16.mxu0 %v10225_v34 }
 0xc47   :  { %v9108_v54 = vld [vmem:[#allocation17 + $0x3d0] ss:$8 sps:$4 sm:$0xff]  }
 0xc48   :  { %8772 = vmatpush3.bf16.msra.mxu1 %v10658_v59 }
 0xc49   :  { %3019 = vmatpush1.bf16.msra.mxu0 %v9054_v52  ;;  %2830 = vmatprep.subr.bf16.mxu1 %v9059_v53  ;;  %v7761_v52 = vld [vmem:[%s11822_s24 + $0x18] sm:$0xf] }
 0xc4a   :  { %3020 = vmatprep.subr.bf16.mxu0 %v9062_v55  ;;  %v9105_v53 = vld [vmem:[#allocation17 + $0x370] ss:$8 sps:$4 sm:$0xff]   ;;  %v9113_v55 = vld [vmem:[#allocation17 + $0x364] ss:$8 sps:$4 sm:$0xff]  }
 0xc4b   :  { %8774 = vmatmul.mubr.msk.bf16.vlgmr.msra.gmra.mxu1 %vm560_vm1, %v7725_v56  ;;  %v9116_v56 = vld [vmem:[#allocation17 + $0x3c4] ss:$8 sps:$4 sm:$0xff]  }
 0xc4c   :  { %2831 = vmatpush1.bf16.msra.mxu1 %v9057_v57  ;;  %2862 = vmatprep.mubr.bf16.mxu1 %v10225_v34  ;;  %v9111_v57 = vld [vmem:[#allocation17 + $0x360] ss:$8 sps:$4 sm:$0xff]  }
 0xc4d   :  { %3021 = vmatpush1.bf16.msra.mxu0 %v9060_v58  ;;  %2832 = vmatprep.subr.bf16.mxu1 %v9065_v61  ;;  %v9114_v58 = vld [vmem:[#allocation17 + $0x3c0] ss:$8 sps:$4 sm:$0xff]   ;;  %v9119_v61 = vld [vmem:[#allocation17 + $0x354] ss:$8 sps:$4 sm:$0xff]  }
 0xc4e   :  { %3022 = vmatprep.subr.bf16.mxu0 %v9068_v62  ;;  %v9122_v62 = vld [vmem:[#allocation17 + $0x3b4] ss:$8 sps:$4 sm:$0xff]  }
 0xc50   :  { %2833 = vmatpush1.bf16.msra.mxu1 %v9063_v45  ;;  %v9117_v45 = vld [vmem:[#allocation17 + $0x350] ss:$8 sps:$4 sm:$0xff]  }
 0xc51   :  { %3023 = vmatpush1.bf16.msra.mxu0 %v9066_v46  ;;  %2834 = vmatprep.subr.bf16.mxu1 %v9071_v47  ;;  %v9120_v46 = vld [vmem:[#allocation17 + $0x3b0] ss:$8 sps:$4 sm:$0xff]   ;;  %v9125_v47 = vld [vmem:[#allocation17 + $0x344] ss:$8 sps:$4 sm:$0xff]  }
 0xc52   :  { %3024 = vmatprep.subr.bf16.mxu0 %v9074_v48  ;;  %v9128_v48 = vld [vmem:[#allocation17 + $0x3a4] ss:$8 sps:$4 sm:$0xff]  }
 0xc54   :  { %2835 = vmatpush1.bf16.msra.mxu1 %v9069_v63  ;;  %v9123_v63 = vld [vmem:[#allocation17 + $0x340] ss:$8 sps:$4 sm:$0xff]  }
 0xc55   :  { %3025 = vmatpush1.bf16.msra.mxu0 %v9072_v0  ;;  %2836 = vmatprep.subr.bf16.mxu1 %v9077_v1  ;;  %v9126_v0 = vld [vmem:[#allocation17 + $0x3a0] ss:$8 sps:$4 sm:$0xff]   ;;  %v9131_v1 = vld [vmem:[#allocation17 + $0x334] ss:$8 sps:$4 sm:$0xff]  }
 0xc56   :  { %3026 = vmatprep.subr.bf16.mxu0 %v9080_v2  ;;  %v9134_v2 = vld [vmem:[#allocation17 + $0x394] ss:$8 sps:$4 sm:$0xff]  }
 0xc58   :  { %2837 = vmatpush1.bf16.msra.mxu1 %v9075_v3  ;;  %v9129_v3 = vld [vmem:[#allocation17 + $0x330] ss:$8 sps:$4 sm:$0xff]  }
 0xc59   :  { %3027 = vmatpush1.bf16.msra.mxu0 %v9078_v50  ;;  %2838 = vmatprep.subr.bf16.mxu1 %v9083_v4  ;;  %v9132_v50 = vld [vmem:[#allocation17 + $0x390] ss:$8 sps:$4 sm:$0xff]   ;;  %v9137_v4 = vld [vmem:[#allocation17 + $0x324] ss:$8 sps:$4 sm:$0xff]  }
 0xc5a   :  { %3028 = vmatprep.subr.bf16.mxu0 %v9086_v5  ;;  %v9140_v5 = vld [vmem:[#allocation17 + $0x384] ss:$8 sps:$4 sm:$0xff]  }
 0xc5c   :  { %2839 = vmatpush1.bf16.msra.mxu1 %v9081_v6  ;;  %v9135_v6 = vld [vmem:[#allocation17 + $0x320] ss:$8 sps:$4 sm:$0xff]  }
 0xc5d   :  { %3029 = vmatpush1.bf16.msra.mxu0 %v9084_v7  ;;  %2840 = vmatprep.subr.bf16.mxu1 %v9089_v8  ;;  %v9138_v7 = vld [vmem:[#allocation17 + $0x380] ss:$8 sps:$4 sm:$0xff]   ;;  %v9143_v8 = vld [vmem:[#allocation17 + $0x314] ss:$8 sps:$4 sm:$0xff]  }
 0xc5e   :  { %3030 = vmatprep.subr.bf16.mxu0 %v9092_v9  ;;  %v9141_v9 = vld [vmem:[#allocation17 + $0x310] ss:$8 sps:$4 sm:$0xff]  }
 0xc60   :  { %2841 = vmatpush1.bf16.msra.mxu1 %v9087_v10  ;;  %v9146_v10 = vld [vmem:[#allocation17 + $0x304] ss:$8 sps:$4 sm:$0xff]  }
 0xc61   :  { %3031 = vmatpush1.bf16.msra.mxu0 %v9090_v11  ;;  %2842 = vmatprep.subr.bf16.mxu1 %v9095_v20  ;;  %v9144_v11 = vld [vmem:[#allocation17 + $0x300] ss:$8 sps:$4 sm:$0xff]  }
 0xc62   :  { %8793 = vmatprep.subr.bf16.mxu0 %v10223_v38 }
 0xc64   :  { %2843 = vmatpush1.bf16.msra.mxu1 %v9093_v21 }
 0xc65   :  { %2844 = vmatprep.subr.bf16.mxu1 %v9098_v22 }
 0xc68   :  { %2845 = vmatpush1.bf16.msra.mxu1 %v9096_v24 }
 0xc69   :  { %8785 = vmatprep.subr.bf16.mxu1 %v10223_v38 }
 0xcfb   :  { %v2678_v25 = vpop.f32.mrf.mxu0 }
 0xcfd   :  { %v2680_v26 = vpop.f32.mrf.mxu0 }
 0xcff   :  { %v2682_v29 = vpop.f32.mrf.mxu0 }
 0xd01   :  { %v2683_v42 = vpop.f32.mrf.mxu0 }
 0xd03   :  { %v2492_v60 = vpop.f32.mrf.mxu1  ;;  %v2912_v49 = vpop.f32.mrf.mxu0 }
 0xd04   :  { %v2499_v12 = vadd.f32 %v2492_v60, %v10700_v30  ;;  %v2935_v13 = vpack.c.bf16 %v2912_v49, %v2912_v49 }
 0xd05   :  { %v2494_v14 = vpop.f32.mrf.mxu1  ;;  %v8783_v15 = vpop.f32.mrf.mxu0 }
 0xd06   :  { %v2500_v16 = vadd.f32 %v2494_v14, %v10702_v27  ;;  %3049 = vmatmul.mubr.bf16.vlgmr.msra.gmra.mxu0 %v2935_v13  ;;  %v10728_v17 = vadd.f32 %v2678_v25, %v2499_v12 }
 0xd07   :  { %8794 = vmatpush3.bf16.msra.mxu0 %v10654_v28  ;;  %v2496_v31 = vpop.f32.mrf.mxu1  ;;  %v2915_v32 = vpop.f32.mrf.mxu0  ;;  %8797 = vmatprep.mubr.msk.bf16.mxu0 %vm10224_vm2, %v10223_v38 }
 0xd08   :  { %8795 = vmatprep.subr.bf16.mxu0 %v10223_v38  ;;  %v10734_v18 = vadd.f32 %v2680_v26, %v2500_v16  ;;  %v9149_v16 = vld [vmem:[#allocation17 + $0x4f4] ss:$8 sps:$4 sm:$0xff]  }
 0xd09   :  { %v2497_v30 = vpop.f32.mrf.mxu1  ;;  %v8784_v19 = vpop.f32.mrf.mxu0 }
 0xd0a   :  { %v9147_v19 = vld [vmem:[#allocation17 + $0x4f0] ss:$8 sps:$4 sm:$0xff]  }
 0xd0b   :  { %8796 = vmatpush3.bf16.msra.mxu0 %v10658_v59  ;;  %v2726_v27 = vpop.f32.mrf.mxu1 }
 0xd0c   :  { %v2749_v35 = vpack.c.bf16 %v2726_v27, %v2726_v27  ;;  %3388 = vmatprep.subr.bf16.mxu0 %v9101_v23 }
 0xd0d   :  { %v8775_v37 = vpop.f32.mrf.mxu1 }
 0xd0e   :  { %2863 = vmatmul.mubr.bf16.vlgmr.msra.gmra.mxu1 %v2749_v35  ;;  %8798 = vmatmul.mubr.msk.bf16.vlgmr.msra.gmra.mxu0 %vm560_vm1, %v7779_v33  ;;  %v9152_v33 = vld [vmem:[#allocation17 + $0x4e4] ss:$8 sps:$4 sm:$0xff]   ;;  %v9155_v37 = vld [vmem:[#allocation17 + $0x474] ss:$8 sps:$4 sm:$0xff]  }
 0xd0f   :  { %8786 = vmatpush3.bf16.msra.mxu1 %v10654_v28  ;;  %v2729_v39 = vpop.f32.mrf.mxu1  ;;  %8789 = vmatprep.mubr.msk.bf16.mxu1 %vm10224_vm2, %v10223_v38 }
 0xd10   :  { %8787 = vmatprep.subr.bf16.mxu1 %v10223_v38  ;;  %3389 = vmatpush1.bf16.msra.mxu0 %v9099_v36  ;;  %v9150_v36 = vld [vmem:[#allocation17 + $0x4e0] ss:$8 sps:$4 sm:$0xff]   ;;  %v9158_v39 = vld [vmem:[#allocation17 + $0x4d4] ss:$8 sps:$4 sm:$0xff]  }
 0xd11   :  { %v8776_v44 = vpop.f32.mrf.mxu1  ;;  %3390 = vmatprep.subr.bf16.mxu0 %v9104_v41  ;;  %3420 = vmatprep.mubr.bf16.mxu0 %v10225_v34 }
 0xd12   :  { %v9156_v44 = vld [vmem:[#allocation17 + $0x4d0] ss:$8 sps:$4 sm:$0xff]  }
 0xd13   :  { %8788 = vmatpush3.bf16.msra.mxu1 %v10658_v59 }
 0xd14   :  { %3391 = vmatpush1.bf16.msra.mxu0 %v9102_v40  ;;  %3202 = vmatprep.subr.bf16.mxu1 %v9107_v43  ;;  %v7797_v40 = vld [vmem:[%s11822_s24 + $0x20] sm:$0xf]  ;;  %v9153_v43 = vld [vmem:[#allocation17 + $0x470] ss:$8 sps:$4 sm:$0xff]  }
 0xd15   :  { %3392 = vmatprep.subr.bf16.mxu0 %v9110_v51  ;;  %v9161_v51 = vld [vmem:[#allocation17 + $0x464] ss:$8 sps:$4 sm:$0xff]  }
 0xd16   :  { %8790 = vmatmul.mubr.msk.bf16.vlgmr.msra.gmra.mxu1 %vm560_vm1, %v7761_v52  ;;  %v9164_v52 = vld [vmem:[#allocation17 + $0x4c4] ss:$8 sps:$4 sm:$0xff]  }
 0xd17   :  { %3203 = vmatpush1.bf16.msra.mxu1 %v9105_v53  ;;  %3234 = vmatprep.mubr.bf16.mxu1 %v10225_v34  ;;  %v9159_v53 = vld [vmem:[#allocation17 + $0x460] ss:$8 sps:$4 sm:$0xff]  }
 0xd18   :  { %3393 = vmatpush1.bf16.msra.mxu0 %v9108_v54  ;;  %3204 = vmatprep.subr.bf16.mxu1 %v9113_v55  ;;  %v9162_v54 = vld [vmem:[#allocation17 + $0x4c0] ss:$8 sps:$4 sm:$0xff]   ;;  %v9167_v55 = vld [vmem:[#allocation17 + $0x454] ss:$8 sps:$4 sm:$0xff]  }
 0xd19   :  { %3394 = vmatprep.subr.bf16.mxu0 %v9116_v56  ;;  %v9170_v56 = vld [vmem:[#allocation17 + $0x4b4] ss:$8 sps:$4 sm:$0xff]  }
 0xd1b   :  { %3205 = vmatpush1.bf16.msra.mxu1 %v9111_v57  ;;  %v9165_v57 = vld [vmem:[#allocation17 + $0x450] ss:$8 sps:$4 sm:$0xff]  }
 0xd1c   :  { %3395 = vmatpush1.bf16.msra.mxu0 %v9114_v58  ;;  %3206 = vmatprep.subr.bf16.mxu1 %v9119_v61  ;;  %v9168_v58 = vld [vmem:[#allocation17 + $0x4b0] ss:$8 sps:$4 sm:$0xff]   ;;  %v9173_v61 = vld [vmem:[#allocation17 + $0x444] ss:$8 sps:$4 sm:$0xff]  }
 0xd1d   :  { %3396 = vmatprep.subr.bf16.mxu0 %v9122_v62  ;;  %v9176_v62 = vld [vmem:[#allocation17 + $0x4a4] ss:$8 sps:$4 sm:$0xff]  }
 0xd1f   :  { %3207 = vmatpush1.bf16.msra.mxu1 %v9117_v45  ;;  %v9171_v45 = vld [vmem:[#allocation17 + $0x440] ss:$8 sps:$4 sm:$0xff]  }
 0xd20   :  { %3397 = vmatpush1.bf16.msra.mxu0 %v9120_v46  ;;  %3208 = vmatprep.subr.bf16.mxu1 %v9125_v47  ;;  %v9174_v46 = vld [vmem:[#allocation17 + $0x4a0] ss:$8 sps:$4 sm:$0xff]   ;;  %v9179_v47 = vld [vmem:[#allocation17 + $0x434] ss:$8 sps:$4 sm:$0xff]  }
 0xd21   :  { %3398 = vmatprep.subr.bf16.mxu0 %v9128_v48  ;;  %v9182_v48 = vld [vmem:[#allocation17 + $0x494] ss:$8 sps:$4 sm:$0xff]  }
 0xd23   :  { %3209 = vmatpush1.bf16.msra.mxu1 %v9123_v63  ;;  %v9177_v63 = vld [vmem:[#allocation17 + $0x430] ss:$8 sps:$4 sm:$0xff]  }
 0xd24   :  { %3399 = vmatpush1.bf16.msra.mxu0 %v9126_v0  ;;  %3210 = vmatprep.subr.bf16.mxu1 %v9131_v1  ;;  %v9180_v0 = vld [vmem:[#allocation17 + $0x490] ss:$8 sps:$4 sm:$0xff]   ;;  %v9185_v1 = vld [vmem:[#allocation17 + $0x424] ss:$8 sps:$4 sm:$0xff]  }
 0xd25   :  { %3400 = vmatprep.subr.bf16.mxu0 %v9134_v2  ;;  %v9188_v2 = vld [vmem:[#allocation17 + $0x484] ss:$8 sps:$4 sm:$0xff]  }
 0xd27   :  { %3211 = vmatpush1.bf16.msra.mxu1 %v9129_v3  ;;  %v9183_v3 = vld [vmem:[#allocation17 + $0x420] ss:$8 sps:$4 sm:$0xff]  }
 0xd28   :  { %3401 = vmatpush1.bf16.msra.mxu0 %v9132_v50  ;;  %3212 = vmatprep.subr.bf16.mxu1 %v9137_v4  ;;  %v9186_v50 = vld [vmem:[#allocation17 + $0x480] ss:$8 sps:$4 sm:$0xff]   ;;  %v9191_v4 = vld [vmem:[#allocation17 + $0x414] ss:$8 sps:$4 sm:$0xff]  }
 0xd29   :  { %3402 = vmatprep.subr.bf16.mxu0 %v9140_v5  ;;  %v9189_v5 = vld [vmem:[#allocation17 + $0x410] ss:$8 sps:$4 sm:$0xff]  }
 0xd2b   :  { %3213 = vmatpush1.bf16.msra.mxu1 %v9135_v6  ;;  %v9194_v6 = vld [vmem:[#allocation17 + $0x404] ss:$8 sps:$4 sm:$0xff]  }
 0xd2c   :  { %3403 = vmatpush1.bf16.msra.mxu0 %v9138_v7  ;;  %3214 = vmatprep.subr.bf16.mxu1 %v9143_v8  ;;  %v9192_v7 = vld [vmem:[#allocation17 + $0x400] ss:$8 sps:$4 sm:$0xff]  }
 0xd2d   :  { %8809 = vmatprep.subr.bf16.mxu0 %v10223_v38 }
 0xd2f   :  { %3215 = vmatpush1.bf16.msra.mxu1 %v9141_v9 }
 0xd30   :  { %3216 = vmatprep.subr.bf16.mxu1 %v9146_v10 }
 0xd33   :  { %3217 = vmatpush1.bf16.msra.mxu1 %v9144_v11 }
 0xd34   :  { %8801 = vmatprep.subr.bf16.mxu1 %v10223_v38 }
 0xdc6   :  { %v3050_v20 = vpop.f32.mrf.mxu0 }
 0xdc8   :  { %v3052_v21 = vpop.f32.mrf.mxu0 }
 0xdca   :  { %v3054_v22 = vpop.f32.mrf.mxu0 }
 0xdcc   :  { %v3055_v24 = vpop.f32.mrf.mxu0 }
 0xdce   :  { %v2864_v25 = vpop.f32.mrf.mxu1  ;;  %v3284_v26 = vpop.f32.mrf.mxu0 }
 0xdcf   :  { %v2871_v29 = vadd.f32 %v2864_v25, %v10728_v17  ;;  %v3307_v42 = vpack.c.bf16 %v3284_v26, %v3284_v26 }
 0xdd0   :  { %v2866_v60 = vpop.f32.mrf.mxu1  ;;  %v8799_v49 = vpop.f32.mrf.mxu0 }
 0xdd1   :  { %v2872_v12 = vadd.f32 %v2866_v60, %v10734_v18  ;;  %3421 = vmatmul.mubr.bf16.vlgmr.msra.gmra.mxu0 %v3307_v42  ;;  %v10756_v13 = vadd.f32 %v3050_v20, %v2871_v29  ;;  %v7815_v18 = vld [vmem:[%s11822_s24 + $0x24] sm:$0xf] }
 0xdd2   :  { %8810 = vmatpush3.bf16.msra.mxu0 %v10654_v28  ;;  %v2868_v14 = vpop.f32.mrf.mxu1  ;;  %v3287_v15 = vpop.f32.mrf.mxu0  ;;  %8813 = vmatprep.mubr.msk.bf16.mxu0 %vm10224_vm2, %v10223_v38 }
 0xdd3   :  { %8811 = vmatprep.subr.bf16.mxu0 %v10223_v38  ;;  %v10762_v31 = vadd.f32 %v3052_v21, %v2872_v12  ;;  %v9197_v12 = vld [vmem:[#allocation17 + $0x5f4] ss:$8 sps:$4 sm:$0xff]  }
 0xdd4   :  { %v2869_v17 = vpop.f32.mrf.mxu1  ;;  %v8800_v32 = vpop.f32.mrf.mxu0 }
 0xdd5   :  { %v9195_v32 = vld [vmem:[#allocation17 + $0x5f0] ss:$8 sps:$4 sm:$0xff]  }
 0xdd6   :  { %8812 = vmatpush3.bf16.msra.mxu0 %v10658_v59  ;;  %v3098_v23 = vpop.f32.mrf.mxu1 }
 0xdd7   :  { %v3121_v30 = vpack.c.bf16 %v3098_v23, %v3098_v23  ;;  %3760 = vmatprep.subr.bf16.mxu0 %v9149_v16 }
 0xdd8   :  { %v8791_v27 = vpop.f32.mrf.mxu1 }
 0xdd9   :  { %3235 = vmatmul.mubr.bf16.vlgmr.msra.gmra.mxu1 %v3121_v30  ;;  %8814 = vmatmul.mubr.msk.bf16.vlgmr.msra.gmra.mxu0 %vm560_vm1, %v7815_v18  ;;  %v9200_v18 = vld [vmem:[#allocation17 + $0x5e4] ss:$8 sps:$4 sm:$0xff]   ;;  %v9203_v27 = vld [vmem:[#allocation17 + $0x574] ss:$8 sps:$4 sm:$0xff]  }
 0xdda   :  { %8802 = vmatpush3.bf16.msra.mxu1 %v10654_v28  ;;  %v3101_v35 = vpop.f32.mrf.mxu1  ;;  %8805 = vmatprep.mubr.msk.bf16.mxu1 %vm10224_vm2, %v10223_v38 }
 0xddb   :  { %8803 = vmatprep.subr.bf16.mxu1 %v10223_v38  ;;  %3761 = vmatpush1.bf16.msra.mxu0 %v9147_v19  ;;  %v9198_v19 = vld [vmem:[#allocation17 + $0x5e0] ss:$8 sps:$4 sm:$0xff]   ;;  %v9206_v35 = vld [vmem:[#allocation17 + $0x5d4] ss:$8 sps:$4 sm:$0xff]  }
 0xddc   :  { %v8792_v41 = vpop.f32.mrf.mxu1  ;;  %3762 = vmatprep.subr.bf16.mxu0 %v9152_v33  ;;  %3792 = vmatprep.mubr.bf16.mxu0 %v10225_v34 }
 0xddd   :  { %v9204_v41 = vld [vmem:[#allocation17 + $0x5d0] ss:$8 sps:$4 sm:$0xff]  }
 0xdde   :  { %8804 = vmatpush3.bf16.msra.mxu1 %v10658_v59 }
 0xddf   :  { %3763 = vmatpush1.bf16.msra.mxu0 %v9150_v36  ;;  %3574 = vmatprep.subr.bf16.mxu1 %v9155_v37  ;;  %v7833_v36 = vld [vmem:[%s11822_s24 + $0x28] sm:$0xf]  ;;  %v9201_v37 = vld [vmem:[#allocation17 + $0x570] ss:$8 sps:$4 sm:$0xff]  }
 0xde0   :  { %3764 = vmatprep.subr.bf16.mxu0 %v9158_v39  ;;  %v9209_v39 = vld [vmem:[#allocation17 + $0x564] ss:$8 sps:$4 sm:$0xff]  }
 0xde1   :  { %8806 = vmatmul.mubr.msk.bf16.vlgmr.msra.gmra.mxu1 %vm560_vm1, %v7797_v40  ;;  %v9212_v40 = vld [vmem:[#allocation17 + $0x5c4] ss:$8 sps:$4 sm:$0xff]  }
 0xde2   :  { %3575 = vmatpush1.bf16.msra.mxu1 %v9153_v43  ;;  %3606 = vmatprep.mubr.bf16.mxu1 %v10225_v34  ;;  %v9207_v43 = vld [vmem:[#allocation17 + $0x560] ss:$8 sps:$4 sm:$0xff]  }
 0xde3   :  { %3765 = vmatpush1.bf16.msra.mxu0 %v9156_v44  ;;  %3576 = vmatprep.subr.bf16.mxu1 %v9161_v51  ;;  %v9210_v44 = vld [vmem:[#allocation17 + $0x5c0] ss:$8 sps:$4 sm:$0xff]   ;;  %v9215_v51 = vld [vmem:[#allocation17 + $0x554] ss:$8 sps:$4 sm:$0xff]  }
 0xde4   :  { %3766 = vmatprep.subr.bf16.mxu0 %v9164_v52  ;;  %v9218_v52 = vld [vmem:[#allocation17 + $0x5b4] ss:$8 sps:$4 sm:$0xff]  }
 0xde6   :  { %3577 = vmatpush1.bf16.msra.mxu1 %v9159_v53  ;;  %v9213_v53 = vld [vmem:[#allocation17 + $0x550] ss:$8 sps:$4 sm:$0xff]  }
 0xde7   :  { %3767 = vmatpush1.bf16.msra.mxu0 %v9162_v54  ;;  %3578 = vmatprep.subr.bf16.mxu1 %v9167_v55  ;;  %v9216_v54 = vld [vmem:[#allocation17 + $0x5b0] ss:$8 sps:$4 sm:$0xff]   ;;  %v9221_v55 = vld [vmem:[#allocation17 + $0x544] ss:$8 sps:$4 sm:$0xff]  }
 0xde8   :  { %3768 = vmatprep.subr.bf16.mxu0 %v9170_v56  ;;  %v9224_v56 = vld [vmem:[#allocation17 + $0x5a4] ss:$8 sps:$4 sm:$0xff]  }
 0xdea   :  { %3579 = vmatpush1.bf16.msra.mxu1 %v9165_v57  ;;  %v9219_v57 = vld [vmem:[#allocation17 + $0x540] ss:$8 sps:$4 sm:$0xff]  }
 0xdeb   :  { %3769 = vmatpush1.bf16.msra.mxu0 %v9168_v58  ;;  %3580 = vmatprep.subr.bf16.mxu1 %v9173_v61  ;;  %v9222_v58 = vld [vmem:[#allocation17 + $0x5a0] ss:$8 sps:$4 sm:$0xff]   ;;  %v9227_v61 = vld [vmem:[#allocation17 + $0x534] ss:$8 sps:$4 sm:$0xff]  }
 0xdec   :  { %3770 = vmatprep.subr.bf16.mxu0 %v9176_v62  ;;  %v9230_v62 = vld [vmem:[#allocation17 + $0x594] ss:$8 sps:$4 sm:$0xff]  }
 0xdee   :  { %3581 = vmatpush1.bf16.msra.mxu1 %v9171_v45  ;;  %v9225_v45 = vld [vmem:[#allocation17 + $0x530] ss:$8 sps:$4 sm:$0xff]  }
 0xdef   :  { %3771 = vmatpush1.bf16.msra.mxu0 %v9174_v46  ;;  %3582 = vmatprep.subr.bf16.mxu1 %v9179_v47  ;;  %v9228_v46 = vld [vmem:[#allocation17 + $0x590] ss:$8 sps:$4 sm:$0xff]   ;;  %v9233_v47 = vld [vmem:[#allocation17 + $0x524] ss:$8 sps:$4 sm:$0xff]  }
 0xdf0   :  { %3772 = vmatprep.subr.bf16.mxu0 %v9182_v48  ;;  %v9236_v48 = vld [vmem:[#allocation17 + $0x584] ss:$8 sps:$4 sm:$0xff]  }
 0xdf2   :  { %3583 = vmatpush1.bf16.msra.mxu1 %v9177_v63  ;;  %v9231_v63 = vld [vmem:[#allocation17 + $0x520] ss:$8 sps:$4 sm:$0xff]  }
 0xdf3   :  { %3773 = vmatpush1.bf16.msra.mxu0 %v9180_v0  ;;  %3584 = vmatprep.subr.bf16.mxu1 %v9185_v1  ;;  %v9234_v0 = vld [vmem:[#allocation17 + $0x580] ss:$8 sps:$4 sm:$0xff]   ;;  %v9239_v1 = vld [vmem:[#allocation17 + $0x514] ss:$8 sps:$4 sm:$0xff]  }
 0xdf4   :  { %3774 = vmatprep.subr.bf16.mxu0 %v9188_v2  ;;  %v9237_v2 = vld [vmem:[#allocation17 + $0x510] ss:$8 sps:$4 sm:$0xff]  }
 0xdf6   :  { %3585 = vmatpush1.bf16.msra.mxu1 %v9183_v3  ;;  %v9242_v3 = vld [vmem:[#allocation17 + $0x504] ss:$8 sps:$4 sm:$0xff]  }
 0xdf7   :  { %3775 = vmatpush1.bf16.msra.mxu0 %v9186_v50  ;;  %3586 = vmatprep.subr.bf16.mxu1 %v9191_v4  ;;  %v9240_v50 = vld [vmem:[#allocation17 + $0x500] ss:$8 sps:$4 sm:$0xff]  }
 0xdf8   :  { %8825 = vmatprep.subr.bf16.mxu0 %v10223_v38 }
 0xdfa   :  { %3587 = vmatpush1.bf16.msra.mxu1 %v9189_v5 }
 0xdfb   :  { %3588 = vmatprep.subr.bf16.mxu1 %v9194_v6 }
 0xdfe   :  { %3589 = vmatpush1.bf16.msra.mxu1 %v9192_v7 }
 0xdff   :  { %8817 = vmatprep.subr.bf16.mxu1 %v10223_v38 }
 0xe91   :  { %v3422_v8 = vpop.f32.mrf.mxu0 }
 0xe93   :  { %v3424_v9 = vpop.f32.mrf.mxu0 }
 0xe95   :  { %v3426_v10 = vpop.f32.mrf.mxu0 }
 0xe97   :  { %v3427_v11 = vpop.f32.mrf.mxu0 }
 0xe99   :  { %v3236_v20 = vpop.f32.mrf.mxu1  ;;  %v3656_v21 = vpop.f32.mrf.mxu0 }
 0xe9a   :  { %v3243_v22 = vadd.f32 %v3236_v20, %v10756_v13  ;;  %v3679_v24 = vpack.c.bf16 %v3656_v21, %v3656_v21 }
 0xe9b   :  { %v3238_v25 = vpop.f32.mrf.mxu1  ;;  %v8815_v26 = vpop.f32.mrf.mxu0 }
 0xe9c   :  { %v3244_v29 = vadd.f32 %v3238_v25, %v10762_v31  ;;  %3793 = vmatmul.mubr.bf16.vlgmr.msra.gmra.mxu0 %v3679_v24  ;;  %v10784_v42 = vadd.f32 %v3422_v8, %v3243_v22  ;;  %v7851_v31 = vld [vmem:[%s11822_s24 + $0x2c] sm:$0xf] }
 0xe9d   :  { %8826 = vmatpush3.bf16.msra.mxu0 %v10654_v28  ;;  %v3240_v60 = vpop.f32.mrf.mxu1  ;;  %v3659_v49 = vpop.f32.mrf.mxu0  ;;  %8829 = vmatprep.mubr.msk.bf16.mxu0 %vm10224_vm2, %v10223_v38 }
 0xe9e   :  { %8827 = vmatprep.subr.bf16.mxu0 %v10223_v38  ;;  %v10790_v14 = vadd.f32 %v3424_v9, %v3244_v29  ;;  %v9245_v29 = vld [vmem:[#allocation17 + $0x6f4] ss:$8 sps:$4 sm:$0xff]  }
 0xe9f   :  { %v3241_v13 = vpop.f32.mrf.mxu1  ;;  %v8816_v15 = vpop.f32.mrf.mxu0 }
 0xea0   :  { %v9243_v15 = vld [vmem:[#allocation17 + $0x6f0] ss:$8 sps:$4 sm:$0xff]  }
 0xea1   :  { %8828 = vmatpush3.bf16.msra.mxu0 %v10658_v59  ;;  %v3470_v16 = vpop.f32.mrf.mxu1 }
 0xea2   :  { %v3493_v17 = vpack.c.bf16 %v3470_v16, %v3470_v16  ;;  %4132 = vmatprep.subr.bf16.mxu0 %v9197_v12 }
 0xea3   :  { %v8807_v23 = vpop.f32.mrf.mxu1 }
 0xea4   :  { %3607 = vmatmul.mubr.bf16.vlgmr.msra.gmra.mxu1 %v3493_v17  ;;  %8830 = vmatmul.mubr.msk.bf16.vlgmr.msra.gmra.mxu0 %vm560_vm1, %v7851_v31  ;;  %v9248_v31 = vld [vmem:[#allocation17 + $0x6e4] ss:$8 sps:$4 sm:$0xff]   ;;  %v9251_v23 = vld [vmem:[#allocation17 + $0x674] ss:$8 sps:$4 sm:$0xff]  }
 0xea5   :  { %8818 = vmatpush3.bf16.msra.mxu1 %v10654_v28  ;;  %v3473_v30 = vpop.f32.mrf.mxu1  ;;  %8821 = vmatprep.mubr.msk.bf16.mxu1 %vm10224_vm2, %v10223_v38 }
 0xea6   :  { %8819 = vmatprep.subr.bf16.mxu1 %v10223_v38  ;;  %4133 = vmatpush1.bf16.msra.mxu0 %v9195_v32  ;;  %v9246_v32 = vld [vmem:[#allocation17 + $0x6e0] ss:$8 sps:$4 sm:$0xff]   ;;  %v9254_v30 = vld [vmem:[#allocation17 + $0x6d4] ss:$8 sps:$4 sm:$0xff]  }
 0xea7   :  { %v8808_v33 = vpop.f32.mrf.mxu1  ;;  %4134 = vmatprep.subr.bf16.mxu0 %v9200_v18  ;;  %4164 = vmatprep.mubr.bf16.mxu0 %v10225_v34 }
 0xea8   :  { %v9252_v33 = vld [vmem:[#allocation17 + $0x6d0] ss:$8 sps:$4 sm:$0xff]  }
 0xea9   :  { %8820 = vmatpush3.bf16.msra.mxu1 %v10658_v59 }
 0xeaa   :  { %4135 = vmatpush1.bf16.msra.mxu0 %v9198_v19  ;;  %3946 = vmatprep.subr.bf16.mxu1 %v9203_v27  ;;  %v7869_v19 = vld [vmem:[%s11822_s24 + $0x30] sm:$0xf] }
 0xeab   :  { %4136 = vmatprep.subr.bf16.mxu0 %v9206_v35  ;;  %v9249_v27 = vld [vmem:[#allocation17 + $0x670] ss:$8 sps:$4 sm:$0xff]   ;;  %v9257_v35 = vld [vmem:[#allocation17 + $0x664] ss:$8 sps:$4 sm:$0xff]  }
 0xeac   :  { %8822 = vmatmul.mubr.msk.bf16.vlgmr.msra.gmra.mxu1 %vm560_vm1, %v7833_v36  ;;  %v9260_v36 = vld [vmem:[#allocation17 + $0x6c4] ss:$8 sps:$4 sm:$0xff]  }
 0xead   :  { %3947 = vmatpush1.bf16.msra.mxu1 %v9201_v37  ;;  %3978 = vmatprep.mubr.bf16.mxu1 %v10225_v34  ;;  %v9255_v37 = vld [vmem:[#allocation17 + $0x660] ss:$8 sps:$4 sm:$0xff]  }
 0xeae   :  { %4137 = vmatpush1.bf16.msra.mxu0 %v9204_v41  ;;  %3948 = vmatprep.subr.bf16.mxu1 %v9209_v39  ;;  %v9258_v41 = vld [vmem:[#allocation17 + $0x6c0] ss:$8 sps:$4 sm:$0xff]   ;;  %v9263_v39 = vld [vmem:[#allocation17 + $0x654] ss:$8 sps:$4 sm:$0xff]  }
 0xeaf   :  { %4138 = vmatprep.subr.bf16.mxu0 %v9212_v40  ;;  %v9266_v40 = vld [vmem:[#allocation17 + $0x6b4] ss:$8 sps:$4 sm:$0xff]  }
 0xeb1   :  { %3949 = vmatpush1.bf16.msra.mxu1 %v9207_v43  ;;  %v9261_v43 = vld [vmem:[#allocation17 + $0x650] ss:$8 sps:$4 sm:$0xff]  }
 0xeb2   :  { %4139 = vmatpush1.bf16.msra.mxu0 %v9210_v44  ;;  %3950 = vmatprep.subr.bf16.mxu1 %v9215_v51  ;;  %v9264_v44 = vld [vmem:[#allocation17 + $0x6b0] ss:$8 sps:$4 sm:$0xff]   ;;  %v9269_v51 = vld [vmem:[#allocation17 + $0x644] ss:$8 sps:$4 sm:$0xff]  }
 0xeb3   :  { %4140 = vmatprep.subr.bf16.mxu0 %v9218_v52  ;;  %v9272_v52 = vld [vmem:[#allocation17 + $0x6a4] ss:$8 sps:$4 sm:$0xff]  }
 0xeb5   :  { %3951 = vmatpush1.bf16.msra.mxu1 %v9213_v53  ;;  %v9267_v53 = vld [vmem:[#allocation17 + $0x640] ss:$8 sps:$4 sm:$0xff]  }
 0xeb6   :  { %4141 = vmatpush1.bf16.msra.mxu0 %v9216_v54  ;;  %3952 = vmatprep.subr.bf16.mxu1 %v9221_v55  ;;  %v9270_v54 = vld [vmem:[#allocation17 + $0x6a0] ss:$8 sps:$4 sm:$0xff]   ;;  %v9275_v55 = vld [vmem:[#allocation17 + $0x634] ss:$8 sps:$4 sm:$0xff]  }
 0xeb7   :  { %4142 = vmatprep.subr.bf16.mxu0 %v9224_v56  ;;  %v9278_v56 = vld [vmem:[#allocation17 + $0x694] ss:$8 sps:$4 sm:$0xff]  }
 0xeb9   :  { %3953 = vmatpush1.bf16.msra.mxu1 %v9219_v57  ;;  %v9273_v57 = vld [vmem:[#allocation17 + $0x630] ss:$8 sps:$4 sm:$0xff]  }
 0xeba   :  { %4143 = vmatpush1.bf16.msra.mxu0 %v9222_v58  ;;  %3954 = vmatprep.subr.bf16.mxu1 %v9227_v61  ;;  %v9276_v58 = vld [vmem:[#allocation17 + $0x690] ss:$8 sps:$4 sm:$0xff]   ;;  %v9281_v61 = vld [vmem:[#allocation17 + $0x624] ss:$8 sps:$4 sm:$0xff]  }
 0xebb   :  { %4144 = vmatprep.subr.bf16.mxu0 %v9230_v62  ;;  %v9284_v62 = vld [vmem:[#allocation17 + $0x684] ss:$8 sps:$4 sm:$0xff]  }
 0xebd   :  { %3955 = vmatpush1.bf16.msra.mxu1 %v9225_v45  ;;  %v9279_v45 = vld [vmem:[#allocation17 + $0x620] ss:$8 sps:$4 sm:$0xff]  }
 0xebe   :  { %4145 = vmatpush1.bf16.msra.mxu0 %v9228_v46  ;;  %3956 = vmatprep.subr.bf16.mxu1 %v9233_v47  ;;  %v9282_v46 = vld [vmem:[#allocation17 + $0x680] ss:$8 sps:$4 sm:$0xff]   ;;  %v9287_v47 = vld [vmem:[#allocation17 + $0x614] ss:$8 sps:$4 sm:$0xff]  }
 0xebf   :  { %4146 = vmatprep.subr.bf16.mxu0 %v9236_v48  ;;  %v9285_v48 = vld [vmem:[#allocation17 + $0x610] ss:$8 sps:$4 sm:$0xff]  }
 0xec1   :  { %3957 = vmatpush1.bf16.msra.mxu1 %v9231_v63  ;;  %v9290_v63 = vld [vmem:[#allocation17 + $0x604] ss:$8 sps:$4 sm:$0xff]  }
 0xec2   :  { %4147 = vmatpush1.bf16.msra.mxu0 %v9234_v0  ;;  %3958 = vmatprep.subr.bf16.mxu1 %v9239_v1  ;;  %v9288_v0 = vld [vmem:[#allocation17 + $0x600] ss:$8 sps:$4 sm:$0xff]  }
 0xec3   :  { %8841 = vmatprep.subr.bf16.mxu0 %v10223_v38 }
 0xec5   :  { %3959 = vmatpush1.bf16.msra.mxu1 %v9237_v2 }
 0xec6   :  { %3960 = vmatprep.subr.bf16.mxu1 %v9242_v3 }
 0xec9   :  { %3961 = vmatpush1.bf16.msra.mxu1 %v9240_v50 }
 0xeca   :  { %8833 = vmatprep.subr.bf16.mxu1 %v10223_v38 }
 0xf5c   :  { %v3794_v4 = vpop.f32.mrf.mxu0 }
 0xf5e   :  { %v3796_v5 = vpop.f32.mrf.mxu0 }
 0xf60   :  { %v3798_v6 = vpop.f32.mrf.mxu0 }
 0xf62   :  { %v3799_v7 = vpop.f32.mrf.mxu0 }
 0xf64   :  { %v3608_v8 = vpop.f32.mrf.mxu1  ;;  %v4028_v9 = vpop.f32.mrf.mxu0 }
 0xf65   :  { %v3615_v10 = vadd.f32 %v3608_v8, %v10784_v42  ;;  %v4051_v11 = vpack.c.bf16 %v4028_v9, %v4028_v9 }
 0xf66   :  { %v3610_v20 = vpop.f32.mrf.mxu1  ;;  %v8831_v21 = vpop.f32.mrf.mxu0 }
 0xf67   :  { %v3616_v22 = vadd.f32 %v3610_v20, %v10790_v14  ;;  %4165 = vmatmul.mubr.bf16.vlgmr.msra.gmra.mxu0 %v4051_v11  ;;  %v10812_v24 = vadd.f32 %v3794_v4, %v3615_v10  ;;  %v7887_v14 = vld [vmem:[%s11822_s24 + $0x34] sm:$0xf] }
 0xf68   :  { %8842 = vmatpush3.bf16.msra.mxu0 %v10654_v28  ;;  %v3612_v25 = vpop.f32.mrf.mxu1  ;;  %v4031_v26 = vpop.f32.mrf.mxu0  ;;  %8845 = vmatprep.mubr.msk.bf16.mxu0 %vm10224_vm2, %v10223_v38 }
 0xf69   :  { %8843 = vmatprep.subr.bf16.mxu0 %v10223_v38  ;;  %v10818_v60 = vadd.f32 %v3796_v5, %v3616_v22  ;;  %v9293_v22 = vld [vmem:[#allocation17 + $0x7f4] ss:$8 sps:$4 sm:$0xff]  }
 0xf6a   :  { %v3613_v42 = vpop.f32.mrf.mxu1  ;;  %v8832_v49 = vpop.f32.mrf.mxu0 }
 0xf6b   :  { %v9291_v49 = vld [vmem:[#allocation17 + $0x7f0] ss:$8 sps:$4 sm:$0xff]  }
 0xf6c   :  { %8844 = vmatpush3.bf16.msra.mxu0 %v10658_v59  ;;  %v3842_v12 = vpop.f32.mrf.mxu1 }
 0xf6d   :  { %v3865_v13 = vpack.c.bf16 %v3842_v12, %v3842_v12  ;;  %4504 = vmatprep.subr.bf16.mxu0 %v9245_v29 }
 0xf6e   :  { %v8823_v16 = vpop.f32.mrf.mxu1 }
 0xf6f   :  { %3979 = vmatmul.mubr.bf16.vlgmr.msra.gmra.mxu1 %v3865_v13  ;;  %8846 = vmatmul.mubr.msk.bf16.vlgmr.msra.gmra.mxu0 %vm560_vm1, %v7887_v14  ;;  %v9299_v14 = vld [vmem:[#allocation17 + $0x7e4] ss:$8 sps:$4 sm:$0xff]   ;;  %v9297_v16 = vld [vmem:[#allocation17 + $0x7e0] ss:$8 sps:$4 sm:$0xff]  }
 0xf70   :  { %8834 = vmatpush3.bf16.msra.mxu1 %v10654_v28  ;;  %v3845_v17 = vpop.f32.mrf.mxu1  ;;  %8837 = vmatprep.mubr.msk.bf16.mxu1 %vm10224_vm2, %v10223_v38 }
 0xf71   :  { %8835 = vmatprep.subr.bf16.mxu1 %v10223_v38  ;;  %4505 = vmatpush1.bf16.msra.mxu0 %v9243_v15  ;;  %v9296_v15 = vld [vmem:[#allocation17 + $0x774] ss:$8 sps:$4 sm:$0xff]  }
 0xf72   :  { %v8824_v18 = vpop.f32.mrf.mxu1  ;;  %4506 = vmatprep.subr.bf16.mxu0 %v9248_v31  ;;  %4536 = vmatprep.mubr.bf16.mxu0 %v10225_v34  ;;  %v9305_v17 = vld [vmem:[#allocation17 + $0x7d4] ss:$8 sps:$4 sm:$0xff]  }
 0xf73   :  { %v9303_v18 = vld [vmem:[#allocation17 + $0x7d0] ss:$8 sps:$4 sm:$0xff]  }
 0xf74   :  { %8836 = vmatpush3.bf16.msra.mxu1 %v10658_v59 }
 0xf75   :  { %4507 = vmatpush1.bf16.msra.mxu0 %v9246_v32  ;;  %4318 = vmatprep.subr.bf16.mxu1 %v9251_v23  ;;  %v9294_v32 = vld [vmem:[#allocation17 + $0x770] ss:$8 sps:$4 sm:$0xff]   ;;  %v9302_v23 = vld [vmem:[#allocation17 + $0x764] ss:$8 sps:$4 sm:$0xff]  }
 0xf76   :  { %4508 = vmatprep.subr.bf16.mxu0 %v9254_v30  ;;  %v9300_v30 = vld [vmem:[#allocation17 + $0x760] ss:$8 sps:$4 sm:$0xff]  }
 0xf77   :  { %8838 = vmatmul.mubr.msk.bf16.vlgmr.msra.gmra.mxu1 %vm560_vm1, %v7869_v19  ;;  %v9309_v19 = vld [vmem:[#allocation17 + $0x7c0] ss:$8 sps:$4 sm:$0xff]  }
 0xf78   :  { %4319 = vmatpush1.bf16.msra.mxu1 %v9249_v27  ;;  %4350 = vmatprep.mubr.bf16.mxu1 %v10225_v34  ;;  %v9317_v27 = vld [vmem:[#allocation17 + $0x7b4] ss:$8 sps:$4 sm:$0xff]  }
 0xf79   :  { %4509 = vmatpush1.bf16.msra.mxu0 %v9252_v33  ;;  %4320 = vmatprep.subr.bf16.mxu1 %v9257_v35  ;;  %v9306_v33 = vld [vmem:[#allocation17 + $0x750] ss:$8 sps:$4 sm:$0xff]   ;;  %v9314_v35 = vld [vmem:[#allocation17 + $0x744] ss:$8 sps:$4 sm:$0xff]  }
 0xf7a   :  { %4510 = vmatprep.subr.bf16.mxu0 %v9260_v36  ;;  %v9315_v36 = vld [vmem:[#allocation17 + $0x7b0] ss:$8 sps:$4 sm:$0xff]  }
 0xf7c   :  { %4321 = vmatpush1.bf16.msra.mxu1 %v9255_v37  ;;  %v9323_v37 = vld [vmem:[#allocation17 + $0x7a4] ss:$8 sps:$4 sm:$0xff]  }
 0xf7d   :  { %4511 = vmatpush1.bf16.msra.mxu0 %v9258_v41  ;;  %4322 = vmatprep.subr.bf16.mxu1 %v9263_v39  ;;  %v9312_v41 = vld [vmem:[#allocation17 + $0x740] ss:$8 sps:$4 sm:$0xff]   ;;  %v9320_v39 = vld [vmem:[#allocation17 + $0x734] ss:$8 sps:$4 sm:$0xff]  }
 0xf7e   :  { %4512 = vmatprep.subr.bf16.mxu0 %v9266_v40  ;;  %v9318_v40 = vld [vmem:[#allocation17 + $0x730] ss:$8 sps:$4 sm:$0xff]  }
 0xf80   :  { %4323 = vmatpush1.bf16.msra.mxu1 %v9261_v43  ;;  %v9324_v43 = vld [vmem:[#allocation17 + $0x720] ss:$8 sps:$4 sm:$0xff]  }
 0xf81   :  { %4513 = vmatpush1.bf16.msra.mxu0 %v9264_v44  ;;  %4324 = vmatprep.subr.bf16.mxu1 %v9269_v51  ;;  %v9326_v44 = vld [vmem:[#allocation17 + $0x724] ss:$8 sps:$4 sm:$0xff]   ;;  %v9329_v51 = vld [vmem:[#allocation17 + $0x794] ss:$8 sps:$4 sm:$0xff]  }
 0xf82   :  { %4514 = vmatprep.subr.bf16.mxu0 %v9272_v52  ;;  %v9327_v52 = vld [vmem:[#allocation17 + $0x790] ss:$8 sps:$4 sm:$0xff]  }
 0xf84   :  { %4325 = vmatpush1.bf16.msra.mxu1 %v9267_v53  ;;  %v9332_v53 = vld [vmem:[#allocation17 + $0x714] ss:$8 sps:$4 sm:$0xff]  }
 0xf85   :  { %4515 = vmatpush1.bf16.msra.mxu0 %v9270_v54  ;;  %4326 = vmatprep.subr.bf16.mxu1 %v9275_v55  ;;  %v9335_v54 = vld [vmem:[#allocation17 + $0x784] ss:$8 sps:$4 sm:$0xff]   ;;  %v9330_v55 = vld [vmem:[#allocation17 + $0x710] ss:$8 sps:$4 sm:$0xff]  }
 0xf86   :  { %4516 = vmatprep.subr.bf16.mxu0 %v9278_v56  ;;  %v9333_v56 = vld [vmem:[#allocation17 + $0x780] ss:$8 sps:$4 sm:$0xff]  }
 0xf88   :  { %4327 = vmatpush1.bf16.msra.mxu1 %v9273_v57  ;;  %v9336_v57 = vld [vmem:[#allocation17 + $0x700] ss:$8 sps:$4 sm:$0xff]  }
 0xf89   :  { %4517 = vmatpush1.bf16.msra.mxu0 %v9276_v58  ;;  %4328 = vmatprep.subr.bf16.mxu1 %v9281_v61  ;;  %v9338_v58 = vld [vmem:[#allocation17 + $0x704] ss:$8 sps:$4 sm:$0xff]   ;;  %v9341_v61 = vld [vmem:[#allocation20 + $0x74] ss:$8 sps:$4 sm:$0xff]  }
 0xf8a   :  { %4518 = vmatprep.subr.bf16.mxu0 %v9284_v62 }
 0xf8c   :  { %4329 = vmatpush1.bf16.msra.mxu1 %v9279_v45 }
 0xf8d   :  { %4519 = vmatpush1.bf16.msra.mxu0 %v9282_v46  ;;  %4330 = vmatprep.subr.bf16.mxu1 %v9287_v47 }
 0xf8e   :  { %8857 = vmatprep.subr.bf16.mxu0 %v10223_v38 }
 0xf90   :  { %4331 = vmatpush1.bf16.msra.mxu1 %v9285_v48 }
 0xf91   :  { %4332 = vmatprep.subr.bf16.mxu1 %v9290_v63 }
 0xf94   :  { %4333 = vmatpush1.bf16.msra.mxu1 %v9288_v0 }
 0xf95   :  { %8849 = vmatprep.subr.bf16.mxu1 %v10223_v38 }
0x1027   :  { %v4166_v1 = vpop.f32.mrf.mxu0 }
0x1029   :  { %v4168_v2 = vpop.f32.mrf.mxu0 }
0x102b   :  { %v4170_v3 = vpop.f32.mrf.mxu0 }
0x102d   :  { %v4171_v50 = vpop.f32.mrf.mxu0 }
0x102e   :  { %v9339_v50 = vld [vmem:[#allocation20 + $0x70] ss:$8 sps:$4 sm:$0xff]  }
0x102f   :  { %v3980_v4 = vpop.f32.mrf.mxu1  ;;  %v4400_v5 = vpop.f32.mrf.mxu0 }
0x1030   :  { %v3987_v6 = vadd.f32 %v3980_v4, %v10812_v24  ;;  %v4423_v7 = vpack.c.bf16 %v4400_v5, %v4400_v5  ;;  %v9344_v5 = vld [vmem:[#allocation20 + $0x64] ss:$8 sps:$4 sm:$0xff]  }
0x1031   :  { %v3982_v8 = vpop.f32.mrf.mxu1  ;;  %v8847_v9 = vpop.f32.mrf.mxu0 }
0x1032   :  { %v3988_v10 = vadd.f32 %v3982_v8, %v10818_v60  ;;  %4537 = vmatmul.mubr.bf16.vlgmr.msra.gmra.mxu0 %v4423_v7  ;;  %v10840_v11 = vadd.f32 %v4166_v1, %v3987_v6  ;;  %v7923_v60 = vld [vmem:[%s11822_s24 + $0x3c] sm:$0xf] }
0x1033   :  { %8858 = vmatpush3.bf16.msra.mxu0 %v10654_v28  ;;  %v3984_v20 = vpop.f32.mrf.mxu1  ;;  %v4403_v21 = vpop.f32.mrf.mxu0  ;;  %8861 = vmatprep.mubr.msk.bf16.mxu0 %vm10224_vm2, %v10223_v38 }
0x1034   :  { %8859 = vmatprep.subr.bf16.mxu0 %v10223_v38  ;;  %v10846_v25 = vadd.f32 %v4168_v2, %v3988_v10  ;;  %v9342_v21 = vld [vmem:[#allocation20 + $0x60] ss:$8 sps:$4 sm:$0xff]  }
0x1035   :  { %v3985_v24 = vpop.f32.mrf.mxu1  ;;  %v8848_v26 = vpop.f32.mrf.mxu0 }
0x1037   :  { %8860 = vmatpush3.bf16.msra.mxu0 %v10658_v59  ;;  %v4214_v29 = vpop.f32.mrf.mxu1 }
0x1038   :  { %v4237_v42 = vpack.c.bf16 %v4214_v29, %v4214_v29  ;;  %4876 = vmatprep.subr.bf16.mxu0 %v9293_v22  ;;  %v9350_v29 = vld [vmem:[#allocation20 + $0x44] ss:$8 sps:$4 sm:$0xff]  }
0x1039   :  { %v8839_v12 = vpop.f32.mrf.mxu1 }
0x103a   :  { %4351 = vmatmul.mubr.bf16.vlgmr.msra.gmra.mxu1 %v4237_v42  ;;  %8862 = vmatmul.mubr.msk.bf16.vlgmr.msra.gmra.mxu0 %vm560_vm1, %v7923_v60  ;;  %v9353_v12 = vld [vmem:[#allocation20 + $0x34] ss:$8 sps:$4 sm:$0xff]  }
0x103b   :  { %8850 = vmatpush3.bf16.msra.mxu1 %v10654_v28  ;;  %v4217_v13 = vpop.f32.mrf.mxu1  ;;  %8853 = vmatprep.mubr.msk.bf16.mxu1 %vm10224_vm2, %v10223_v38  ;;  %v7905_v28 = vld [vmem:[%s11822_s24 + $0x38] sm:$0xf] }
0x103c   :  { %8851 = vmatprep.subr.bf16.mxu1 %v10223_v38  ;;  %4877 = vmatpush1.bf16.msra.mxu0 %v9291_v49  ;;  %v9311_v38 = vld [vmem:[#allocation17 + $0x7c4] ss:$8 sps:$4 sm:$0xff]  }
0x103d   :  { %v8840_v31 = vpop.f32.mrf.mxu1  ;;  %4878 = vmatprep.subr.bf16.mxu0 %v9299_v14  ;;  %4908 = vmatprep.mubr.bf16.mxu0 %v10225_v34  ;;  %v9348_v49 = vld [vmem:[#allocation20 + $0x40] ss:$8 sps:$4 sm:$0xff]   ;;  %v9351_v14 = vld [vmem:[#allocation20 + $0x30] ss:$8 sps:$4 sm:$0xff]   ;;  %v9356_v13 = vld [vmem:[#allocation20 + $0x24] ss:$8 sps:$4 sm:$0xff]  }
0x103e   :  { %v9357_v31 = vld [vmem:[#allocation20 + $0x10] ss:$8 sps:$4 sm:$0xff]  }
0x103f   :  { %8852 = vmatpush3.bf16.msra.mxu1 %v10658_v59  ;;  %v9308_v59 = vld [vmem:[#allocation17 + $0x754] ss:$8 sps:$4 sm:$0xff]  }
0x1040   :  { %4690 = vmatprep.subr.bf16.mxu1 %v9296_v15  ;;  %4879 = vmatpush1.bf16.msra.mxu0 %v9297_v16  ;;  %v9354_v15 = vld [vmem:[#allocation20 + $0x20] ss:$8 sps:$4 sm:$0xff]   ;;  %v9359_v16 = vld [vmem:[#allocation20 + $0x14] ss:$8 sps:$4 sm:$0xff]  }
0x1041   :  { %4880 = vmatprep.subr.bf16.mxu0 %v9305_v17  ;;  %v9362_v17 = vld [vmem:[#allocation20 + $0x4] ss:$8 sps:$4 sm:$0xff]  }
0x1042   :  { %8854 = vmatmul.mubr.msk.bf16.vlgmr.msra.gmra.mxu1 %vm560_vm1, %v7905_v28  ;;  %v9360_v28 = vld [vmem:[#allocation20] ss:$8 sps:$4 sm:$0xff]  }
0x1043   :  { %4691 = vmatpush1.bf16.msra.mxu1 %v9294_v32  ;;  %4722 = vmatprep.mubr.bf16.mxu1 %v10225_v34  ;;  %v9321_v34 = vld [vmem:[#allocation17 + $0x7a0] ss:$8 sps:$4 sm:$0xff]  }
0x1044   :  { %4692 = vmatprep.subr.bf16.mxu1 %v9302_v23  ;;  %4881 = vmatpush1.bf16.msra.mxu0 %v9303_v18  ;;  %v9365_v32 = vld [vmem:[#allocation20 + $0xf4] ss:$8 sps:$4 sm:$0xff]   ;;  %v9363_v23 = vld [vmem:[#allocation20 + $0xf0] ss:$8 sps:$4 sm:$0xff]   ;;  %v9368_v18 = vld [vmem:[#allocation20 + $0xe4] ss:$8 sps:$4 sm:$0xff]  }
0x1045   :  { %4882 = vmatprep.subr.bf16.mxu0 %v9311_v38  ;;  %v9366_v38 = vld [vmem:[#allocation20 + $0xe0] ss:$8 sps:$4 sm:$0xff]  }
0x1047   :  { %4693 = vmatpush1.bf16.msra.mxu1 %v9300_v30  ;;  %v9371_v30 = vld [vmem:[#allocation20 + $0xd4] ss:$8 sps:$4 sm:$0xff]  }
0x1048   :  { %4694 = vmatprep.subr.bf16.mxu1 %v9308_v59  ;;  %4883 = vmatpush1.bf16.msra.mxu0 %v9309_v19  ;;  %v9369_v59 = vld [vmem:[#allocation20 + $0xd0] ss:$8 sps:$4 sm:$0xff]   ;;  %v9374_v19 = vld [vmem:[#allocation20 + $0xc4] ss:$8 sps:$4 sm:$0xff]  }
0x1049   :  { %4884 = vmatprep.subr.bf16.mxu0 %v9317_v27  ;;  %v9372_v27 = vld [vmem:[#allocation20 + $0xc0] ss:$8 sps:$4 sm:$0xff]  }
0x104b   :  { %4695 = vmatpush1.bf16.msra.mxu1 %v9306_v33  ;;  %v9377_v33 = vld [vmem:[#allocation20 + $0xb4] ss:$8 sps:$4 sm:$0xff]  }
0x104c   :  { %4696 = vmatprep.subr.bf16.mxu1 %v9314_v35  ;;  %4885 = vmatpush1.bf16.msra.mxu0 %v9315_v36  ;;  %v9375_v35 = vld [vmem:[#allocation20 + $0xb0] ss:$8 sps:$4 sm:$0xff]   ;;  %v9380_v36 = vld [vmem:[#allocation20 + $0xa4] ss:$8 sps:$4 sm:$0xff]  }
0x104d   :  { %4886 = vmatprep.subr.bf16.mxu0 %v9323_v37  ;;  %v9378_v37 = vld [vmem:[#allocation20 + $0xa0] ss:$8 sps:$4 sm:$0xff]  }
0x104f   :  { %4697 = vmatpush1.bf16.msra.mxu1 %v9312_v41  ;;  %v9383_v41 = vld [vmem:[#allocation20 + $0x94] ss:$8 sps:$4 sm:$0xff]  }
0x1050   :  { %4698 = vmatprep.subr.bf16.mxu1 %v9320_v39  ;;  %4887 = vmatpush1.bf16.msra.mxu0 %v9321_v34  ;;  %v9381_v39 = vld [vmem:[#allocation20 + $0x90] ss:$8 sps:$4 sm:$0xff]   ;;  %v9384_v34 = vld [vmem:[#allocation20 + $0x80] ss:$8 sps:$4 sm:$0xff]  }
0x1051   :  { %4888 = vmatprep.subr.bf16.mxu0 %v9329_v51 }
0x1053   :  { %4699 = vmatpush1.bf16.msra.mxu1 %v9318_v40  ;;  %v9386_v40 = vld [vmem:[#allocation20 + $0x84] ss:$8 sps:$4 sm:$0xff]  }
0x1054   :  { %4700 = vmatprep.subr.bf16.mxu1 %v9326_v44  ;;  %4889 = vmatpush1.bf16.msra.mxu0 %v9327_v52 }
0x1055   :  { %4890 = vmatprep.subr.bf16.mxu0 %v9335_v54 }
0x1057   :  { %4701 = vmatpush1.bf16.msra.mxu1 %v9324_v43  ;;  %v4921_v43 = vlaneseq }
0x1058   :  { %4702 = vmatprep.subr.bf16.mxu1 %v9332_v53  ;;  %4891 = vmatpush1.bf16.msra.mxu0 %v9333_v56  ;;  %v4919_v56 = vld [vmem:[#allocation19] sm:$0x3] }
0x1059   :  { %5184 = vmatprep.subr.bf16.mxu0 %v9341_v61  ;;  %v10870_v52 = vshrl.u32 %v4921_v43, 7  ;;  %v9390_v43 = vld [vmem:[#allocation23 + $0xe8] ss:$16 sps:$4 sm:$0xff]  }
0x105b   :  { %4703 = vmatpush1.bf16.msra.mxu1 %v9330_v55  ;;  %11823 = vst [vmem:[#allocation40_spill] sm:$0xff] %v10870_v52  ;;  %v10873_v54 = vsub.s32 0, %v10870_v52 }
0x105c   :  { %4704 = vmatprep.subr.bf16.mxu1 %v9338_v58 }
0x105d   :  { %11824 = vst [vmem:[#allocation41_spill] sm:$0xff] %v10873_v54 }
0x105f   :  { %4705 = vmatpush1.bf16.msra.mxu1 %v9336_v57  ;;  %v10876_v57 = vsub.s32 1, %v10870_v52 }
0x1060   :  { %5139 = vmatprep.subr.bf16.mxu1 %v9341_v61 }
0x1061   :  { %11825 = vst [vmem:[#allocation42_spill] sm:$0xff] %v10876_v57 }
0x10f2   :  { %v4538_v62 = vpop.f32.mrf.mxu0 }
0x10f4   :  { %v4540_v45 = vpop.f32.mrf.mxu0 }
0x10f6   :  { %v4542_v46 = vpop.f32.mrf.mxu0 }
0x10f8   :  { %v4543_v47 = vpop.f32.mrf.mxu0 }
0x10fa   :  { %v4352_v48 = vpop.f32.mrf.mxu1  ;;  %v4772_v63 = vpop.f32.mrf.mxu0 }
0x10fb   :  { %v4359_v0 = vadd.f32 %v4352_v48, %v10840_v11  ;;  %v4795_v1 = vpack.c.bf16 %v4772_v63, %v4772_v63  ;;  %v9347_v11 = vld [vmem:[#allocation20 + $0x54] ss:$8 sps:$4 sm:$0xff]   ;;  %v4928_v48 = vrot.slane %v4919_v56, %v10876_v57 }
0x10fc   :  { %v4354_v2 = vpop.f32.mrf.mxu1  ;;  %v8863_v3 = vpop.f32.mrf.mxu0 }
0x10fd   :  { %v4360_v4 = vadd.f32 %v4354_v2, %v10846_v25  ;;  %4909 = vmatmul.mubr.bf16.vlgmr.msra.gmra.mxu0 %v4795_v1  ;;  %v10866_v6 = vadd.f32 %v4538_v62, %v4359_v0  ;;  %v9345_v25 = vld [vmem:[#allocation20 + $0x50] ss:$8 sps:$4 sm:$0xff]   ;;  %v4924_v62 = vrot.slane %v4919_v56, %v10873_v54 }
0x10fe   :  { %v4356_v7 = vpop.f32.mrf.mxu1  ;;  %v4775_v8 = vpop.f32.mrf.mxu0  ;;  %5185 = vmatpush1.bf16.msra.mxu0 %v9339_v50  ;;  %v9402_v56 = vld [vmem:[#allocation23 + $0xa8] ss:$16 sps:$4 sm:$0xff]  }
0x10ff   :  { %v10868_v9 = vadd.f32 %v4540_v45, %v4360_v4  ;;  %5186 = vmatprep.subr.bf16.mxu0 %v9344_v5  ;;  %v9389_v7 = vld [vmem:[#allocation23 + $0xe4] ss:$16 sps:$4 sm:$0xff]  }
0x1100   :  { %v4357_v10 = vpop.f32.mrf.mxu1  ;;  %v8864_v20 = vpop.f32.mrf.mxu0  ;;  %v9395_v8 = vld [vmem:[#allocation23 + $0xc4] ss:$16 sps:$4 sm:$0xff]  }
0x1101   :  { %v9393_v10 = vld [vmem:[#allocation23 + $0xc0] ss:$16 sps:$4 sm:$0xff]  }
0x1102   :  { %v4586_v22 = vpop.f32.mrf.mxu1  ;;  %5187 = vmatpush1.bf16.msra.mxu0 %v9342_v21  ;;  %v9399_v20 = vld [vmem:[#allocation23 + $0xa0] ss:$16 sps:$4 sm:$0xff]  }
0x1103   :  { %v4609_v24 = vpack.c.bf16 %v4586_v22, %v4586_v22  ;;  %5188 = vmatprep.subr.bf16.mxu0 %v9347_v11  ;;  %v9413_v22 = vld [vmem:[#allocation23 + $0x64] ss:$16 sps:$4 sm:$0xff]  }
0x1104   :  { %v8855_v26 = vpop.f32.mrf.mxu1 }
0x1105   :  { %4723 = vmatmul.mubr.bf16.vlgmr.msra.gmra.mxu1 %v4609_v24  ;;  %v9411_v24 = vld [vmem:[#allocation23 + $0x60] ss:$16 sps:$4 sm:$0xff]   ;;  %v9419_v26 = vld [vmem:[#allocation23 + $0x44] ss:$16 sps:$4 sm:$0xff]  }
0x1106   :  { %v4589_v60 = vpop.f32.mrf.mxu1  ;;  %5140 = vmatpush1.bf16.msra.mxu1 %v9339_v50  ;;  %5189 = vmatpush1.bf16.msra.mxu0 %v9345_v25 }
0x1107   :  { %5141 = vmatprep.subr.bf16.mxu1 %v9344_v5  ;;  %5190 = vmatprep.subr.bf16.mxu0 %v9350_v29  ;;  %v9387_v5 = vld [vmem:[#allocation23 + $0xe0] ss:$16 sps:$4 sm:$0xff]  }
0x1108   :  { %v8856_v42 = vpop.f32.mrf.mxu1  ;;  %v9423_v60 = vld [vmem:[#allocation23 + $0x20] ss:$16 sps:$4 sm:$0xff]  }
0x1109   :  { %v9431_v42 = vld [vmem:[#allocation23 + $0x4] ss:$16 sps:$4 sm:$0xff]  }
0x110a   :  { %5142 = vmatpush1.bf16.msra.mxu1 %v9342_v21  ;;  %5191 = vmatpush1.bf16.msra.mxu0 %v9348_v49  ;;  %v9407_v21 = vld [vmem:[#allocation23 + $0x84] ss:$16 sps:$4 sm:$0xff]  }
0x110b   :  { %5143 = vmatprep.subr.bf16.mxu1 %v9347_v11  ;;  %5192 = vmatprep.subr.bf16.mxu0 %v9353_v12  ;;  %v9405_v11 = vld [vmem:[#allocation23 + $0x80] ss:$16 sps:$4 sm:$0xff]  }
0x110e   :  { %5144 = vmatpush1.bf16.msra.mxu1 %v9345_v25  ;;  %5193 = vmatpush1.bf16.msra.mxu0 %v9351_v14  ;;  %v9417_v25 = vld [vmem:[#allocation23 + $0x40] ss:$16 sps:$4 sm:$0xff]  }
0x110f   :  { %5145 = vmatprep.subr.bf16.mxu1 %v9350_v29  ;;  %5194 = vmatprep.subr.bf16.mxu0 %v9356_v13  ;;  %v9425_v29 = vld [vmem:[#allocation23 + $0x24] ss:$16 sps:$4 sm:$0xff]  }
0x1112   :  { %5146 = vmatpush1.bf16.msra.mxu1 %v9348_v49  ;;  %5195 = vmatpush1.bf16.msra.mxu0 %v9354_v15  ;;  %v9429_v49 = vld [vmem:[#allocation23] ss:$16 sps:$4 sm:$0xff]  }
0x1113   :  { %5147 = vmatprep.subr.bf16.mxu1 %v9353_v12  ;;  %5196 = vmatprep.subr.bf16.mxu0 %v9359_v16  ;;  %v9437_v12 = vld [vmem:[#allocation23 + $0x1e4] ss:$16 sps:$4 sm:$0xff]  }
0x1116   :  { %5148 = vmatpush1.bf16.msra.mxu1 %v9351_v14  ;;  %5197 = vmatpush1.bf16.msra.mxu0 %v9357_v31  ;;  %v9435_v14 = vld [vmem:[#allocation23 + $0x1e0] ss:$16 sps:$4 sm:$0xff]  }
0x1117   :  { %5149 = vmatprep.subr.bf16.mxu1 %v9356_v13  ;;  %5198 = vmatprep.subr.bf16.mxu0 %v9362_v17  ;;  %v9443_v13 = vld [vmem:[#allocation23 + $0x1c4] ss:$16 sps:$4 sm:$0xff]  }
0x111a   :  { %5150 = vmatpush1.bf16.msra.mxu1 %v9354_v15  ;;  %5199 = vmatpush1.bf16.msra.mxu0 %v9360_v28  ;;  %v9441_v15 = vld [vmem:[#allocation23 + $0x1c0] ss:$16 sps:$4 sm:$0xff]  }
0x111b   :  { %5151 = vmatprep.subr.bf16.mxu1 %v9359_v16  ;;  %5200 = vmatprep.subr.bf16.mxu0 %v9365_v32  ;;  %v9449_v16 = vld [vmem:[#allocation23 + $0x1a4] ss:$16 sps:$4 sm:$0xff]  }
0x111e   :  { %5152 = vmatpush1.bf16.msra.mxu1 %v9357_v31  ;;  %5201 = vmatpush2.bf16.msra.mxu0 %v9363_v23  ;;  %v9447_v31 = vld [vmem:[#allocation23 + $0x1a0] ss:$16 sps:$4 sm:$0xff]  }
0x111f   :  { %5153 = vmatprep.subr.bf16.mxu1 %v9362_v17  ;;  %5202 = vmatprep.subr.bf16.mxu0 %v9368_v18  ;;  %v9455_v17 = vld [vmem:[#allocation23 + $0x184] ss:$16 sps:$4 sm:$0xff]  }
0x1122   :  { %5154 = vmatpush1.bf16.msra.mxu1 %v9360_v28  ;;  %5203 = vmatpush2.bf16.msra.mxu0 %v9366_v38  ;;  %v9453_v28 = vld [vmem:[#allocation23 + $0x180] ss:$16 sps:$4 sm:$0xff]  }
0x1123   :  { %5155 = vmatprep.subr.bf16.mxu1 %v9365_v32  ;;  %5204 = vmatprep.subr.bf16.mxu0 %v9371_v30  ;;  %v9461_v32 = vld [vmem:[#allocation23 + $0x164] ss:$16 sps:$4 sm:$0xff]  }
0x1126   :  { %5156 = vmatpush2.bf16.msra.mxu1 %v9363_v23  ;;  %5205 = vmatpush2.bf16.msra.mxu0 %v9369_v59  ;;  %v9459_v23 = vld [vmem:[#allocation23 + $0x160] ss:$16 sps:$4 sm:$0xff]  }
0x1127   :  { %5157 = vmatprep.subr.bf16.mxu1 %v9368_v18  ;;  %5206 = vmatprep.subr.bf16.mxu0 %v9374_v19  ;;  %v9467_v18 = vld [vmem:[#allocation23 + $0x144] ss:$16 sps:$4 sm:$0xff]  }
0x112a   :  { %5158 = vmatpush2.bf16.msra.mxu1 %v9366_v38  ;;  %5207 = vmatpush2.bf16.msra.mxu0 %v9372_v27  ;;  %v9465_v38 = vld [vmem:[#allocation23 + $0x140] ss:$16 sps:$4 sm:$0xff]  }
0x112b   :  { %5159 = vmatprep.subr.bf16.mxu1 %v9371_v30  ;;  %5208 = vmatprep.subr.bf16.mxu0 %v9377_v33  ;;  %v4967_v30 = vld [vmem:[#allocation22] sm:$0x3] }
0x112e   :  { %5160 = vmatpush2.bf16.msra.mxu1 %v9369_v59  ;;  %5209 = vmatpush2.bf16.msra.mxu0 %v9375_v35  ;;  %v10883_v59 = vrot.slane %v4967_v30, %v10873_v54 }
0x112f   :  { %5161 = vmatprep.subr.bf16.mxu1 %v9374_v19  ;;  %5210 = vmatprep.subr.bf16.mxu0 %v9380_v36  ;;  %v10886_v19 = vrot.slane %v4967_v30, %v10876_v57 }
0x1132   :  { %5162 = vmatpush2.bf16.msra.mxu1 %v9372_v27  ;;  %5211 = vmatpush2.bf16.msra.mxu0 %v9378_v37 }
0x1133   :  { %5163 = vmatprep.subr.bf16.mxu1 %v9377_v33  ;;  %5212 = vmatprep.subr.bf16.mxu0 %v9383_v41 }
0x1136   :  { %5164 = vmatpush2.bf16.msra.mxu1 %v9375_v35  ;;  %5213 = vmatpush2.bf16.msra.mxu0 %v9381_v39 }
0x1137   :  { %5165 = vmatprep.subr.bf16.mxu1 %v9380_v36  ;;  %5214 = vmatprep.subr.bf16.mxu0 %v9386_v40 }
0x113a   :  { %5166 = vmatpush2.bf16.msra.mxu1 %v9378_v37  ;;  %5215 = vmatpush2.bf16.msra.mxu0 %v9384_v34 }
0x113b   :  { %5167 = vmatprep.subr.bf16.mxu1 %v9383_v41 }
0x113e   :  { %5168 = vmatpush2.bf16.msra.mxu1 %v9381_v39 }
0x113f   :  { %5169 = vmatprep.subr.bf16.mxu1 %v9386_v40 }
0x1142   :  { %5170 = vmatpush2.bf16.msra.mxu1 %v9384_v34 }
0x1143   :  { %5635 = vmatprep.subr.bf16.mxu1 %v9389_v7  ;;  %v9450_v7 = vld [vmem:[#allocation23 + $0x1a8] ss:$16 sps:$4 sm:$0xff]  }
0x11bd   :  { %v4910_v44 = vpop.f32.mrf.mxu0 }
0x11bf   :  { %v4912_v51 = vpop.f32.mrf.mxu0 }
0x11c1   :  { %v4914_v53 = vpop.f32.mrf.mxu0 }
0x11c2   :  { %v9396_v53 = vld [vmem:[#allocation23 + $0xc8] ss:$16 sps:$4 sm:$0xff]  }
0x11c3   :  { %v4915_v55 = vpop.f32.mrf.mxu0 }
0x11c4   :  { %v9404_v55 = vld [vmem:[#allocation23 + $0xac] ss:$16 sps:$4 sm:$0xff]  }
0x11c5   :  { %v4724_v58 = vpop.f32.mrf.mxu1 }
0x11c6   :  { %v4731_v61 = vadd.f32 %v4724_v58, %v10866_v6  ;;  %v9392_v6 = vld [vmem:[#allocation23 + $0xec] ss:$16 sps:$4 sm:$0xff]  }
0x11c7   :  { %v4726_v45 = vpop.f32.mrf.mxu1  ;;  %5676 = vmatprep.subr.bf16.mxu0 %v9392_v6  ;;  %v9410_v58 = vld [vmem:[#allocation23 + $0x8c] ss:$16 sps:$4 sm:$0xff]  }
0x11c8   :  { %v4917_v46 = vadd.f32 %v4910_v44, %v4731_v61  ;;  %v4732_v47 = vadd.f32 %v4726_v45, %v10868_v9  ;;  %v9401_v9 = vld [vmem:[#allocation23 + $0xa4] ss:$16 sps:$4 sm:$0xff]   ;;  %v9408_v61 = vld [vmem:[#allocation23 + $0x88] ss:$16 sps:$4 sm:$0xff]   ;;  %v9458_v6 = vld [vmem:[#allocation23 + $0x18c] ss:$16 sps:$4 sm:$0xff]  }
0x11c9   :  { %v4728_v63 = vpop.f32.mrf.mxu1  ;;  %v9414_v45 = vld [vmem:[#allocation23 + $0x68] ss:$16 sps:$4 sm:$0xff]  }
0x11ca   :  { %v4918_v0 = vadd.f32 %v4912_v51, %v4732_v47  ;;  %v4931_v1 = vadd.f32 %v4924_v62, %v4917_v46  ;;  %v9398_v51 = vld [vmem:[#allocation23 + $0xcc] ss:$16 sps:$4 sm:$0xff]   ;;  %v9420_v47 = vld [vmem:[#allocation23 + $0x48] ss:$16 sps:$4 sm:$0xff]  }
0x11cb   :  { %v4729_v2 = vpop.f32.mrf.mxu1  ;;  %v9416_v62 = vld [vmem:[#allocation23 + $0x6c] ss:$16 sps:$4 sm:$0xff]   ;;  %v9426_v63 = vld [vmem:[#allocation23 + $0x28] ss:$16 sps:$4 sm:$0xff]  }
0x11cc   :  { %v4932_v3 = vadd.f32 %v4928_v48, %v4918_v0  ;;  %v4965_v4 = vpack.c.bf16 %v4931_v1, %v4931_v1  ;;  %v9422_v46 = vld [vmem:[#allocation23 + $0x4c] ss:$16 sps:$4 sm:$0xff]   ;;  %v9432_v1 = vld [vmem:[#allocation23 + $0x8] ss:$16 sps:$4 sm:$0xff]  }
0x11cd   :  { %v9428_v48 = vld [vmem:[#allocation23 + $0x2c] ss:$16 sps:$4 sm:$0xff]  }
0x11ce   :  { %v4966_v50 = vpack.c.bf16 %v4932_v3, %v4932_v3  ;;  %v9434_v0 = vld [vmem:[#allocation23 + $0xc] ss:$16 sps:$4 sm:$0xff]   ;;  %v9438_v3 = vld [vmem:[#allocation23 + $0x1e8] ss:$16 sps:$4 sm:$0xff]  }
0x11cf   :  { %v9440_v2 = vld [vmem:[#allocation23 + $0x1ec] ss:$16 sps:$4 sm:$0xff]  }
0x11d0   :  { %5171 = vmatprep.mubr.bf16.mxu1 %v4966_v50  ;;  %v9446_v50 = vld [vmem:[#allocation23 + $0x1cc] ss:$16 sps:$4 sm:$0xff]  }
0x11d1   :  { %5172 = vmatmul.mubr.bf16.vlgmr.msra.gmra.mxu1 %v4965_v4  ;;  %v9444_v4 = vld [vmem:[#allocation23 + $0x1c8] ss:$16 sps:$4 sm:$0xff]  }
0x11d2   :  { %5636 = vmatpush1.bf16.msra.mxu1 %v9387_v5  ;;  %v9452_v5 = vld [vmem:[#allocation23 + $0x1ac] ss:$16 sps:$4 sm:$0xff]  }
0x11d3   :  { %5637 = vmatprep.subr.bf16.mxu1 %v9395_v8  ;;  %v9456_v8 = vld [vmem:[#allocation23 + $0x188] ss:$16 sps:$4 sm:$0xff]  }
0x11d6   :  { %5638 = vmatpush1.bf16.msra.mxu1 %v9393_v10  ;;  %v9464_v10 = vld [vmem:[#allocation23 + $0x16c] ss:$16 sps:$4 sm:$0xff]  }
0x11d7   :  { %5639 = vmatprep.subr.bf16.mxu1 %v9401_v9  ;;  %v9462_v9 = vld [vmem:[#allocation23 + $0x168] ss:$16 sps:$4 sm:$0xff]  }
0x11da   :  { %5640 = vmatpush1.bf16.msra.mxu1 %v9399_v20  ;;  %v9470_v20 = vld [vmem:[#allocation23 + $0x14c] ss:$16 sps:$4 sm:$0xff]  }
0x11db   :  { %5641 = vmatprep.subr.bf16.mxu1 %v9407_v21  ;;  %v9468_v21 = vld [vmem:[#allocation23 + $0x148] ss:$16 sps:$4 sm:$0xff]  }
0x11de   :  { %5642 = vmatpush1.bf16.msra.mxu1 %v9405_v11  ;;  %v9473_v11 = vld [vmem:[#allocation23 + $0x124] ss:$16 sps:$4 sm:$0xff]  }
0x11df   :  { %5643 = vmatprep.subr.bf16.mxu1 %v9413_v22  ;;  %v9476_v22 = vld [vmem:[#allocation23 + $0x12c] ss:$16 sps:$4 sm:$0xff]  }
0x11e2   :  { %5644 = vmatpush1.bf16.msra.mxu1 %v9411_v24  ;;  %v9471_v24 = vld [vmem:[#allocation23 + $0x120] ss:$16 sps:$4 sm:$0xff]  }
0x11e3   :  { %5645 = vmatprep.subr.bf16.mxu1 %v9419_v26  ;;  %v9474_v26 = vld [vmem:[#allocation23 + $0x128] ss:$16 sps:$4 sm:$0xff]  }
0x11e6   :  { %5646 = vmatpush1.bf16.msra.mxu1 %v9417_v25  ;;  %v9479_v25 = vld [vmem:[#allocation23 + $0x104] ss:$16 sps:$4 sm:$0xff]  }
0x11e7   :  { %5647 = vmatprep.subr.bf16.mxu1 %v9425_v29  ;;  %v9482_v29 = vld [vmem:[#allocation23 + $0x10c] ss:$16 sps:$4 sm:$0xff]  }
0x11ea   :  { %5648 = vmatpush1.bf16.msra.mxu1 %v9423_v60  ;;  %v9477_v60 = vld [vmem:[#allocation23 + $0x100] ss:$16 sps:$4 sm:$0xff]  }
0x11eb   :  { %5649 = vmatprep.subr.bf16.mxu1 %v9431_v42  ;;  %v9480_v42 = vld [vmem:[#allocation23 + $0x108] ss:$16 sps:$4 sm:$0xff]  }
0x11ee   :  { %5650 = vmatpush1.bf16.msra.mxu1 %v9429_v49  ;;  %v10890_v49 = vld [vmem:[#allocation25 + $0xe4] ss:$16 sps:$4 sm:$0xff]  }
0x11ef   :  { %5651 = vmatprep.subr.bf16.mxu1 %v9437_v12  ;;  %v10892_v12 = vld [vmem:[#allocation25 + $0x2e4] ss:$16 sps:$4 sm:$0xff]  }
0x11f0   :  { %11826 = vst [vmem:[#allocation43_spill] sm:$0xff] %v10892_v12 }
0x11f2   :  { %5652 = vmatpush2.bf16.msra.mxu1 %v9435_v14 }
0x11f3   :  { %5653 = vmatprep.subr.bf16.mxu1 %v9443_v13 }
0x11f6   :  { %5654 = vmatpush2.bf16.msra.mxu1 %v9441_v15 }
0x11f7   :  { %5655 = vmatprep.subr.bf16.mxu1 %v9449_v16 }
0x11fa   :  { %5656 = vmatpush2.bf16.msra.mxu1 %v9447_v31 }
0x11fb   :  { %5657 = vmatprep.subr.bf16.mxu1 %v9455_v17 }
0x11fe   :  { %5658 = vmatpush2.bf16.msra.mxu1 %v9453_v28 }
0x11ff   :  { %5659 = vmatprep.subr.bf16.mxu1 %v9461_v32 }
0x1202   :  { %5660 = vmatpush2.bf16.msra.mxu1 %v9459_v23 }
0x1203   :  { %5661 = vmatprep.subr.bf16.mxu1 %v9467_v18  ;;  %v10898_v18 = vld [vmem:[#allocation25 + $0xe0] ss:$16 sps:$4 sm:$0xff]  }
0x1206   :  { %5662 = vmatpush2.bf16.msra.mxu1 %v9465_v38  ;;  %v10900_v38 = vld [vmem:[#allocation25 + $0x2e0] ss:$16 sps:$4 sm:$0xff]  }
0x1207   :  { %5663 = vmatprep.subr.bf16.mxu1 %v9473_v11  ;;  %11827 = vst [vmem:[#allocation44_spill] sm:$0xff] %v10900_v38  ;;  %v11018_v11 = vld [vmem:[#allocation25 + $0x3a0] ss:$16 sps:$4 sm:$0xff]  }
0x1208   :  { %11848 = vst [vmem:[#allocation65_spill] sm:$0xff] %v11018_v11 }
0x120a   :  { %5664 = vmatpush2.bf16.msra.mxu1 %v9471_v24  ;;  %v11024_v24 = vld [vmem:[#allocation25 + $0x384] ss:$16 sps:$4 sm:$0xff]  }
0x120b   :  { %5665 = vmatprep.subr.bf16.mxu1 %v9479_v25  ;;  %11850 = vst [vmem:[#allocation67_spill] sm:$0xff] %v11024_v24  ;;  %v11030_v25 = vld [vmem:[#allocation25 + $0x380] ss:$16 sps:$4 sm:$0xff]  }
0x120c   :  { %11852 = vst [vmem:[#allocation69_spill] sm:$0xff] %v11030_v25 }
0x120e   :  { %5666 = vmatpush2.bf16.msra.mxu1 %v9477_v60  ;;  %v11036_v60 = vld [vmem:[#allocation25 + $0x364] ss:$16 sps:$4 sm:$0xff]  }
0x120f   :  { %6511 = vmatprep.subr.bf16.mxu1 %v10890_v49  ;;  %11854 = vst [vmem:[#allocation71_spill] sm:$0xff] %v11036_v60 }
0x1291   :  { %v5173_v27 = vpop.f32.mrf.mxu1 }
0x1292   :  { %v5174_v33 = vadd.f32 %v5173_v27, %v10883_v59  ;;  %v10902_v27 = vld [vmem:[#allocation25 + $0xc4] ss:$16 sps:$4 sm:$0xff]  }
0x1293   :  { %v5175_v35 = vpop.f32.mrf.mxu1 }
0x1294   :  { %v5176_v36 = vadd.f32 %v5175_v35, %v10886_v19  ;;  %v5180_v37 = vmax.f32 %v5174_v33, 0.0  ;;  %v10904_v33 = vld [vmem:[#allocation25 + $0x2c4] ss:$16 sps:$4 sm:$0xff]  }
0x1295   :  { %v5177_v41 = vpop.f32.mrf.mxu1  ;;  %11828 = vst [vmem:[#allocation45_spill] sm:$0xff] %v10904_v33  ;;  %v10914_v35 = vld [vmem:[#allocation25 + $0xa4] ss:$16 sps:$4 sm:$0xff]  }
0x1296   :  { %v5181_v39 = vmax.f32 %v5176_v36, 0.0  ;;  %v5182_v44 = vpack.c.bf16 %v5180_v37, %v5180_v37  ;;  %v10916_v36 = vld [vmem:[#allocation25 + $0x2a4] ss:$16 sps:$4 sm:$0xff]   ;;  %v10920_v37 = vld [vmem:[#allocation25 + $0xa0] ss:$16 sps:$4 sm:$0xff]  }
0x1297   :  { %v5178_v34 = vpop.f32.mrf.mxu1  ;;  %11830 = vst [vmem:[#allocation47_spill] sm:$0xff] %v10916_v36  ;;  %v10922_v41 = vld [vmem:[#allocation25 + $0x2a0] ss:$16 sps:$4 sm:$0xff]  }
0x1298   :  { %v5183_v40 = vpack.c.bf16 %v5181_v39, %v5181_v39  ;;  %11831 = vst [vmem:[#allocation48_spill] sm:$0xff] %v10922_v41  ;;  %v10926_v39 = vld [vmem:[#allocation25 + $0x84] ss:$16 sps:$4 sm:$0xff]  }
0x1299   :  { %v10928_v34 = vld [vmem:[#allocation25 + $0x284] ss:$16 sps:$4 sm:$0xff]  }
0x129a   :  { %5216 = vmatprep.mubr.bf16.mxu0 %v5183_v40  ;;  %11832 = vst [vmem:[#allocation49_spill] sm:$0xff] %v10928_v34  ;;  %v10932_v40 = vld [vmem:[#allocation25 + $0x80] ss:$16 sps:$4 sm:$0xff]  }
0x129b   :  { %5217 = vmatmul.mubr.bf16.vlgmr.msra.gmra.mxu0 %v5182_v44  ;;  %v10938_v44 = vld [vmem:[#allocation25 + $0x64] ss:$16 sps:$4 sm:$0xff]  }
0x129c   :  { %5677 = vmatpush1.bf16.msra.mxu0 %v9390_v43  ;;  %v10934_v43 = vld [vmem:[#allocation25 + $0x280] ss:$16 sps:$4 sm:$0xff]  }
0x129d   :  { %5678 = vmatprep.subr.bf16.mxu0 %v9398_v51  ;;  %11833 = vst [vmem:[#allocation50_spill] sm:$0xff] %v10934_v43  ;;  %v10940_v51 = vld [vmem:[#allocation25 + $0x264] ss:$16 sps:$4 sm:$0xff]  }
0x129e   :  { %11834 = vst [vmem:[#allocation51_spill] sm:$0xff] %v10940_v51 }
0x12a0   :  { %5679 = vmatpush1.bf16.msra.mxu0 %v9396_v53  ;;  %v10944_v53 = vld [vmem:[#allocation25 + $0x60] ss:$16 sps:$4 sm:$0xff]  }
0x12a1   :  { %5680 = vmatprep.subr.bf16.mxu0 %v9404_v55  ;;  %v10946_v55 = vld [vmem:[#allocation25 + $0x260] ss:$16 sps:$4 sm:$0xff]  }
0x12a2   :  { %11835 = vst [vmem:[#allocation52_spill] sm:$0xff] %v10946_v55 }
0x12a4   :  { %5681 = vmatpush1.bf16.msra.mxu0 %v9402_v56  ;;  %v10950_v56 = vld [vmem:[#allocation25 + $0x44] ss:$16 sps:$4 sm:$0xff]  }
0x12a5   :  { %5682 = vmatprep.subr.bf16.mxu0 %v9410_v58  ;;  %v10952_v58 = vld [vmem:[#allocation25 + $0x244] ss:$16 sps:$4 sm:$0xff]  }
0x12a6   :  { %11836 = vst [vmem:[#allocation53_spill] sm:$0xff] %v10952_v58 }
0x12a8   :  { %5683 = vmatpush1.bf16.msra.mxu0 %v9408_v61  ;;  %v10956_v61 = vld [vmem:[#allocation25 + $0x40] ss:$16 sps:$4 sm:$0xff]  }
0x12a9   :  { %5684 = vmatprep.subr.bf16.mxu0 %v9416_v62  ;;  %v10958_v62 = vld [vmem:[#allocation25 + $0x240] ss:$16 sps:$4 sm:$0xff]  }
0x12aa   :  { %11837 = vst [vmem:[#allocation54_spill] sm:$0xff] %v10958_v62 }
0x12ac   :  { %5685 = vmatpush1.bf16.msra.mxu0 %v9414_v45  ;;  %v10962_v45 = vld [vmem:[#allocation25 + $0x24] ss:$16 sps:$4 sm:$0xff]  }
0x12ad   :  { %5686 = vmatprep.subr.bf16.mxu0 %v9422_v46  ;;  %v10964_v46 = vld [vmem:[#allocation25 + $0x224] ss:$16 sps:$4 sm:$0xff]  }
0x12ae   :  { %11838 = vst [vmem:[#allocation55_spill] sm:$0xff] %v10964_v46 }
0x12b0   :  { %5687 = vmatpush1.bf16.msra.mxu0 %v9420_v47  ;;  %v10968_v47 = vld [vmem:[#allocation25 + $0x20] ss:$16 sps:$4 sm:$0xff]  }
0x12b1   :  { %5688 = vmatprep.subr.bf16.mxu0 %v9428_v48  ;;  %v10970_v48 = vld [vmem:[#allocation25 + $0x220] ss:$16 sps:$4 sm:$0xff]  }
0x12b2   :  { %11839 = vst [vmem:[#allocation56_spill] sm:$0xff] %v10970_v48 }
0x12b4   :  { %5689 = vmatpush1.bf16.msra.mxu0 %v9426_v63  ;;  %v10974_v63 = vld [vmem:[#allocation25 + $0x4] ss:$16 sps:$4 sm:$0xff]  }
0x12b5   :  { %5690 = vmatprep.subr.bf16.mxu0 %v9434_v0  ;;  %v10976_v0 = vld [vmem:[#allocation25 + $0x204] ss:$16 sps:$4 sm:$0xff]  }
0x12b6   :  { %11840 = vst [vmem:[#allocation57_spill] sm:$0xff] %v10976_v0 }
0x12b8   :  { %5691 = vmatpush1.bf16.msra.mxu0 %v9432_v1  ;;  %v10980_v1 = vld [vmem:[#allocation25] ss:$16 sps:$4 sm:$0xff]  }
0x12b9   :  { %5692 = vmatprep.subr.bf16.mxu0 %v9440_v2  ;;  %v10982_v2 = vld [vmem:[#allocation25 + $0x200] ss:$16 sps:$4 sm:$0xff]  }
0x12ba   :  { %11841 = vst [vmem:[#allocation58_spill] sm:$0xff] %v10982_v2 }
0x12bc   :  { %5693 = vmatpush2.bf16.msra.mxu0 %v9438_v3  ;;  %v10986_v3 = vld [vmem:[#allocation25 + $0x1e4] ss:$16 sps:$4 sm:$0xff]  }
0x12bd   :  { %5694 = vmatprep.subr.bf16.mxu0 %v9446_v50  ;;  %v10988_v50 = vld [vmem:[#allocation25 + $0x3e4] ss:$16 sps:$4 sm:$0xff]  }
0x12be   :  { %11842 = vst [vmem:[#allocation59_spill] sm:$0xff] %v10988_v50 }
0x12c0   :  { %5695 = vmatpush2.bf16.msra.mxu0 %v9444_v4  ;;  %v10992_v4 = vld [vmem:[#allocation25 + $0x1e0] ss:$16 sps:$4 sm:$0xff]  }
0x12c1   :  { %5696 = vmatprep.subr.bf16.mxu0 %v9452_v5  ;;  %v10994_v5 = vld [vmem:[#allocation25 + $0x3e0] ss:$16 sps:$4 sm:$0xff]  }
0x12c2   :  { %11843 = vst [vmem:[#allocation60_spill] sm:$0xff] %v10994_v5 }
0x12c4   :  { %5697 = vmatpush2.bf16.msra.mxu0 %v9450_v7  ;;  %v10998_v7 = vld [vmem:[#allocation25 + $0x1c4] ss:$16 sps:$4 sm:$0xff]  }
0x12c5   :  { %5698 = vmatprep.subr.bf16.mxu0 %v9458_v6  ;;  %v11000_v6 = vld [vmem:[#allocation25 + $0x3c4] ss:$16 sps:$4 sm:$0xff]  }
0x12c6   :  { %11844 = vst [vmem:[#allocation61_spill] sm:$0xff] %v11000_v6 }
0x12c8   :  { %5699 = vmatpush2.bf16.msra.mxu0 %v9456_v8  ;;  %v11004_v8 = vld [vmem:[#allocation25 + $0x1c0] ss:$16 sps:$4 sm:$0xff]  }
0x12c9   :  { %5700 = vmatprep.subr.bf16.mxu0 %v9464_v10  ;;  %v11006_v10 = vld [vmem:[#allocation25 + $0x3c0] ss:$16 sps:$4 sm:$0xff]  }
0x12ca   :  { %11845 = vst [vmem:[#allocation62_spill] sm:$0xff] %v11006_v10 }
0x12cc   :  { %5701 = vmatpush2.bf16.msra.mxu0 %v9462_v9  ;;  %v11010_v9 = vld [vmem:[#allocation25 + $0x1a4] ss:$16 sps:$4 sm:$0xff]  }
0x12cd   :  { %5702 = vmatprep.subr.bf16.mxu0 %v9470_v20  ;;  %v11012_v20 = vld [vmem:[#allocation25 + $0x3a4] ss:$16 sps:$4 sm:$0xff]  }
0x12ce   :  { %11846 = vst [vmem:[#allocation63_spill] sm:$0xff] %v11012_v20 }
0x12d0   :  { %5703 = vmatpush2.bf16.msra.mxu0 %v9468_v21  ;;  %v11016_v21 = vld [vmem:[#allocation25 + $0x1a0] ss:$16 sps:$4 sm:$0xff]  }
0x12d1   :  { %5704 = vmatprep.subr.bf16.mxu0 %v9476_v22  ;;  %11847 = vst [vmem:[#allocation64_spill] sm:$0xff] %v11016_v21  ;;  %v11022_v22 = vld [vmem:[#allocation25 + $0x184] ss:$16 sps:$4 sm:$0xff]  }
0x12d2   :  { %11849 = vst [vmem:[#allocation66_spill] sm:$0xff] %v11022_v22 }
0x12d4   :  { %5705 = vmatpush2.bf16.msra.mxu0 %v9474_v26  ;;  %v11028_v26 = vld [vmem:[#allocation25 + $0x180] ss:$16 sps:$4 sm:$0xff]  }
0x12d5   :  { %5706 = vmatprep.subr.bf16.mxu0 %v9482_v29  ;;  %11851 = vst [vmem:[#allocation68_spill] sm:$0xff] %v11028_v26  ;;  %v11034_v29 = vld [vmem:[#allocation25 + $0x164] ss:$16 sps:$4 sm:$0xff]  }
0x12d6   :  { %11853 = vst [vmem:[#allocation70_spill] sm:$0xff] %v11034_v29 }
0x12d8   :  { %5707 = vmatpush2.bf16.msra.mxu0 %v9480_v42  ;;  %v11040_v42 = vld [vmem:[#allocation25 + $0x160] ss:$16 sps:$4 sm:$0xff]  }
0x12d9   :  { %6552 = vmatprep.subr.bf16.mxu0 %v10892_v12  ;;  %11855 = vst [vmem:[#allocation72_spill] sm:$0xff] %v11040_v42 }
0x135b   :  { %v5218_v14 = vpop.f32.mrf.mxu0 }
0x135c   :  { %v5219_v13 = vadd.f32 %v5218_v14, %v10883_v59  ;;  %v10908_v59 = vld [vmem:[#allocation25 + $0xc0] ss:$16 sps:$4 sm:$0xff]  }
0x135d   :  { %v5220_v15 = vpop.f32.mrf.mxu0  ;;  %v11042_v14 = vld [vmem:[#allocation25 + $0x360] ss:$16 sps:$4 sm:$0xff]  }
0x135e   :  { %v5221_v16 = vadd.f32 %v5220_v15, %v10886_v19  ;;  %v5225_v31 = vmax.f32 %v5219_v13, 0.0  ;;  %v10910_v19 = vld [vmem:[#allocation25 + $0x2c0] ss:$16 sps:$4 sm:$0xff]   ;;  %11856 = vst [vmem:[#allocation73_spill] sm:$0xff] %v11042_v14  ;;  %v11046_v13 = vld [vmem:[#allocation25 + $0x144] ss:$16 sps:$4 sm:$0xff]  }
0x135f   :  { %v5222_v17 = vpop.f32.mrf.mxu0  ;;  %11829 = vst [vmem:[#allocation46_spill] sm:$0xff] %v10910_v19  ;;  %11857 = vst [vmem:[#allocation74_spill] sm:$0xff] %v11046_v13  ;;  %v11048_v15 = vld [vmem:[#allocation25 + $0x344] ss:$16 sps:$4 sm:$0xff]  }
0x1360   :  { %v5226_v28 = vmax.f32 %v5221_v16, 0.0  ;;  %v5291_v30 = vpack.c.bf16 %v5225_v31, %v5225_v31  ;;  %11858 = vst [vmem:[#allocation75_spill] sm:$0xff] %v11048_v15  ;;  %v11052_v16 = vld [vmem:[#allocation25 + $0x140] ss:$16 sps:$4 sm:$0xff]   ;;  %v11058_v17 = vld [vmem:[#allocation25 + $0x124] ss:$16 sps:$4 sm:$0xff]  }
0x1361   :  { %v5223_v32 = vpop.f32.mrf.mxu0  ;;  %11859 = vst [vmem:[#allocation76_spill] sm:$0xff] %v11052_v16  ;;  %v11054_v31 = vld [vmem:[#allocation25 + $0x340] ss:$16 sps:$4 sm:$0xff]   ;;  %11861 = vst [vmem:[#allocation78_spill] sm:$0xff] %v11058_v17 }
0x1362   :  { %v5292_v23 = vpack.c.bf16 %v5226_v28, %v5226_v28  ;;  %11860 = vst [vmem:[#allocation77_spill] sm:$0xff] %v11054_v31  ;;  %v11060_v28 = vld [vmem:[#allocation25 + $0x324] ss:$16 sps:$4 sm:$0xff]   ;;  %v11066_v32 = vld [vmem:[#allocation25 + $0x120] ss:$16 sps:$4 sm:$0xff]  }
0x1363   :  { %11862 = vst [vmem:[#allocation79_spill] sm:$0xff] %v11060_v28  ;;  %11863 = vst [vmem:[#allocation80_spill] sm:$0xff] %v11066_v32 }
0x1364   :  { %5667 = vmatprep.mubr.bf16.mxu1 %v5292_v23  ;;  %5708 = vmatprep.mubr.bf16.mxu0 %v5292_v23  ;;  %v11068_v23 = vld [vmem:[#allocation25 + $0x320] ss:$16 sps:$4 sm:$0xff]  }
0x1365   :  { %5668 = vmatmul.mubr.bf16.vlgmr.msra.gmra.mxu1 %v5291_v30  ;;  %5709 = vmatmul.mubr.bf16.vlgmr.msra.gmra.mxu0 %v5291_v30  ;;  %11864 = vst [vmem:[#allocation81_spill] sm:$0xff] %v11068_v23  ;;  %v11072_v30 = vld [vmem:[#allocation25 + $0x104] ss:$16 sps:$4 sm:$0xff]  }
0x1366   :  { %6512 = vmatpush1.bf16.msra.mxu1 %v10898_v18  ;;  %6553 = vmatpush1.bf16.msra.mxu0 %v10900_v38  ;;  %11865 = vst [vmem:[#allocation82_spill] sm:$0xff] %v11072_v30 }
0x1367   :  { %6513 = vmatprep.subr.bf16.mxu1 %v10902_v27  ;;  %6554 = vmatprep.subr.bf16.mxu0 %v10904_v33 }
0x136a   :  { %6514 = vmatpush1.bf16.msra.mxu1 %v10908_v59  ;;  %6555 = vmatpush1.bf16.msra.mxu0 %v10910_v19 }
0x136b   :  { %6515 = vmatprep.subr.bf16.mxu1 %v10914_v35  ;;  %6556 = vmatprep.subr.bf16.mxu0 %v10916_v36 }
0x136e   :  { %6516 = vmatpush1.bf16.msra.mxu1 %v10920_v37  ;;  %6557 = vmatpush1.bf16.msra.mxu0 %v10922_v41 }
0x136f   :  { %6517 = vmatprep.subr.bf16.mxu1 %v10926_v39  ;;  %6558 = vmatprep.subr.bf16.mxu0 %v10928_v34 }
0x1372   :  { %6518 = vmatpush1.bf16.msra.mxu1 %v10932_v40  ;;  %6559 = vmatpush1.bf16.msra.mxu0 %v10934_v43 }
0x1373   :  { %6519 = vmatprep.subr.bf16.mxu1 %v10938_v44  ;;  %6560 = vmatprep.subr.bf16.mxu0 %v10940_v51 }
0x1376   :  { %6520 = vmatpush1.bf16.msra.mxu1 %v10944_v53  ;;  %6561 = vmatpush1.bf16.msra.mxu0 %v10946_v55 }
0x1377   :  { %6521 = vmatprep.subr.bf16.mxu1 %v10950_v56  ;;  %6562 = vmatprep.subr.bf16.mxu0 %v10952_v58 }
0x137a   :  { %6522 = vmatpush1.bf16.msra.mxu1 %v10956_v61  ;;  %6563 = vmatpush1.bf16.msra.mxu0 %v10958_v62 }
0x137b   :  { %6523 = vmatprep.subr.bf16.mxu1 %v10962_v45  ;;  %6564 = vmatprep.subr.bf16.mxu0 %v10964_v46 }
0x137e   :  { %6524 = vmatpush1.bf16.msra.mxu1 %v10968_v47  ;;  %6565 = vmatpush1.bf16.msra.mxu0 %v10970_v48 }
0x137f   :  { %6525 = vmatprep.subr.bf16.mxu1 %v10974_v63  ;;  %6566 = vmatprep.subr.bf16.mxu0 %v10976_v0 }
0x1382   :  { %6526 = vmatpush1.bf16.msra.mxu1 %v10980_v1  ;;  %6567 = vmatpush1.bf16.msra.mxu0 %v10982_v2 }
0x1383   :  { %6527 = vmatprep.subr.bf16.mxu1 %v10986_v3  ;;  %6568 = vmatprep.subr.bf16.mxu0 %v10988_v50 }
0x1386   :  { %6528 = vmatpush2.bf16.msra.mxu1 %v10992_v4  ;;  %6569 = vmatpush2.bf16.msra.mxu0 %v10994_v5 }
0x1387   :  { %6529 = vmatprep.subr.bf16.mxu1 %v10998_v7  ;;  %6570 = vmatprep.subr.bf16.mxu0 %v11000_v6 }
0x138a   :  { %6530 = vmatpush2.bf16.msra.mxu1 %v11004_v8  ;;  %6571 = vmatpush2.bf16.msra.mxu0 %v11006_v10 }
0x138b   :  { %6531 = vmatprep.subr.bf16.mxu1 %v11010_v9  ;;  %6572 = vmatprep.subr.bf16.mxu0 %v11012_v20 }
0x138e   :  { %6532 = vmatpush2.bf16.msra.mxu1 %v11016_v21  ;;  %6573 = vmatpush2.bf16.msra.mxu0 %v11018_v11  ;;  %v11101_v21 = vld [vmem:[#allocation25 + $0xe8] ss:$16 sps:$4 sm:$0xff]  }
0x138f   :  { %6533 = vmatprep.subr.bf16.mxu1 %v11022_v22  ;;  %6574 = vmatprep.subr.bf16.mxu0 %v11024_v24 }
0x1392   :  { %6534 = vmatpush2.bf16.msra.mxu1 %v11028_v26  ;;  %6575 = vmatpush2.bf16.msra.mxu0 %v11030_v25 }
0x1393   :  { %6535 = vmatprep.subr.bf16.mxu1 %v11034_v29  ;;  %6576 = vmatprep.subr.bf16.mxu0 %v11036_v60 }
0x1396   :  { %6536 = vmatpush2.bf16.msra.mxu1 %v11040_v42  ;;  %6577 = vmatpush2.bf16.msra.mxu0 %v11042_v14 }
0x1397   :  { %6537 = vmatprep.subr.bf16.mxu1 %v11046_v13  ;;  %6578 = vmatprep.subr.bf16.mxu0 %v11048_v15  ;;  %v11074_v15 = vld [vmem:[#allocation25 + $0x304] ss:$16 sps:$4 sm:$0xff]   ;;  %v11076_v13 = vld [vmem:[#allocation25 + $0x100] ss:$16 sps:$4 sm:$0xff]  }
0x1398   :  { %11866 = vst [vmem:[#allocation83_spill] sm:$0xff] %v11074_v15  ;;  %11867 = vst [vmem:[#allocation84_spill] sm:$0xff] %v11076_v13 }
0x139a   :  { %6538 = vmatpush2.bf16.msra.mxu1 %v11052_v16  ;;  %6579 = vmatpush2.bf16.msra.mxu0 %v11054_v31  ;;  %v11078_v16 = vld [vmem:[#allocation25 + $0x300] ss:$16 sps:$4 sm:$0xff]  }
0x139b   :  { %6539 = vmatprep.subr.bf16.mxu1 %v11058_v17  ;;  %6580 = vmatprep.subr.bf16.mxu0 %v11060_v28  ;;  %11868 = vst [vmem:[#allocation85_spill] sm:$0xff] %v11078_v16  ;;  %v11084_v28 = vld [vmem:[#allocation25 + $0xec] ss:$16 sps:$4 sm:$0xff]  }
0x139c   :  { %11869 = vst [vmem:[#allocation86_spill] sm:$0xff] %v11084_v28 }
0x139e   :  { %6540 = vmatpush2.bf16.msra.mxu1 %v11066_v32  ;;  %6581 = vmatpush2.bf16.msra.mxu0 %v11068_v23  ;;  %v11086_v32 = vld [vmem:[#allocation25 + $0x2ec] ss:$16 sps:$4 sm:$0xff]   ;;  %v11691_v23 = vsub.s32 2, %v10870_v52 }
0x139f   :  { %6541 = vmatprep.subr.bf16.mxu1 %v11072_v30  ;;  %6582 = vmatprep.subr.bf16.mxu0 %v11074_v15  ;;  %11870 = vst [vmem:[#allocation87_spill] sm:$0xff] %v11086_v32  ;;  %v5293_v30 = vld [vmem:[%s11634_s16] sm:$0xf]  ;;  %v11695_v15 = vsub.s32 3, %v10870_v52 }
0x13a0   :  { %v5302_v17 = vrot.slane %v5293_v30, %v10876_v57 }
0x13a2   :  { %6542 = vmatpush2.bf16.msra.mxu1 %v11076_v13  ;;  %6583 = vmatpush2.bf16.msra.mxu0 %v11078_v16  ;;  %v5298_v13 = vrot.slane %v5293_v30, %v10873_v54  ;;  %v5306_v16 = vrot.slane %v5293_v30, %v11691_v23  ;;  %v11103_v23 = vld [vmem:[#allocation25 + $0x2e8] ss:$16 sps:$4 sm:$0xff]  }
0x13a3   :  { %6593 = vmatprep.subr.bf16.mxu1 %v11084_v28  ;;  %6634 = vmatprep.subr.bf16.mxu0 %v11086_v32  ;;  %v5310_v28 = vrot.slane %v5293_v30, %v11695_v15  ;;  %11871 = vst [vmem:[#allocation88_spill] sm:$0xff] %v11103_v23 }
0x1425   :  { %v5669_v31 = vpop.f32.mrf.mxu1  ;;  %v5710_v32 = vpop.f32.mrf.mxu0 }
0x1426   :  { %v5670_v14 = vadd.f32 %v5669_v31, %v5298_v13  ;;  %v5711_v42 = vadd.f32 %v5710_v32, %v5306_v16  ;;  %v11109_v13 = vld [vmem:[#allocation25 + $0xcc] ss:$16 sps:$4 sm:$0xff]  }
0x1427   :  { %v5671_v60 = vpop.f32.mrf.mxu1  ;;  %v5712_v29 = vpop.f32.mrf.mxu0  ;;  %v11147_v16 = vld [vmem:[#allocation25 + $0x6c] ss:$16 sps:$4 sm:$0xff]  }
0x1428   :  { %v5672_v25 = vadd.f32 %v5671_v60, %v5302_v17  ;;  %v5713_v26 = vadd.f32 %v5712_v29, %v5310_v28  ;;  %v11105_v57 = vpack.c.bf16 %v5670_v14, %v5670_v14  ;;  %v11107_v52 = vpack.c.bf16 %v5711_v42, %v5711_v42  ;;  %v11111_v60 = vld [vmem:[#allocation25 + $0x2cc] ss:$16 sps:$4 sm:$0xff]   ;;  %v11129_v29 = vld [vmem:[#allocation25 + $0xa8] ss:$16 sps:$4 sm:$0xff]  }
0x1429   :  { %v5673_v24 = vpop.f32.mrf.mxu1  ;;  %v5714_v22 = vpop.f32.mrf.mxu0  ;;  %11872 = vst [vmem:[#allocation89_spill] sm:$0xff] %v11111_v60  ;;  %v11131_v42 = vld [vmem:[#allocation25 + $0x2a8] ss:$16 sps:$4 sm:$0xff]   ;;  %v11149_v31 = vld [vmem:[#allocation25 + $0x26c] ss:$16 sps:$4 sm:$0xff]  }
0x142a   :  { %v5846_v11 = vpack.c.bf16 %v5672_v25, %v5672_v25  ;;  %v5848_v54 = vpack.c.bf16 %v5713_v26, %v5713_v26  ;;  %v11117_v22 = vld [vmem:[#allocation25 + $0xc8] ss:$16 sps:$4 sm:$0xff]   ;;  %v11121_v26 = vld [vmem:[#allocation25 + $0xac] ss:$16 sps:$4 sm:$0xff]   ;;  %11875 = vst [vmem:[#allocation92_spill] sm:$0xff] %v11131_v42  ;;  %11878 = vst [vmem:[#allocation95_spill] sm:$0xff] %v11149_v31 }
0x142b   :  { %v5674_v30 = vpop.f32.mrf.mxu1  ;;  %v5715_v15 = vpop.f32.mrf.mxu0  ;;  %v11119_v24 = vld [vmem:[#allocation25 + $0x2c8] ss:$16 sps:$4 sm:$0xff]   ;;  %v11123_v25 = vld [vmem:[#allocation25 + $0x2ac] ss:$16 sps:$4 sm:$0xff]  }
0x142c   :  { %6543 = vmatprep.mubr.bf16.mxu1 %v5846_v11  ;;  %6584 = vmatprep.mubr.bf16.mxu0 %v5848_v54  ;;  %11873 = vst [vmem:[#allocation90_spill] sm:$0xff] %v11119_v24  ;;  %11874 = vst [vmem:[#allocation91_spill] sm:$0xff] %v11123_v25  ;;  %v11141_v14 = vld [vmem:[#allocation25 + $0x88] ss:$16 sps:$4 sm:$0xff]   ;;  %v11159_v32 = vld [vmem:[#allocation25 + $0x4c] ss:$16 sps:$4 sm:$0xff]  }
0x142d   :  { %6544 = vmatmul.mubr.bf16.vlgmr.msra.gmra.mxu1 %v11105_v57  ;;  %6585 = vmatmul.mubr.bf16.vlgmr.msra.gmra.mxu0 %v11107_v52  ;;  %v11143_v15 = vld [vmem:[#allocation25 + $0x288] ss:$16 sps:$4 sm:$0xff]   ;;  %v11161_v30 = vld [vmem:[#allocation25 + $0x24c] ss:$16 sps:$4 sm:$0xff]  }
0x142e   :  { %6594 = vmatpush1.bf16.msra.mxu1 %v11101_v21  ;;  %6635 = vmatpush1.bf16.msra.mxu0 %v11103_v23  ;;  %11877 = vst [vmem:[#allocation94_spill] sm:$0xff] %v11143_v15  ;;  %v11153_v17 = vld [vmem:[#allocation25 + $0x68] ss:$16 sps:$4 sm:$0xff]   ;;  %11880 = vst [vmem:[#allocation97_spill] sm:$0xff] %v11161_v30 }
0x142f   :  { %6625 = vmatprep.mubr.bf16.mxu1 %v5846_v11  ;;  %6666 = vmatprep.mubr.bf16.mxu0 %v5848_v54  ;;  %v11135_v54 = vld [vmem:[#allocation25 + $0x8c] ss:$16 sps:$4 sm:$0xff]   ;;  %v11155_v28 = vld [vmem:[#allocation25 + $0x268] ss:$16 sps:$4 sm:$0xff]  }
0x1430   :  { %6595 = vmatprep.subr.bf16.mxu1 %v11109_v13  ;;  %6636 = vmatprep.subr.bf16.mxu0 %v11111_v60  ;;  %v11137_v11 = vld [vmem:[#allocation25 + $0x28c] ss:$16 sps:$4 sm:$0xff]   ;;  %11879 = vst [vmem:[#allocation96_spill] sm:$0xff] %v11155_v28  ;;  %v11191_v23 = vld [vmem:[#allocation25 + $0x208] ss:$16 sps:$4 sm:$0xff]  }
0x1431   :  { %11876 = vst [vmem:[#allocation93_spill] sm:$0xff] %v11137_v11  ;;  %v11185_v60 = vld [vmem:[#allocation25 + $0x20c] ss:$16 sps:$4 sm:$0xff]   ;;  %11889 = vst [vmem:[#allocation106_spill] sm:$0xff] %v11191_v23 }
0x1432   :  { %6596 = vmatpush1.bf16.msra.mxu1 %v11117_v22  ;;  %6637 = vmatpush1.bf16.msra.mxu0 %v11119_v24  ;;  %v11179_v24 = vld [vmem:[#allocation25 + $0x228] ss:$16 sps:$4 sm:$0xff]   ;;  %11887 = vst [vmem:[#allocation104_spill] sm:$0xff] %v11185_v60 }
0x1433   :  { %6597 = vmatprep.subr.bf16.mxu1 %v11121_v26  ;;  %6638 = vmatprep.subr.bf16.mxu0 %v11123_v25  ;;  %v11173_v25 = vld [vmem:[#allocation25 + $0x22c] ss:$16 sps:$4 sm:$0xff]   ;;  %11885 = vst [vmem:[#allocation102_spill] sm:$0xff] %v11179_v24 }
0x1434   :  { %11883 = vst [vmem:[#allocation100_spill] sm:$0xff] %v11173_v25 }
0x1436   :  { %6598 = vmatpush1.bf16.msra.mxu1 %v11129_v29  ;;  %6639 = vmatpush1.bf16.msra.mxu0 %v11131_v42  ;;  %v11167_v42 = vld [vmem:[#allocation25 + $0x248] ss:$16 sps:$4 sm:$0xff]  }
0x1437   :  { %6599 = vmatprep.subr.bf16.mxu1 %v11135_v54  ;;  %6640 = vmatprep.subr.bf16.mxu0 %v11137_v11  ;;  %v11165_v11 = vld [vmem:[#allocation25 + $0x48] ss:$16 sps:$4 sm:$0xff]   ;;  %11881 = vst [vmem:[#allocation98_spill] sm:$0xff] %v11167_v42 }
0x143a   :  { %6600 = vmatpush1.bf16.msra.mxu1 %v11141_v14  ;;  %6641 = vmatpush1.bf16.msra.mxu0 %v11143_v15  ;;  %v11171_v15 = vld [vmem:[#allocation25 + $0x2c] ss:$16 sps:$4 sm:$0xff]  }
0x143b   :  { %6601 = vmatprep.subr.bf16.mxu1 %v11147_v16  ;;  %6642 = vmatprep.subr.bf16.mxu0 %v11149_v31  ;;  %11882 = vst [vmem:[#allocation99_spill] sm:$0xff] %v11171_v15  ;;  %v11177_v31 = vld [vmem:[#allocation25 + $0x28] ss:$16 sps:$4 sm:$0xff]  }
0x143c   :  { %11884 = vst [vmem:[#allocation101_spill] sm:$0xff] %v11177_v31 }
0x143e   :  { %6602 = vmatpush1.bf16.msra.mxu1 %v11153_v17  ;;  %6643 = vmatpush1.bf16.msra.mxu0 %v11155_v28  ;;  %v11183_v28 = vld [vmem:[#allocation25 + $0xc] ss:$16 sps:$4 sm:$0xff]  }
0x143f   :  { %6603 = vmatprep.subr.bf16.mxu1 %v11159_v32  ;;  %6644 = vmatprep.subr.bf16.mxu0 %v11161_v30  ;;  %11886 = vst [vmem:[#allocation103_spill] sm:$0xff] %v11183_v28  ;;  %v11189_v30 = vld [vmem:[#allocation25 + $0x8] ss:$16 sps:$4 sm:$0xff]  }
0x1440   :  { %11888 = vst [vmem:[#allocation105_spill] sm:$0xff] %v11189_v30 }
0x1442   :  { %6604 = vmatpush1.bf16.msra.mxu1 %v11165_v11  ;;  %6645 = vmatpush1.bf16.msra.mxu0 %v11167_v42  ;;  %v11195_v42 = vld [vmem:[#allocation25 + $0x1ec] ss:$16 sps:$4 sm:$0xff]  }
0x1443   :  { %6605 = vmatprep.subr.bf16.mxu1 %v11171_v15  ;;  %6646 = vmatprep.subr.bf16.mxu0 %v11173_v25  ;;  %11890 = vst [vmem:[#allocation107_spill] sm:$0xff] %v11195_v42  ;;  %v11197_v15 = vld [vmem:[#allocation25 + $0x3ec] ss:$16 sps:$4 sm:$0xff]   ;;  %v11201_v25 = vld [vmem:[#allocation25 + $0x1e8] ss:$16 sps:$4 sm:$0xff]  }
0x1444   :  { %11891 = vst [vmem:[#allocation108_spill] sm:$0xff] %v11197_v15  ;;  %11892 = vst [vmem:[#allocation109_spill] sm:$0xff] %v11201_v25 }
0x1446   :  { %6606 = vmatpush1.bf16.msra.mxu1 %v11177_v31  ;;  %6647 = vmatpush1.bf16.msra.mxu0 %v11179_v24  ;;  %v11203_v31 = vld [vmem:[#allocation25 + $0x3e8] ss:$16 sps:$4 sm:$0xff]   ;;  %v11207_v24 = vld [vmem:[#allocation25 + $0x1cc] ss:$16 sps:$4 sm:$0xff]  }
0x1447   :  { %6607 = vmatprep.subr.bf16.mxu1 %v11183_v28  ;;  %6648 = vmatprep.subr.bf16.mxu0 %v11185_v60  ;;  %11893 = vst [vmem:[#allocation110_spill] sm:$0xff] %v11203_v31  ;;  %11894 = vst [vmem:[#allocation111_spill] sm:$0xff] %v11207_v24  ;;  %v11209_v28 = vld [vmem:[#allocation25 + $0x3cc] ss:$16 sps:$4 sm:$0xff]   ;;  %v11213_v60 = vld [vmem:[#allocation25 + $0x1c8] ss:$16 sps:$4 sm:$0xff]  }
0x1448   :  { %11895 = vst [vmem:[#allocation112_spill] sm:$0xff] %v11209_v28  ;;  %11896 = vst [vmem:[#allocation113_spill] sm:$0xff] %v11213_v60 }
0x144a   :  { %6608 = vmatpush1.bf16.msra.mxu1 %v11189_v30  ;;  %6649 = vmatpush1.bf16.msra.mxu0 %v11191_v23  ;;  %v11215_v30 = vld [vmem:[#allocation25 + $0x3c8] ss:$16 sps:$4 sm:$0xff]   ;;  %v11219_v23 = vld [vmem:[#allocation25 + $0x1ac] ss:$16 sps:$4 sm:$0xff]  }
0x144b   :  { %6609 = vmatprep.subr.bf16.mxu1 %v11195_v42  ;;  %6650 = vmatprep.subr.bf16.mxu0 %v11197_v15  ;;  %11897 = vst [vmem:[#allocation114_spill] sm:$0xff] %v11215_v30  ;;  %11898 = vst [vmem:[#allocation115_spill] sm:$0xff] %v11219_v23  ;;  %v11221_v42 = vld [vmem:[#allocation25 + $0x3ac] ss:$16 sps:$4 sm:$0xff]   ;;  %v11225_v15 = vld [vmem:[#allocation25 + $0x1a8] ss:$16 sps:$4 sm:$0xff]  }
0x144c   :  { %11899 = vst [vmem:[#allocation116_spill] sm:$0xff] %v11221_v42  ;;  %11900 = vst [vmem:[#allocation117_spill] sm:$0xff] %v11225_v15 }
0x144e   :  { %6610 = vmatpush2.bf16.msra.mxu1 %v11201_v25  ;;  %6651 = vmatpush2.bf16.msra.mxu0 %v11203_v31  ;;  %v11227_v25 = vld [vmem:[#allocation25 + $0x3a8] ss:$16 sps:$4 sm:$0xff]   ;;  %v11231_v31 = vld [vmem:[#allocation25 + $0x18c] ss:$16 sps:$4 sm:$0xff]  }
0x144f   :  { %6611 = vmatprep.subr.bf16.mxu1 %v11207_v24  ;;  %6652 = vmatprep.subr.bf16.mxu0 %v11209_v28  ;;  %11901 = vst [vmem:[#allocation118_spill] sm:$0xff] %v11227_v25  ;;  %11902 = vst [vmem:[#allocation119_spill] sm:$0xff] %v11231_v31  ;;  %v11233_v24 = vld [vmem:[#allocation25 + $0x38c] ss:$16 sps:$4 sm:$0xff]   ;;  %v11237_v28 = vld [vmem:[#allocation25 + $0x188] ss:$16 sps:$4 sm:$0xff]  }
0x1450   :  { %11903 = vst [vmem:[#allocation120_spill] sm:$0xff] %v11233_v24  ;;  %11904 = vst [vmem:[#allocation121_spill] sm:$0xff] %v11237_v28 }
0x1452   :  { %6612 = vmatpush2.bf16.msra.mxu1 %v11213_v60  ;;  %6653 = vmatpush2.bf16.msra.mxu0 %v11215_v30  ;;  %v11239_v60 = vld [vmem:[#allocation25 + $0x388] ss:$16 sps:$4 sm:$0xff]   ;;  %v11243_v30 = vld [vmem:[#allocation25 + $0x16c] ss:$16 sps:$4 sm:$0xff]  }
0x1453   :  { %6613 = vmatprep.subr.bf16.mxu1 %v11219_v23  ;;  %6654 = vmatprep.subr.bf16.mxu0 %v11221_v42  ;;  %11905 = vst [vmem:[#allocation122_spill] sm:$0xff] %v11239_v60  ;;  %11906 = vst [vmem:[#allocation123_spill] sm:$0xff] %v11243_v30  ;;  %v11245_v23 = vld [vmem:[#allocation25 + $0x36c] ss:$16 sps:$4 sm:$0xff]   ;;  %v11249_v42 = vld [vmem:[#allocation25 + $0x168] ss:$16 sps:$4 sm:$0xff]  }
0x1454   :  { %11907 = vst [vmem:[#allocation124_spill] sm:$0xff] %v11245_v23  ;;  %11908 = vst [vmem:[#allocation125_spill] sm:$0xff] %v11249_v42 }
0x1456   :  { %6614 = vmatpush2.bf16.msra.mxu1 %v11225_v15  ;;  %6655 = vmatpush2.bf16.msra.mxu0 %v11227_v25  ;;  %v11251_v15 = vld [vmem:[#allocation25 + $0x368] ss:$16 sps:$4 sm:$0xff]   ;;  %v11255_v25 = vld [vmem:[#allocation25 + $0x14c] ss:$16 sps:$4 sm:$0xff]  }
0x1457   :  { %6615 = vmatprep.subr.bf16.mxu1 %v11231_v31  ;;  %6656 = vmatprep.subr.bf16.mxu0 %v11233_v24  ;;  %11909 = vst [vmem:[#allocation126_spill] sm:$0xff] %v11251_v15  ;;  %11910 = vst [vmem:[#allocation127_spill] sm:$0xff] %v11255_v25  ;;  %v11257_v31 = vld [vmem:[#allocation25 + $0x34c] ss:$16 sps:$4 sm:$0xff]   ;;  %v11261_v24 = vld [vmem:[#allocation25 + $0x148] ss:$16 sps:$4 sm:$0xff]  }
0x1458   :  { %11911 = vst [vmem:[#allocation128_spill] sm:$0xff] %v11257_v31  ;;  %11912 = vst [vmem:[#allocation129_spill] sm:$0xff] %v11261_v24 }
0x145a   :  { %6616 = vmatpush2.bf16.msra.mxu1 %v11237_v28  ;;  %6657 = vmatpush2.bf16.msra.mxu0 %v11239_v60  ;;  %v11263_v28 = vld [vmem:[#allocation25 + $0x348] ss:$16 sps:$4 sm:$0xff]   ;;  %v11267_v60 = vld [vmem:[#allocation25 + $0x12c] ss:$16 sps:$4 sm:$0xff]  }
0x145b   :  { %6617 = vmatprep.subr.bf16.mxu1 %v11243_v30  ;;  %6658 = vmatprep.subr.bf16.mxu0 %v11245_v23  ;;  %11913 = vst [vmem:[#allocation130_spill] sm:$0xff] %v11263_v28  ;;  %v11269_v30 = vld [vmem:[#allocation25 + $0x32c] ss:$16 sps:$4 sm:$0xff]   ;;  %v11273_v23 = vld [vmem:[#allocation25 + $0x128] ss:$16 sps:$4 sm:$0xff]  }
0x145c   :  { %11914 = vst [vmem:[#allocation131_spill] sm:$0xff] %v11269_v30 }
0x145e   :  { %6618 = vmatpush2.bf16.msra.mxu1 %v11249_v42  ;;  %6659 = vmatpush2.bf16.msra.mxu0 %v11251_v15  ;;  %v11275_v42 = vld [vmem:[#allocation25 + $0x328] ss:$16 sps:$4 sm:$0xff]   ;;  %v11279_v15 = vld [vmem:[#allocation25 + $0x10c] ss:$16 sps:$4 sm:$0xff]  }
0x145f   :  { %6619 = vmatprep.subr.bf16.mxu1 %v11255_v25  ;;  %6660 = vmatprep.subr.bf16.mxu0 %v11257_v31  ;;  %11915 = vst [vmem:[#allocation132_spill] sm:$0xff] %v11275_v42  ;;  %v11281_v25 = vld [vmem:[#allocation25 + $0x30c] ss:$16 sps:$4 sm:$0xff]   ;;  %v11285_v31 = vld [vmem:[#allocation25 + $0x108] ss:$16 sps:$4 sm:$0xff]  }
0x1460   :  { %11916 = vst [vmem:[#allocation133_spill] sm:$0xff] %v11281_v25 }
0x1462   :  { %6620 = vmatpush2.bf16.msra.mxu1 %v11261_v24  ;;  %6661 = vmatpush2.bf16.msra.mxu0 %v11263_v28  ;;  %v11287_v24 = vld [vmem:[#allocation25 + $0x308] ss:$16 sps:$4 sm:$0xff]  }
0x1463   :  { %6621 = vmatprep.subr.bf16.mxu1 %v11267_v60  ;;  %6662 = vmatprep.subr.bf16.mxu0 %v11269_v30  ;;  %11917 = vst [vmem:[#allocation134_spill] sm:$0xff] %v11287_v24 }
0x1466   :  { %6622 = vmatpush2.bf16.msra.mxu1 %v11273_v23  ;;  %6663 = vmatpush2.bf16.msra.mxu0 %v11275_v42 }
0x1467   :  { %6623 = vmatprep.subr.bf16.mxu1 %v11279_v15  ;;  %6664 = vmatprep.subr.bf16.mxu0 %v11281_v25 }
0x146a   :  { %6624 = vmatpush2.bf16.msra.mxu1 %v11285_v31  ;;  %6665 = vmatpush2.bf16.msra.mxu0 %v11287_v24 }
0x146b   :  { %6683 = vmatprep.subr.bf16.mxu1 %v10890_v49  ;;  %6724 = vmatprep.subr.bf16.mxu0 %v10892_v12 }
0x146d   :  { %6626 = vmatmul.mubr.bf16.vlgmr.msra.gmra.mxu1 %v11105_v57  ;;  %6667 = vmatmul.mubr.bf16.vlgmr.msra.gmra.mxu0 %v11107_v52  ;;  %v11918_v52 = vld [vmem:[#allocation64_spill] sm:$0xff]  ;;  %v11919_v57 = vld [vmem:[#allocation65_spill] sm:$0xff] }
0x146e   :  { %6684 = vmatpush1.bf16.msra.mxu1 %v10898_v18  ;;  %6725 = vmatpush1.bf16.msra.mxu0 %v10900_v38 }
0x146f   :  { %6685 = vmatprep.subr.bf16.mxu1 %v10902_v27  ;;  %6726 = vmatprep.subr.bf16.mxu0 %v10904_v33 }
0x1472   :  { %6686 = vmatpush1.bf16.msra.mxu1 %v10908_v59  ;;  %6727 = vmatpush1.bf16.msra.mxu0 %v10910_v19 }
0x1473   :  { %6687 = vmatprep.subr.bf16.mxu1 %v10914_v35  ;;  %6728 = vmatprep.subr.bf16.mxu0 %v10916_v36 }
0x1476   :  { %6688 = vmatpush1.bf16.msra.mxu1 %v10920_v37  ;;  %6729 = vmatpush1.bf16.msra.mxu0 %v10922_v41  ;;  %v11941_v41 = vld [vmem:[#allocation87_spill] sm:$0xff] }
0x1477   :  { %6689 = vmatprep.subr.bf16.mxu1 %v10926_v39  ;;  %6730 = vmatprep.subr.bf16.mxu0 %v10928_v34  ;;  %v11939_v34 = vld [vmem:[#allocation85_spill] sm:$0xff] }
0x147a   :  { %6690 = vmatpush1.bf16.msra.mxu1 %v10932_v40  ;;  %6731 = vmatpush1.bf16.msra.mxu0 %v10934_v43  ;;  %v11937_v43 = vld [vmem:[#allocation83_spill] sm:$0xff] }
0x147b   :  { %6691 = vmatprep.subr.bf16.mxu1 %v10938_v44  ;;  %6732 = vmatprep.subr.bf16.mxu0 %v10940_v51  ;;  %v11935_v51 = vld [vmem:[#allocation81_spill] sm:$0xff] }
0x147e   :  { %6692 = vmatpush1.bf16.msra.mxu1 %v10944_v53  ;;  %6733 = vmatpush1.bf16.msra.mxu0 %v10946_v55  ;;  %v11933_v55 = vld [vmem:[#allocation79_spill] sm:$0xff] }
0x147f   :  { %6693 = vmatprep.subr.bf16.mxu1 %v10950_v56  ;;  %6734 = vmatprep.subr.bf16.mxu0 %v10952_v58  ;;  %v11931_v58 = vld [vmem:[#allocation77_spill] sm:$0xff] }
0x1482   :  { %6694 = vmatpush1.bf16.msra.mxu1 %v10956_v61  ;;  %6735 = vmatpush1.bf16.msra.mxu0 %v10958_v62  ;;  %v11929_v62 = vld [vmem:[#allocation75_spill] sm:$0xff] }
0x1483   :  { %6695 = vmatprep.subr.bf16.mxu1 %v10962_v45  ;;  %6736 = vmatprep.subr.bf16.mxu0 %v10964_v46  ;;  %v11927_v46 = vld [vmem:[#allocation73_spill] sm:$0xff] }
0x1486   :  { %6696 = vmatpush1.bf16.msra.mxu1 %v10968_v47  ;;  %6737 = vmatpush1.bf16.msra.mxu0 %v10970_v48  ;;  %v11925_v48 = vld [vmem:[#allocation71_spill] sm:$0xff] }
0x1487   :  { %6697 = vmatprep.subr.bf16.mxu1 %v10974_v63  ;;  %6738 = vmatprep.subr.bf16.mxu0 %v10976_v0  ;;  %v11923_v0 = vld [vmem:[#allocation69_spill] sm:$0xff] }
0x148a   :  { %6698 = vmatpush1.bf16.msra.mxu1 %v10980_v1  ;;  %6739 = vmatpush1.bf16.msra.mxu0 %v10982_v2  ;;  %v11921_v2 = vld [vmem:[#allocation67_spill] sm:$0xff] }
0x148b   :  { %6699 = vmatprep.subr.bf16.mxu1 %v10986_v3  ;;  %6740 = vmatprep.subr.bf16.mxu0 %v10988_v50  ;;  %v11920_v50 = vld [vmem:[#allocation66_spill] sm:$0xff] }
0x148e   :  { %6700 = vmatpush2.bf16.msra.mxu1 %v10992_v4  ;;  %6741 = vmatpush2.bf16.msra.mxu0 %v10994_v5  ;;  %v11922_v5 = vld [vmem:[#allocation68_spill] sm:$0xff] }
0x148f   :  { %6701 = vmatprep.subr.bf16.mxu1 %v10998_v7  ;;  %6742 = vmatprep.subr.bf16.mxu0 %v11000_v6  ;;  %v11924_v6 = vld [vmem:[#allocation70_spill] sm:$0xff] }
0x1492   :  { %6702 = vmatpush2.bf16.msra.mxu1 %v11004_v8  ;;  %6743 = vmatpush2.bf16.msra.mxu0 %v11006_v10  ;;  %v11926_v10 = vld [vmem:[#allocation72_spill] sm:$0xff] }
0x1493   :  { %6703 = vmatprep.subr.bf16.mxu1 %v11010_v9  ;;  %6744 = vmatprep.subr.bf16.mxu0 %v11012_v20  ;;  %v11928_v20 = vld [vmem:[#allocation74_spill] sm:$0xff] }
0x1496   :  { %6704 = vmatpush2.bf16.msra.mxu1 %v11918_v52  ;;  %6745 = vmatpush2.bf16.msra.mxu0 %v11919_v57  ;;  %v11930_v57 = vld [vmem:[#allocation76_spill] sm:$0xff] }
0x1497   :  { %6705 = vmatprep.subr.bf16.mxu1 %v11920_v50  ;;  %6746 = vmatprep.subr.bf16.mxu0 %v11921_v2  ;;  %v11932_v2 = vld [vmem:[#allocation78_spill] sm:$0xff] }
0x149a   :  { %6706 = vmatpush2.bf16.msra.mxu1 %v11922_v5  ;;  %6747 = vmatpush2.bf16.msra.mxu0 %v11923_v0  ;;  %v11934_v0 = vld [vmem:[#allocation80_spill] sm:$0xff] }
0x149b   :  { %6707 = vmatprep.subr.bf16.mxu1 %v11924_v6  ;;  %6748 = vmatprep.subr.bf16.mxu0 %v11925_v48  ;;  %v11936_v48 = vld [vmem:[#allocation82_spill] sm:$0xff] }
0x149e   :  { %6708 = vmatpush2.bf16.msra.mxu1 %v11926_v10  ;;  %6749 = vmatpush2.bf16.msra.mxu0 %v11927_v46  ;;  %v11938_v46 = vld [vmem:[#allocation84_spill] sm:$0xff] }
0x149f   :  { %6709 = vmatprep.subr.bf16.mxu1 %v11928_v20  ;;  %6750 = vmatprep.subr.bf16.mxu0 %v11929_v62  ;;  %v11940_v62 = vld [vmem:[#allocation86_spill] sm:$0xff] }
0x14a2   :  { %6710 = vmatpush2.bf16.msra.mxu1 %v11930_v57  ;;  %6751 = vmatpush2.bf16.msra.mxu0 %v11931_v58  ;;  %v11942_v58 = vld [vmem:[#allocation41_spill] sm:$0xff] }
0x14a3   :  { %6711 = vmatprep.subr.bf16.mxu1 %v11932_v2  ;;  %6752 = vmatprep.subr.bf16.mxu0 %v11933_v55  ;;  %v5849_v55 = vld [vmem:[%s11636_s18] sm:$0xf]  ;;  %s10226_s18 = smov [#allocation29]  }
0x14a4   :  { %v11365_v36 = vrot.slane %v5849_v55, %v11942_v58  ;;  %s7550_s25 = sshll.u32 %s10226_s18, 4  ;;  %s7551_s25 = int_to_ptr.vmem [resolvable:$true] %s7550_s25 }
0x14a5   :  { %s10160_s0 = scalar_lea.vmem %s7551_s25, 32  ;;  %p10165_p2 = scmp.lt.s32.totalorder %s7551_s25, %s7551_s25 }
0x14a6   :  { %6712 = vmatpush2.bf16.msra.mxu1 %v11934_v0  ;;  %6753 = vmatpush2.bf16.msra.mxu0 %v11935_v51  ;;  %v11943_v51 = vld [vmem:[#allocation42_spill] sm:$0xff]  ;;  %p10161_p1 = scmp.ne.s32.totalorder %s7551_s25, %s10160_s0  ;;  %p10166_p3 = scmp.lt.s32.totalorder %s10160_s0, %s10160_s0 }
0x14a7   :  { %6713 = vmatprep.subr.bf16.mxu1 %v11936_v48  ;;  %6754 = vmatprep.subr.bf16.mxu0 %v11937_v43  ;;  %v11368_v19 = vrot.slane %v5849_v55, %v11943_v51  ;;  %v11950_v51 = vld [vmem:[#allocation111_spill] sm:$0xff] }
0x14a8   :  { %p10167_p4 = por %p10166_p3, %p10165_p2 }
0x14aa   :  { %6714 = vmatpush2.bf16.msra.mxu1 %v11938_v46  ;;  %6755 = vmatpush2.bf16.msra.mxu0 %v11939_v34  ;;  %p10168_p5 = pnand %p10167_p4, %p10161_p1 }
0x14ab   :  { %6765 = vmatprep.subr.bf16.mxu1 %v11940_v62  ;;  %6806 = vmatprep.subr.bf16.mxu0 %v11941_v41 }
0x14ed   :  { %v6545_v33 = vpop.f32.mrf.mxu1  ;;  %v6586_v43 = vpop.f32.mrf.mxu0 }
0x14ee   :  { %v6546_v38 = vadd.f32 %v6545_v33, %v11365_v36  ;;  %v11946_v33 = vld [vmem:[#allocation103_spill] sm:$0xff] }
0x14ef   :  { %v6547_v12 = vpop.f32.mrf.mxu1  ;;  %v6588_v34 = vpop.f32.mrf.mxu0 }
0x14f0   :  { %v6587_v46 = vadd.f32 %v6586_v43, %v6546_v38  ;;  %v6548_v62 = vadd.f32 %v6547_v12, %v11368_v19  ;;  %v11944_v12 = vld [vmem:[#allocation99_spill] sm:$0xff]  ;;  %v11945_v38 = vld [vmem:[#allocation101_spill] sm:$0xff] }
0x14f1   :  { %v6549_v41 = vpop.f32.mrf.mxu1  ;;  %v6590_v24 = vpop.f32.mrf.mxu0  ;;  %v11949_v43 = vld [vmem:[#allocation109_spill] sm:$0xff] }
0x14f2   :  { %v6589_v48 = vadd.f32 %v6588_v34, %v6548_v62  ;;  %v6675_v0 = vmax.f32 %v6587_v46, 0.0  ;;  %v11947_v41 = vld [vmem:[#allocation105_spill] sm:$0xff]  ;;  %v11948_v34 = vld [vmem:[#allocation107_spill] sm:$0xff] }
0x14f3   :  { %v6550_v25 = vpop.f32.mrf.mxu1  ;;  %v6591_v42 = vpop.f32.mrf.mxu0  ;;  %v11951_v62 = vld [vmem:[#allocation113_spill] sm:$0xff]  ;;  %v11952_v46 = vld [vmem:[#allocation115_spill] sm:$0xff] }
0x14f4   :  { %v6676_v58 = vmax.f32 %v6589_v48, 0.0  ;;  %v6679_v57 = vpack.c.bf16 %v6675_v0, %v6675_v0  ;;  %v11953_v48 = vld [vmem:[#allocation117_spill] sm:$0xff]  ;;  %v11954_v0 = vld [vmem:[#allocation119_spill] sm:$0xff]  ;;  %v11957_v25 = vld [vmem:[#allocation40_spill] sm:$0xff] }
0x14f5   :  { %v11956_v24 = vld [vmem:[#allocation123_spill] sm:$0xff]  ;;  %v11958_v42 = vsub.s32 2, %v11957_v25 }
0x14f6   :  { %v6680_v2 = vpack.c.bf16 %v6676_v58, %v6676_v58 }
0x14f7   :  { %v11398_v58 = vrot.slane %v5849_v55, %v11958_v42 }
0x14f8   :  { %6715 = vmatprep.mubr.bf16.mxu1 %v6680_v2 }
0x14f9   :  { %6716 = vmatmul.mubr.bf16.vlgmr.msra.gmra.mxu1 %v6679_v57  ;;  %11959 = vst [vmem:[#allocation64_spill] sm:$0xff] %v11398_v58 }
0x14fa   :  { %6766 = vmatpush1.bf16.msra.mxu1 %v11101_v21  ;;  %6797 = vmatprep.mubr.bf16.mxu1 %v6680_v2  ;;  %v11955_v2 = vld [vmem:[#allocation121_spill] sm:$0xff] }
0x14fb   :  { %6767 = vmatprep.subr.bf16.mxu1 %v11109_v13 }
0x14fe   :  { %6768 = vmatpush1.bf16.msra.mxu1 %v11117_v22 }
0x14ff   :  { %6769 = vmatprep.subr.bf16.mxu1 %v11121_v26 }
0x1502   :  { %6770 = vmatpush1.bf16.msra.mxu1 %v11129_v29 }
0x1503   :  { %6771 = vmatprep.subr.bf16.mxu1 %v11135_v54 }
0x1506   :  { %6772 = vmatpush1.bf16.msra.mxu1 %v11141_v14 }
0x1507   :  { %6773 = vmatprep.subr.bf16.mxu1 %v11147_v16 }
0x150a   :  { %6774 = vmatpush1.bf16.msra.mxu1 %v11153_v17 }
0x150b   :  { %6775 = vmatprep.subr.bf16.mxu1 %v11159_v32 }
0x150e   :  { %6776 = vmatpush1.bf16.msra.mxu1 %v11165_v11 }
0x150f   :  { %6777 = vmatprep.subr.bf16.mxu1 %v11944_v12 }
0x1512   :  { %6778 = vmatpush1.bf16.msra.mxu1 %v11945_v38 }
0x1513   :  { %6779 = vmatprep.subr.bf16.mxu1 %v11946_v33 }
0x1516   :  { %6780 = vmatpush1.bf16.msra.mxu1 %v11947_v41  ;;  %v11963_v41 = vld [vmem:[#allocation129_spill] sm:$0xff] }
0x1517   :  { %6781 = vmatprep.subr.bf16.mxu1 %v11948_v34  ;;  %v11960_v34 = vld [vmem:[#allocation125_spill] sm:$0xff] }
0x151a   :  { %6782 = vmatpush2.bf16.msra.mxu1 %v11949_v43  ;;  %v11961_v43 = vld [vmem:[#allocation127_spill] sm:$0xff] }
0x151b   :  { %6783 = vmatprep.subr.bf16.mxu1 %v11950_v51 }
0x151e   :  { %6784 = vmatpush2.bf16.msra.mxu1 %v11951_v62  ;;  %v11962_v62 = vsub.s32 3, %v11957_v25 }
0x151f   :  { %6785 = vmatprep.subr.bf16.mxu1 %v11952_v46 }
0x1520   :  { %v11404_v51 = vrot.slane %v5849_v55, %v11962_v62 }
0x1522   :  { %6786 = vmatpush2.bf16.msra.mxu1 %v11953_v48 }
0x1523   :  { %6787 = vmatprep.subr.bf16.mxu1 %v11954_v0 }
0x1526   :  { %6788 = vmatpush2.bf16.msra.mxu1 %v11955_v2 }
0x1527   :  { %6789 = vmatprep.subr.bf16.mxu1 %v11956_v24 }
0x152a   :  { %6790 = vmatpush2.bf16.msra.mxu1 %v11960_v34 }
0x152b   :  { %6791 = vmatprep.subr.bf16.mxu1 %v11961_v43 }
0x152d   :  { %v6627_v46 = vpop.f32.mrf.mxu1  ;;  %v6668_v48 = vpop.f32.mrf.mxu0 }
0x152e   :  { %v6628_v0 = vadd.f32 %v6627_v46, %v11398_v58  ;;  %6792 = vmatpush2.bf16.msra.mxu1 %v11963_v41 }
0x152f   :  { %v6629_v2 = vpop.f32.mrf.mxu1  ;;  %v6670_v24 = vpop.f32.mrf.mxu0  ;;  %6793 = vmatprep.subr.bf16.mxu1 %v11267_v60 }
0x1530   :  { %v6669_v42 = vadd.f32 %v6668_v48, %v6628_v0  ;;  %v6630_v33 = vadd.f32 %v6629_v2, %v11404_v51  ;;  %v11970_v48 = vld [vmem:[#allocation94_spill] sm:$0xff] }
0x1531   :  { %v6631_v34 = vpop.f32.mrf.mxu1  ;;  %v6672_v38 = vpop.f32.mrf.mxu0  ;;  %v11995_v0 = vld [vmem:[#allocation82_spill] sm:$0xff] }
0x1532   :  { %v6671_v43 = vadd.f32 %v6670_v24, %v6630_v33  ;;  %6794 = vmatpush2.bf16.msra.mxu1 %v11273_v23  ;;  %v6677_v55 = vmax.f32 %v6669_v42, 0.0  ;;  %v11964_v38 = vld [vmem:[#allocation88_spill] sm:$0xff]  ;;  %v11965_v33 = vld [vmem:[#allocation89_spill] sm:$0xff]  ;;  %v11966_v34 = vld [vmem:[#allocation90_spill] sm:$0xff] }
0x1533   :  { %v6632_v62 = vpop.f32.mrf.mxu1  ;;  %v6673_v25 = vpop.f32.mrf.mxu0  ;;  %6795 = vmatprep.subr.bf16.mxu1 %v11279_v15  ;;  %v11996_v2 = vld [vmem:[#allocation134_spill] sm:$0xff]  ;;  %v12001_v42 = vld [vmem:[#allocation45_spill] sm:$0xff] }
0x1534   :  { %v6678_v46 = vmax.f32 %v6671_v43, 0.0  ;;  %v11413_v41 = vpack.c.bf16 %v6677_v55, %v6677_v55  ;;  %v11967_v43 = vld [vmem:[#allocation91_spill] sm:$0xff]  ;;  %v11999_v24 = vld [vmem:[#allocation86_spill] sm:$0xff]  ;;  %v12004_v25 = vld [vmem:[#allocation48_spill] sm:$0xff] }
0x1535   :  { %v12002_v55 = vld [vmem:[#allocation46_spill] sm:$0xff]  ;;  %v12003_v62 = vld [vmem:[#allocation47_spill] sm:$0xff] }
0x1536   :  { %v6682_v58 = vpack.c.bf16 %v6678_v46, %v6678_v46  ;;  %6796 = vmatpush2.bf16.msra.mxu1 %v11285_v31  ;;  %v12005_v46 = vld [vmem:[#allocation49_spill] sm:$0xff] }
0x1537   :  { %6855 = vmatprep.subr.bf16.mxu1 %v10890_v49  ;;  %v11968_v49 = vld [vmem:[#allocation92_spill] sm:$0xff] }
0x1538   :  { %6756 = vmatprep.mubr.bf16.mxu0 %v6682_v58 }
0x1539   :  { %6757 = vmatmul.mubr.bf16.vlgmr.msra.gmra.mxu0 %v11413_v41  ;;  %6798 = vmatmul.mubr.bf16.vlgmr.msra.gmra.mxu1 %v6679_v57  ;;  %v11969_v57 = vld [vmem:[#allocation93_spill] sm:$0xff] }
0x153a   :  { %6807 = vmatpush1.bf16.msra.mxu0 %v11964_v38  ;;  %6838 = vmatprep.mubr.bf16.mxu0 %v6682_v58  ;;  %v12000_v58 = vld [vmem:[#allocation44_spill] sm:$0xff] }
0x153b   :  { %6808 = vmatprep.subr.bf16.mxu0 %v11965_v33  ;;  %6856 = vmatpush1.bf16.msra.mxu1 %v10898_v18  ;;  %v11971_v18 = vld [vmem:[#allocation95_spill] sm:$0xff] }
0x153c   :  { %6857 = vmatprep.subr.bf16.mxu1 %v10902_v27  ;;  %v11972_v27 = vld [vmem:[#allocation96_spill] sm:$0xff] }
0x153e   :  { %6809 = vmatpush1.bf16.msra.mxu0 %v11966_v34 }
0x153f   :  { %6810 = vmatprep.subr.bf16.mxu0 %v11967_v43  ;;  %6858 = vmatpush1.bf16.msra.mxu1 %v10908_v59  ;;  %v11973_v59 = vld [vmem:[#allocation97_spill] sm:$0xff] }
0x1540   :  { %6859 = vmatprep.subr.bf16.mxu1 %v10914_v35  ;;  %v11974_v35 = vld [vmem:[#allocation98_spill] sm:$0xff] }
0x1542   :  { %6811 = vmatpush1.bf16.msra.mxu0 %v11968_v49 }
0x1543   :  { %6812 = vmatprep.subr.bf16.mxu0 %v11969_v57  ;;  %6860 = vmatpush1.bf16.msra.mxu1 %v10920_v37  ;;  %v11975_v37 = vld [vmem:[#allocation100_spill] sm:$0xff] }
0x1544   :  { %6861 = vmatprep.subr.bf16.mxu1 %v10926_v39  ;;  %v11976_v39 = vld [vmem:[#allocation102_spill] sm:$0xff] }
0x1546   :  { %6813 = vmatpush1.bf16.msra.mxu0 %v11970_v48 }
0x1547   :  { %6814 = vmatprep.subr.bf16.mxu0 %v11971_v18  ;;  %6862 = vmatpush1.bf16.msra.mxu1 %v10932_v40  ;;  %v11977_v40 = vld [vmem:[#allocation104_spill] sm:$0xff] }
0x1548   :  { %6863 = vmatprep.subr.bf16.mxu1 %v10938_v44  ;;  %v11978_v44 = vld [vmem:[#allocation106_spill] sm:$0xff] }
0x154a   :  { %6815 = vmatpush1.bf16.msra.mxu0 %v11972_v27 }
0x154b   :  { %6816 = vmatprep.subr.bf16.mxu0 %v11973_v59  ;;  %6864 = vmatpush1.bf16.msra.mxu1 %v10944_v53  ;;  %v11979_v53 = vld [vmem:[#allocation108_spill] sm:$0xff] }
0x154c   :  { %6865 = vmatprep.subr.bf16.mxu1 %v10950_v56  ;;  %v11980_v56 = vld [vmem:[#allocation110_spill] sm:$0xff] }
0x154e   :  { %6817 = vmatpush1.bf16.msra.mxu0 %v11974_v35 }
0x154f   :  { %6818 = vmatprep.subr.bf16.mxu0 %v11975_v37  ;;  %6866 = vmatpush1.bf16.msra.mxu1 %v10956_v61  ;;  %v11981_v61 = vld [vmem:[#allocation112_spill] sm:$0xff] }
0x1550   :  { %6867 = vmatprep.subr.bf16.mxu1 %v10962_v45  ;;  %v11982_v45 = vld [vmem:[#allocation114_spill] sm:$0xff] }
0x1552   :  { %6819 = vmatpush1.bf16.msra.mxu0 %v11976_v39 }
0x1553   :  { %6820 = vmatprep.subr.bf16.mxu0 %v11977_v40  ;;  %6868 = vmatpush1.bf16.msra.mxu1 %v10968_v47  ;;  %v11983_v47 = vld [vmem:[#allocation116_spill] sm:$0xff] }
0x1554   :  { %6869 = vmatprep.subr.bf16.mxu1 %v10974_v63  ;;  %v11984_v63 = vld [vmem:[#allocation118_spill] sm:$0xff] }
0x1556   :  { %6821 = vmatpush1.bf16.msra.mxu0 %v11978_v44 }
0x1557   :  { %6822 = vmatprep.subr.bf16.mxu0 %v11979_v53  ;;  %6870 = vmatpush1.bf16.msra.mxu1 %v10980_v1  ;;  %v11985_v1 = vld [vmem:[#allocation120_spill] sm:$0xff] }
0x1558   :  { %6871 = vmatprep.subr.bf16.mxu1 %v10986_v3  ;;  %v11986_v3 = vld [vmem:[#allocation122_spill] sm:$0xff] }
0x155a   :  { %6823 = vmatpush2.bf16.msra.mxu0 %v11980_v56 }
0x155b   :  { %6824 = vmatprep.subr.bf16.mxu0 %v11981_v61  ;;  %6872 = vmatpush2.bf16.msra.mxu1 %v10992_v4  ;;  %v11987_v4 = vld [vmem:[#allocation124_spill] sm:$0xff] }
0x155c   :  { %6873 = vmatprep.subr.bf16.mxu1 %v10998_v7  ;;  %v11988_v7 = vld [vmem:[#allocation126_spill] sm:$0xff] }
0x155e   :  { %6825 = vmatpush2.bf16.msra.mxu0 %v11982_v45 }
0x155f   :  { %6826 = vmatprep.subr.bf16.mxu0 %v11983_v47  ;;  %6874 = vmatpush2.bf16.msra.mxu1 %v11004_v8  ;;  %v11989_v8 = vld [vmem:[#allocation128_spill] sm:$0xff] }
0x1560   :  { %6875 = vmatprep.subr.bf16.mxu1 %v11010_v9  ;;  %v11991_v9 = vld [vmem:[#allocation78_spill] sm:$0xff] }
0x1562   :  { %6827 = vmatpush2.bf16.msra.mxu0 %v11984_v63 }
0x1563   :  { %6828 = vmatprep.subr.bf16.mxu0 %v11985_v1  ;;  %6876 = vmatpush2.bf16.msra.mxu1 %v11918_v52  ;;  %v11992_v52 = vld [vmem:[#allocation132_spill] sm:$0xff] }
0x1564   :  { %6877 = vmatprep.subr.bf16.mxu1 %v11920_v50  ;;  %v11990_v50 = vld [vmem:[#allocation76_spill] sm:$0xff] }
0x1566   :  { %6829 = vmatpush2.bf16.msra.mxu0 %v11986_v3 }
0x1567   :  { %6830 = vmatprep.subr.bf16.mxu0 %v11987_v4  ;;  %6878 = vmatpush2.bf16.msra.mxu1 %v11922_v5  ;;  %v11993_v5 = vld [vmem:[#allocation133_spill] sm:$0xff] }
0x1568   :  { %6879 = vmatprep.subr.bf16.mxu1 %v11924_v6  ;;  %v11994_v6 = vld [vmem:[#allocation80_spill] sm:$0xff] }
0x156a   :  { %6831 = vmatpush2.bf16.msra.mxu0 %v11988_v7 }
0x156b   :  { %6832 = vmatprep.subr.bf16.mxu0 %v11989_v8  ;;  %6880 = vmatpush2.bf16.msra.mxu1 %v11926_v10  ;;  %v11997_v10 = vld [vmem:[#allocation84_spill] sm:$0xff] }
0x156c   :  { %6881 = vmatprep.subr.bf16.mxu1 %v11928_v20  ;;  %v11998_v20 = vld [vmem:[#allocation43_spill] sm:$0xff] }
0x156e   :  { %6833 = vmatpush2.bf16.msra.mxu0 %v11263_v28 }
0x156f   :  { %6834 = vmatprep.subr.bf16.mxu0 %v11269_v30  ;;  %6882 = vmatpush2.bf16.msra.mxu1 %v11990_v50  ;;  %v12006_v50 = vld [vmem:[#allocation50_spill] sm:$0xff] }
0x1570   :  { %6883 = vmatprep.subr.bf16.mxu1 %v11991_v9  ;;  %v12007_v9 = vld [vmem:[#allocation51_spill] sm:$0xff] }
0x1572   :  { %6835 = vmatpush2.bf16.msra.mxu0 %v11992_v52 }
0x1573   :  { %6836 = vmatprep.subr.bf16.mxu0 %v11993_v5  ;;  %6884 = vmatpush2.bf16.msra.mxu1 %v11994_v6  ;;  %v12008_v6 = vld [vmem:[#allocation52_spill] sm:$0xff] }
0x1574   :  { %6885 = vmatprep.subr.bf16.mxu1 %v11995_v0  ;;  %v12009_v0 = vld [vmem:[#allocation53_spill] sm:$0xff] }
0x1576   :  { %6837 = vmatpush2.bf16.msra.mxu0 %v11996_v2 }
0x1577   :  { %6886 = vmatpush2.bf16.msra.mxu1 %v11997_v10  ;;  %6896 = vmatprep.subr.bf16.mxu0 %v11998_v20  ;;  %v12011_v10 = vld [vmem:[#allocation55_spill] sm:$0xff]  ;;  %v12012_v20 = vld [vmem:[#allocation56_spill] sm:$0xff] }
0x1578   :  { %6937 = vmatprep.subr.bf16.mxu1 %v11999_v24  ;;  %v12013_v24 = vld [vmem:[#allocation57_spill] sm:$0xff] }
0x1579   :  { %6839 = vmatmul.mubr.bf16.vlgmr.msra.gmra.mxu0 %v11413_v41  ;;  %v12010_v41 = vld [vmem:[#allocation54_spill] sm:$0xff] }
0x157a   :  { %6897 = vmatpush1.bf16.msra.mxu0 %v12000_v58  ;;  %v12014_v58 = vld [vmem:[#allocation58_spill] sm:$0xff] }
0x157b   :  { %6898 = vmatprep.subr.bf16.mxu0 %v12001_v42  ;;  %v12015_v42 = vld [vmem:[#allocation59_spill] sm:$0xff] }
0x157e   :  { %6899 = vmatpush1.bf16.msra.mxu0 %v12002_v55  ;;  %v12016_v55 = vld [vmem:[#allocation60_spill] sm:$0xff] }
0x157f   :  { %6900 = vmatprep.subr.bf16.mxu0 %v12003_v62  ;;  %v12017_v62 = vld [vmem:[#allocation61_spill] sm:$0xff] }
0x1582   :  { %6901 = vmatpush1.bf16.msra.mxu0 %v12004_v25  ;;  %v12018_v25 = vld [vmem:[#allocation62_spill] sm:$0xff] }
0x1583   :  { %6902 = vmatprep.subr.bf16.mxu0 %v12005_v46  ;;  %v12019_v46 = vld [vmem:[#allocation63_spill] sm:$0xff] }
0x1586   :  { %6903 = vmatpush1.bf16.msra.mxu0 %v12006_v50  ;;  %v12020_v50 = vld [vmem:[#allocation65_spill] sm:$0xff] }
0x1587   :  { %6904 = vmatprep.subr.bf16.mxu0 %v12007_v9  ;;  %v12021_v9 = vld [vmem:[#allocation67_spill] sm:$0xff] }
0x158a   :  { %6905 = vmatpush1.bf16.msra.mxu0 %v12008_v6  ;;  %v12022_v6 = vld [vmem:[#allocation69_spill] sm:$0xff] }
0x158b   :  { %6906 = vmatprep.subr.bf16.mxu0 %v12009_v0  ;;  %v12023_v0 = vld [vmem:[#allocation71_spill] sm:$0xff] }
0x158e   :  { %6907 = vmatpush1.bf16.msra.mxu0 %v12010_v41  ;;  %v12024_v41 = vld [vmem:[#allocation73_spill] sm:$0xff] }
0x158f   :  { %6908 = vmatprep.subr.bf16.mxu0 %v12011_v10  ;;  %v12025_v10 = vld [vmem:[#allocation75_spill] sm:$0xff] }
0x1592   :  { %6909 = vmatpush1.bf16.msra.mxu0 %v12012_v20  ;;  %v12026_v20 = vld [vmem:[#allocation77_spill] sm:$0xff] }
0x1593   :  { %6910 = vmatprep.subr.bf16.mxu0 %v12013_v24  ;;  %v12027_v24 = vld [vmem:[#allocation79_spill] sm:$0xff] }
0x1596   :  { %6911 = vmatpush1.bf16.msra.mxu0 %v12014_v58  ;;  %v12028_v58 = vld [vmem:[#allocation81_spill] sm:$0xff] }
0x1597   :  { %6912 = vmatprep.subr.bf16.mxu0 %v12015_v42  ;;  %v12029_v42 = vld [vmem:[#allocation83_spill] sm:$0xff] }
0x159a   :  { %6913 = vmatpush2.bf16.msra.mxu0 %v12016_v55  ;;  %v12030_v55 = vld [vmem:[#allocation85_spill] sm:$0xff] }
0x159b   :  { %6914 = vmatprep.subr.bf16.mxu0 %v12017_v62  ;;  %v12031_v62 = vld [vmem:[#allocation87_spill] sm:$0xff] }
0x159e   :  { %6915 = vmatpush2.bf16.msra.mxu0 %v12018_v25 }
0x159f   :  { %6916 = vmatprep.subr.bf16.mxu0 %v12019_v46 }
0x15a2   :  { %6917 = vmatpush2.bf16.msra.mxu0 %v12020_v50 }
0x15a3   :  { %6918 = vmatprep.subr.bf16.mxu0 %v12021_v9 }
0x15a6   :  { %6919 = vmatpush2.bf16.msra.mxu0 %v12022_v6 }
0x15a7   :  { %6920 = vmatprep.subr.bf16.mxu0 %v12023_v0 }
0x15aa   :  { %6921 = vmatpush2.bf16.msra.mxu0 %v12024_v41 }
0x15ab   :  { %6922 = vmatprep.subr.bf16.mxu0 %v12025_v10 }
0x15ae   :  { %6923 = vmatpush2.bf16.msra.mxu0 %v12026_v20 }
0x15af   :  { %6924 = vmatprep.subr.bf16.mxu0 %v12027_v24 }
0x15b2   :  { %6925 = vmatpush2.bf16.msra.mxu0 %v12028_v58 }
0x15b3   :  { %6926 = vmatprep.subr.bf16.mxu0 %v12029_v42 }
0x15b6   :  { %6927 = vmatpush2.bf16.msra.mxu0 %v12030_v55 }
0x15b7   :  { %6978 = vmatprep.subr.bf16.mxu0 %v12031_v62 }
0x15b9   :  { %v6717_v25 = vpop.f32.mrf.mxu1 }
0x15ba   :  { %v6718_v6 = vadd.f32 %v6717_v25, %v11365_v36  ;;  %v12047_v25 = vld [vmem:[#allocation129_spill] sm:$0xff] }
0x15bb   :  { %v6719_v46 = vpop.f32.mrf.mxu1 }
0x15bc   :  { %v6720_v10 = vadd.f32 %v6719_v46, %v11368_v19 }
0x15bd   :  { %v6721_v50 = vpop.f32.mrf.mxu1 }
0x15bf   :  { %v6722_v9 = vpop.f32.mrf.mxu1 }
0x15f9   :  { %v6758_v0 = vpop.f32.mrf.mxu0  ;;  %v6799_v41 = vpop.f32.mrf.mxu1 }
0x15fa   :  { %v6759_v20 = vadd.f32 %v6758_v0, %v6718_v6 }
0x15fb   :  { %v6760_v24 = vpop.f32.mrf.mxu0  ;;  %v6801_v2 = vpop.f32.mrf.mxu1 }
0x15fc   :  { %v6761_v58 = vadd.f32 %v6760_v24, %v6720_v10  ;;  %v6847_v5 = vmax.f32 %v6759_v20, 0.0  ;;  %v6802_v50 = vadd.f32 %v6801_v2, %v11404_v51  ;;  %v9708_v2 = vld [vmem:[#allocation25 + $0xe0] ss:$16 sps:$4 sm:$0xff]  }
0x15fd   :  { %v6762_v42 = vpop.f32.mrf.mxu0  ;;  %v6803_v52 = vpop.f32.mrf.mxu1 }
0x15fe   :  { %v6848_v55 = vmax.f32 %v6761_v58, 0.0  ;;  %v6851_v8 = vpack.c.bf16 %v6847_v5, %v6847_v5  ;;  %v12046_v52 = vld [vmem:[#allocation64_spill] sm:$0xff] }
0x15ff   :  { %v6763_v30 = vpop.f32.mrf.mxu0  ;;  %v6804_v62 = vpop.f32.mrf.mxu1  ;;  %v6800_v5 = vadd.f32 %v6799_v41, %v12046_v52 }
0x1600   :  { %v6852_v28 = vpack.c.bf16 %v6848_v55, %v6848_v55  ;;  %v12044_v30 = vld [vmem:[#allocation125_spill] sm:$0xff]  ;;  %v9707_v55 = vld [vmem:[#allocation25 + $0xe4] ss:$16 sps:$4 sm:$0xff]  }
0x1601   :  { %v9709_v62 = vld [vmem:[#allocation25 + $0xc4] ss:$16 sps:$4 sm:$0xff]  }
0x1602   :  { %6887 = vmatprep.mubr.bf16.mxu1 %v6852_v28 }
0x1603   :  { %6888 = vmatmul.mubr.bf16.vlgmr.msra.gmra.mxu1 %v6851_v8 }
0x1604   :  { %6938 = vmatpush1.bf16.msra.mxu1 %v11101_v21  ;;  %6969 = vmatprep.mubr.bf16.mxu1 %v6852_v28  ;;  %v12032_v21 = vld [vmem:[#allocation101_spill] sm:$0xff] }
0x1605   :  { %6939 = vmatprep.subr.bf16.mxu1 %v11109_v13  ;;  %v12033_v13 = vld [vmem:[#allocation103_spill] sm:$0xff]  ;;  %v12042_v28 = vld [vmem:[#allocation121_spill] sm:$0xff] }
0x1608   :  { %6940 = vmatpush1.bf16.msra.mxu1 %v11117_v22  ;;  %v12034_v22 = vld [vmem:[#allocation105_spill] sm:$0xff] }
0x1609   :  { %6941 = vmatprep.subr.bf16.mxu1 %v11121_v26  ;;  %v12035_v26 = vld [vmem:[#allocation107_spill] sm:$0xff] }
0x160c   :  { %6942 = vmatpush1.bf16.msra.mxu1 %v11129_v29  ;;  %v12036_v29 = vld [vmem:[#allocation109_spill] sm:$0xff] }
0x160d   :  { %6943 = vmatprep.subr.bf16.mxu1 %v11135_v54  ;;  %v12037_v54 = vld [vmem:[#allocation111_spill] sm:$0xff] }
0x1610   :  { %6944 = vmatpush1.bf16.msra.mxu1 %v11141_v14  ;;  %v12038_v14 = vld [vmem:[#allocation113_spill] sm:$0xff] }
0x1611   :  { %6945 = vmatprep.subr.bf16.mxu1 %v11147_v16  ;;  %v12039_v16 = vld [vmem:[#allocation115_spill] sm:$0xff] }
0x1614   :  { %6946 = vmatpush1.bf16.msra.mxu1 %v11153_v17  ;;  %v12040_v17 = vld [vmem:[#allocation117_spill] sm:$0xff] }
0x1615   :  { %6947 = vmatprep.subr.bf16.mxu1 %v11159_v32  ;;  %v12043_v32 = vld [vmem:[#allocation123_spill] sm:$0xff] }
0x1618   :  { %6948 = vmatpush1.bf16.msra.mxu1 %v11165_v11  ;;  %v12041_v11 = vld [vmem:[#allocation119_spill] sm:$0xff] }
0x1619   :  { %6949 = vmatprep.subr.bf16.mxu1 %v11944_v12  ;;  %v12045_v12 = vld [vmem:[#allocation127_spill] sm:$0xff] }
0x161c   :  { %6950 = vmatpush1.bf16.msra.mxu1 %v12032_v21  ;;  %v9710_v21 = vld [vmem:[#allocation25 + $0xc0] ss:$16 sps:$4 sm:$0xff]  }
0x161d   :  { %6951 = vmatprep.subr.bf16.mxu1 %v12033_v13  ;;  %v9711_v13 = vld [vmem:[#allocation25 + $0xa4] ss:$16 sps:$4 sm:$0xff]  }
0x1620   :  { %6952 = vmatpush1.bf16.msra.mxu1 %v12034_v22  ;;  %v9732_v22 = vld [vmem:[#allocation25 + $0x160] ss:$16 sps:$4 sm:$0xff]  }
0x1621   :  { %6953 = vmatprep.subr.bf16.mxu1 %v12035_v26  ;;  %v12050_v26 = vld [vmem:[#allocation131_spill] sm:$0xff] }
0x1624   :  { %6954 = vmatpush2.bf16.msra.mxu1 %v12036_v29 }
0x1625   :  { %6955 = vmatprep.subr.bf16.mxu1 %v12037_v54 }
0x1628   :  { %6956 = vmatpush2.bf16.msra.mxu1 %v12038_v14 }
0x1629   :  { %6957 = vmatprep.subr.bf16.mxu1 %v12039_v16 }
0x162c   :  { %6958 = vmatpush2.bf16.msra.mxu1 %v12040_v17 }
0x162d   :  { %6959 = vmatprep.subr.bf16.mxu1 %v12041_v11 }
0x1630   :  { %6960 = vmatpush2.bf16.msra.mxu1 %v12042_v28 }
0x1631   :  { %6961 = vmatprep.subr.bf16.mxu1 %v12043_v32 }
0x1634   :  { %6962 = vmatpush2.bf16.msra.mxu1 %v12044_v30 }
0x1635   :  { %6963 = vmatprep.subr.bf16.mxu1 %v12045_v12 }
0x1638   :  { %6964 = vmatpush2.bf16.msra.mxu1 %v12047_v25 }
0x1639   :  { %v6840_v46 = vpop.f32.mrf.mxu0  ;;  %6965 = vmatprep.subr.bf16.mxu1 %v11267_v60 }
0x163a   :  { %v6841_v9 = vadd.f32 %v6840_v46, %v6800_v5  ;;  %v9734_v5 = vld [vmem:[#allocation25 + $0x140] ss:$16 sps:$4 sm:$0xff]  }
0x163b   :  { %v6842_v6 = vpop.f32.mrf.mxu0  ;;  %v12052_v46 = vld [vmem:[#allocation133_spill] sm:$0xff] }
0x163c   :  { %v6843_v0 = vadd.f32 %v6842_v6, %v6802_v50  ;;  %6966 = vmatpush2.bf16.msra.mxu1 %v11273_v23  ;;  %v6849_v10 = vmax.f32 %v6841_v9, 0.0  ;;  %v9736_v50 = vld [vmem:[#allocation25 + $0x120] ss:$16 sps:$4 sm:$0xff]   ;;  %v12053_v9 = vld [vmem:[#allocation134_spill] sm:$0xff] }
0x163d   :  { %v6844_v20 = vpop.f32.mrf.mxu0  ;;  %6967 = vmatprep.subr.bf16.mxu1 %v11279_v15  ;;  %v9738_v6 = vld [vmem:[#allocation25 + $0x100] ss:$16 sps:$4 sm:$0xff]  }
0x163e   :  { %v6850_v24 = vmax.f32 %v6843_v0, 0.0  ;;  %v11549_v41 = vpack.c.bf16 %v6849_v10, %v6849_v10  ;;  %v9739_v0 = vld [vmem:[#allocation25 + $0x2e4] ss:$16 sps:$4 sm:$0xff]   ;;  %v9740_v10 = vld [vmem:[#allocation25 + $0xec] ss:$16 sps:$4 sm:$0xff]  }
0x163f   :  { %v6845_v58 = vpop.f32.mrf.mxu0  ;;  %v9741_v20 = vld [vmem:[#allocation25 + $0x2e0] ss:$16 sps:$4 sm:$0xff]  }
0x1640   :  { %v6854_v42 = vpack.c.bf16 %v6850_v24, %v6850_v24  ;;  %6968 = vmatpush2.bf16.msra.mxu1 %v11285_v31  ;;  %v9742_v24 = vld [vmem:[#allocation25 + $0x2c4] ss:$16 sps:$4 sm:$0xff]   ;;  %v9743_v58 = vld [vmem:[#allocation25 + $0x2c0] ss:$16 sps:$4 sm:$0xff]  }
0x1641   :  { %7027 = vmatprep.subr.bf16.mxu1 %v9707_v55  ;;  %v9745_v55 = vld [vmem:[#allocation25 + $0x2a0] ss:$16 sps:$4 sm:$0xff]  }
0x1642   :  { %6928 = vmatprep.mubr.bf16.mxu0 %v6854_v42 }
0x1643   :  { %6929 = vmatmul.mubr.bf16.vlgmr.msra.gmra.mxu0 %v11549_v41  ;;  %6970 = vmatmul.mubr.bf16.vlgmr.msra.gmra.mxu1 %v6851_v8  ;;  %v9713_v8 = vld [vmem:[#allocation25 + $0x84] ss:$16 sps:$4 sm:$0xff]  }
0x1644   :  { %6979 = vmatpush1.bf16.msra.mxu0 %v11964_v38  ;;  %7010 = vmatprep.mubr.bf16.mxu0 %v6854_v42  ;;  %v9712_v38 = vld [vmem:[#allocation25 + $0xa0] ss:$16 sps:$4 sm:$0xff]   ;;  %v9744_v42 = vld [vmem:[#allocation25 + $0x2a4] ss:$16 sps:$4 sm:$0xff]  }
0x1645   :  { %6980 = vmatprep.subr.bf16.mxu0 %v11965_v33  ;;  %7028 = vmatpush1.bf16.msra.mxu1 %v9708_v2  ;;  %v9714_v33 = vld [vmem:[#allocation25 + $0x80] ss:$16 sps:$4 sm:$0xff]   ;;  %v9746_v2 = vld [vmem:[#allocation25 + $0x284] ss:$16 sps:$4 sm:$0xff]  }
0x1646   :  { %7029 = vmatprep.subr.bf16.mxu1 %v9709_v62  ;;  %v9747_v62 = vld [vmem:[#allocation25 + $0x280] ss:$16 sps:$4 sm:$0xff]  }
0x1648   :  { %6981 = vmatpush1.bf16.msra.mxu0 %v11966_v34  ;;  %v9715_v34 = vld [vmem:[#allocation25 + $0x64] ss:$16 sps:$4 sm:$0xff]  }
0x1649   :  { %6982 = vmatprep.subr.bf16.mxu0 %v11967_v43  ;;  %7030 = vmatpush1.bf16.msra.mxu1 %v9710_v21  ;;  %v9716_v43 = vld [vmem:[#allocation25 + $0x60] ss:$16 sps:$4 sm:$0xff]   ;;  %v9748_v21 = vld [vmem:[#allocation25 + $0x264] ss:$16 sps:$4 sm:$0xff]  }
0x164a   :  { %7031 = vmatprep.subr.bf16.mxu1 %v9711_v13  ;;  %v9749_v13 = vld [vmem:[#allocation25 + $0x260] ss:$16 sps:$4 sm:$0xff]  }
0x164c   :  { %6983 = vmatpush1.bf16.msra.mxu0 %v11968_v49  ;;  %v9717_v49 = vld [vmem:[#allocation25 + $0x44] ss:$16 sps:$4 sm:$0xff]  }
0x164d   :  { %6984 = vmatprep.subr.bf16.mxu0 %v11969_v57  ;;  %7032 = vmatpush1.bf16.msra.mxu1 %v9712_v38  ;;  %v9718_v57 = vld [vmem:[#allocation25 + $0x40] ss:$16 sps:$4 sm:$0xff]   ;;  %v9750_v38 = vld [vmem:[#allocation25 + $0x244] ss:$16 sps:$4 sm:$0xff]  }
0x164e   :  { %7033 = vmatprep.subr.bf16.mxu1 %v9713_v8  ;;  %v9752_v8 = vld [vmem:[#allocation25 + $0x224] ss:$16 sps:$4 sm:$0xff]  }
0x1650   :  { %6985 = vmatpush1.bf16.msra.mxu0 %v11970_v48  ;;  %v9719_v48 = vld [vmem:[#allocation25 + $0x24] ss:$16 sps:$4 sm:$0xff]  }
0x1651   :  { %6986 = vmatprep.subr.bf16.mxu0 %v11971_v18  ;;  %7034 = vmatpush1.bf16.msra.mxu1 %v9714_v33  ;;  %v9720_v18 = vld [vmem:[#allocation25 + $0x20] ss:$16 sps:$4 sm:$0xff]  }
0x1652   :  { %7035 = vmatprep.subr.bf16.mxu1 %v9715_v34  ;;  %v9753_v33 = vld [vmem:[#allocation25 + $0x220] ss:$16 sps:$4 sm:$0xff]   ;;  %v9754_v34 = vld [vmem:[#allocation25 + $0x204] ss:$16 sps:$4 sm:$0xff]  }
0x1654   :  { %6987 = vmatpush1.bf16.msra.mxu0 %v11972_v27  ;;  %v9721_v27 = vld [vmem:[#allocation25 + $0x4] ss:$16 sps:$4 sm:$0xff]  }
0x1655   :  { %6988 = vmatprep.subr.bf16.mxu0 %v11973_v59  ;;  %7036 = vmatpush1.bf16.msra.mxu1 %v9716_v43  ;;  %v9722_v59 = vld [vmem:[#allocation25] ss:$16 sps:$4 sm:$0xff]  }
0x1656   :  { %7037 = vmatprep.subr.bf16.mxu1 %v9717_v49  ;;  %v9755_v43 = vld [vmem:[#allocation25 + $0x200] ss:$16 sps:$4 sm:$0xff]   ;;  %v9756_v49 = vld [vmem:[#allocation25 + $0x3e4] ss:$16 sps:$4 sm:$0xff]  }
0x1658   :  { %6989 = vmatpush1.bf16.msra.mxu0 %v11974_v35  ;;  %v9723_v35 = vld [vmem:[#allocation25 + $0x1e4] ss:$16 sps:$4 sm:$0xff]  }
0x1659   :  { %6990 = vmatprep.subr.bf16.mxu0 %v11975_v37  ;;  %7038 = vmatpush1.bf16.msra.mxu1 %v9718_v57  ;;  %v9724_v37 = vld [vmem:[#allocation25 + $0x1e0] ss:$16 sps:$4 sm:$0xff]  }
0x165a   :  { %7039 = vmatprep.subr.bf16.mxu1 %v9719_v48  ;;  %v9757_v57 = vld [vmem:[#allocation25 + $0x3e0] ss:$16 sps:$4 sm:$0xff]   ;;  %v9758_v48 = vld [vmem:[#allocation25 + $0x3c4] ss:$16 sps:$4 sm:$0xff]  }
0x165c   :  { %6991 = vmatpush1.bf16.msra.mxu0 %v11976_v39  ;;  %v9725_v39 = vld [vmem:[#allocation25 + $0x1c4] ss:$16 sps:$4 sm:$0xff]  }
0x165d   :  { %6992 = vmatprep.subr.bf16.mxu0 %v11977_v40  ;;  %7040 = vmatpush1.bf16.msra.mxu1 %v9720_v18  ;;  %v9726_v40 = vld [vmem:[#allocation25 + $0x1c0] ss:$16 sps:$4 sm:$0xff]  }
0x165e   :  { %7041 = vmatprep.subr.bf16.mxu1 %v9721_v27  ;;  %v9759_v18 = vld [vmem:[#allocation25 + $0x3c0] ss:$16 sps:$4 sm:$0xff]   ;;  %v9760_v27 = vld [vmem:[#allocation25 + $0x3a4] ss:$16 sps:$4 sm:$0xff]  }
0x1660   :  { %6993 = vmatpush1.bf16.msra.mxu0 %v11978_v44  ;;  %v9727_v44 = vld [vmem:[#allocation25 + $0x1a4] ss:$16 sps:$4 sm:$0xff]  }
0x1661   :  { %6994 = vmatprep.subr.bf16.mxu0 %v11979_v53  ;;  %7042 = vmatpush1.bf16.msra.mxu1 %v9722_v59  ;;  %v9728_v53 = vld [vmem:[#allocation25 + $0x1a0] ss:$16 sps:$4 sm:$0xff]  }
0x1662   :  { %7043 = vmatprep.subr.bf16.mxu1 %v9723_v35  ;;  %v9761_v59 = vld [vmem:[#allocation25 + $0x3a0] ss:$16 sps:$4 sm:$0xff]   ;;  %v9762_v35 = vld [vmem:[#allocation25 + $0x384] ss:$16 sps:$4 sm:$0xff]  }
0x1664   :  { %6995 = vmatpush2.bf16.msra.mxu0 %v11980_v56  ;;  %v9729_v56 = vld [vmem:[#allocation25 + $0x184] ss:$16 sps:$4 sm:$0xff]  }
0x1665   :  { %6996 = vmatprep.subr.bf16.mxu0 %v11981_v61  ;;  %7044 = vmatpush2.bf16.msra.mxu1 %v9724_v37  ;;  %v9730_v61 = vld [vmem:[#allocation25 + $0x180] ss:$16 sps:$4 sm:$0xff]  }
0x1666   :  { %7045 = vmatprep.subr.bf16.mxu1 %v9725_v39  ;;  %v9763_v37 = vld [vmem:[#allocation25 + $0x380] ss:$16 sps:$4 sm:$0xff]   ;;  %v9764_v39 = vld [vmem:[#allocation25 + $0x364] ss:$16 sps:$4 sm:$0xff]  }
0x1668   :  { %6997 = vmatpush2.bf16.msra.mxu0 %v11982_v45  ;;  %v9731_v45 = vld [vmem:[#allocation25 + $0x164] ss:$16 sps:$4 sm:$0xff]  }
0x1669   :  { %6998 = vmatprep.subr.bf16.mxu0 %v11983_v47  ;;  %7046 = vmatpush2.bf16.msra.mxu1 %v9726_v40  ;;  %v12048_v47 = vld [vmem:[#allocation128_spill] sm:$0xff]  ;;  %v9765_v40 = vld [vmem:[#allocation25 + $0x360] ss:$16 sps:$4 sm:$0xff]  }
0x166a   :  { %7047 = vmatprep.subr.bf16.mxu1 %v9727_v44  ;;  %v9766_v44 = vld [vmem:[#allocation25 + $0x344] ss:$16 sps:$4 sm:$0xff]  }
0x166c   :  { %6999 = vmatpush2.bf16.msra.mxu0 %v11984_v63  ;;  %v9733_v63 = vld [vmem:[#allocation25 + $0x144] ss:$16 sps:$4 sm:$0xff]  }
0x166d   :  { %7000 = vmatprep.subr.bf16.mxu0 %v11985_v1  ;;  %7048 = vmatpush2.bf16.msra.mxu1 %v9728_v53  ;;  %v12049_v1 = vld [vmem:[#allocation130_spill] sm:$0xff]  ;;  %v9767_v53 = vld [vmem:[#allocation25 + $0x340] ss:$16 sps:$4 sm:$0xff]  }
0x166e   :  { %7049 = vmatprep.subr.bf16.mxu1 %v9729_v56  ;;  %v9768_v56 = vld [vmem:[#allocation25 + $0x324] ss:$16 sps:$4 sm:$0xff]  }
0x1670   :  { %7001 = vmatpush2.bf16.msra.mxu0 %v11986_v3  ;;  %v9735_v3 = vld [vmem:[#allocation25 + $0x124] ss:$16 sps:$4 sm:$0xff]  }
0x1671   :  { %7002 = vmatprep.subr.bf16.mxu0 %v11987_v4  ;;  %7050 = vmatpush2.bf16.msra.mxu1 %v9730_v61  ;;  %v12051_v4 = vld [vmem:[#allocation132_spill] sm:$0xff]  ;;  %v9769_v61 = vld [vmem:[#allocation25 + $0x320] ss:$16 sps:$4 sm:$0xff]  }
0x1672   :  { %7051 = vmatprep.subr.bf16.mxu1 %v9731_v45  ;;  %v9770_v45 = vld [vmem:[#allocation25 + $0x304] ss:$16 sps:$4 sm:$0xff]  }
0x1674   :  { %7003 = vmatpush2.bf16.msra.mxu0 %v11988_v7  ;;  %v9737_v7 = vld [vmem:[#allocation25 + $0x104] ss:$16 sps:$4 sm:$0xff]  }
0x1675   :  { %7004 = vmatprep.subr.bf16.mxu0 %v12048_v47  ;;  %7052 = vmatpush2.bf16.msra.mxu1 %v9732_v22  ;;  %v9771_v47 = vld [vmem:[#allocation25 + $0x300] ss:$16 sps:$4 sm:$0xff]   ;;  %v9772_v22 = vld [vmem:[#allocation25 + $0x2ec] ss:$16 sps:$4 sm:$0xff]  }
0x1676   :  { %7053 = vmatprep.subr.bf16.mxu1 %v9733_v63 }
0x1678   :  { %7005 = vmatpush2.bf16.msra.mxu0 %v12049_v1 }
0x1679   :  { %7006 = vmatprep.subr.bf16.mxu0 %v12050_v26  ;;  %7054 = vmatpush2.bf16.msra.mxu1 %v9734_v5 }
0x167a   :  { %7055 = vmatprep.subr.bf16.mxu1 %v9735_v3 }
0x167c   :  { %7007 = vmatpush2.bf16.msra.mxu0 %v12051_v4 }
0x167d   :  { %7008 = vmatprep.subr.bf16.mxu0 %v12052_v46  ;;  %7056 = vmatpush2.bf16.msra.mxu1 %v9736_v50 }
0x167e   :  { %7057 = vmatprep.subr.bf16.mxu1 %v9737_v7 }
0x1680   :  { %7009 = vmatpush2.bf16.msra.mxu0 %v12053_v9 }
0x1681   :  { %7058 = vmatpush2.bf16.msra.mxu1 %v9738_v6  ;;  %7068 = vmatprep.subr.bf16.mxu0 %v9739_v0 }
0x1682   :  { %7109 = vmatprep.subr.bf16.mxu1 %v9740_v10 }
0x1683   :  { %7011 = vmatmul.mubr.bf16.vlgmr.msra.gmra.mxu0 %v11549_v41  ;;  %v9751_v41 = vld [vmem:[#allocation25 + $0x240] ss:$16 sps:$4 sm:$0xff]  }
0x1684   :  { %7069 = vmatpush1.bf16.msra.mxu0 %v9741_v20 }
0x1685   :  { %7070 = vmatprep.subr.bf16.mxu0 %v9742_v24 }
0x1688   :  { %7071 = vmatpush1.bf16.msra.mxu0 %v9743_v58 }
0x1689   :  { %7072 = vmatprep.subr.bf16.mxu0 %v9744_v42 }
0x168c   :  { %7073 = vmatpush1.bf16.msra.mxu0 %v9745_v55 }
0x168d   :  { %7074 = vmatprep.subr.bf16.mxu0 %v9746_v2 }
0x1690   :  { %7075 = vmatpush1.bf16.msra.mxu0 %v9747_v62 }
0x1691   :  { %7076 = vmatprep.subr.bf16.mxu0 %v9748_v21  ;;  %v9773_v21 = vld [vmem:[#allocation25 + $0xe8] ss:$16 sps:$4 sm:$0xff]  }
0x1694   :  { %7077 = vmatpush1.bf16.msra.mxu0 %v9749_v13  ;;  %v9774_v13 = vld [vmem:[#allocation25 + $0xcc] ss:$16 sps:$4 sm:$0xff]  }
0x1695   :  { %7078 = vmatprep.subr.bf16.mxu0 %v9750_v38  ;;  %v9775_v38 = vld [vmem:[#allocation25 + $0xc8] ss:$16 sps:$4 sm:$0xff]  }
0x1698   :  { %7079 = vmatpush1.bf16.msra.mxu0 %v9751_v41  ;;  %v9776_v41 = vld [vmem:[#allocation25 + $0xac] ss:$16 sps:$4 sm:$0xff]  }
0x1699   :  { %7080 = vmatprep.subr.bf16.mxu0 %v9752_v8  ;;  %v9777_v8 = vld [vmem:[#allocation25 + $0xa8] ss:$16 sps:$4 sm:$0xff]  }
0x169c   :  { %7081 = vmatpush1.bf16.msra.mxu0 %v9753_v33  ;;  %v9778_v33 = vld [vmem:[#allocation25 + $0x8c] ss:$16 sps:$4 sm:$0xff]  }
0x169d   :  { %7082 = vmatprep.subr.bf16.mxu0 %v9754_v34  ;;  %v9779_v34 = vld [vmem:[#allocation25 + $0x88] ss:$16 sps:$4 sm:$0xff]  }
0x16a0   :  { %7083 = vmatpush1.bf16.msra.mxu0 %v9755_v43  ;;  %v9780_v43 = vld [vmem:[#allocation25 + $0x6c] ss:$16 sps:$4 sm:$0xff]  }
0x16a1   :  { %7084 = vmatprep.subr.bf16.mxu0 %v9756_v49  ;;  %v9781_v49 = vld [vmem:[#allocation25 + $0x68] ss:$16 sps:$4 sm:$0xff]  }
0x16a4   :  { %7085 = vmatpush2.bf16.msra.mxu0 %v9757_v57  ;;  %v9782_v57 = vld [vmem:[#allocation25 + $0x4c] ss:$16 sps:$4 sm:$0xff]  }
0x16a5   :  { %7086 = vmatprep.subr.bf16.mxu0 %v9758_v48  ;;  %v9783_v48 = vld [vmem:[#allocation25 + $0x48] ss:$16 sps:$4 sm:$0xff]  }
0x16a8   :  { %7087 = vmatpush2.bf16.msra.mxu0 %v9759_v18  ;;  %v9784_v18 = vld [vmem:[#allocation25 + $0x2c] ss:$16 sps:$4 sm:$0xff]  }
0x16a9   :  { %7088 = vmatprep.subr.bf16.mxu0 %v9760_v27  ;;  %v9785_v27 = vld [vmem:[#allocation25 + $0x28] ss:$16 sps:$4 sm:$0xff]  }
0x16ac   :  { %7089 = vmatpush2.bf16.msra.mxu0 %v9761_v59  ;;  %v9786_v59 = vld [vmem:[#allocation25 + $0xc] ss:$16 sps:$4 sm:$0xff]  }
0x16ad   :  { %7090 = vmatprep.subr.bf16.mxu0 %v9762_v35  ;;  %v9787_v35 = vld [vmem:[#allocation25 + $0x8] ss:$16 sps:$4 sm:$0xff]  }
0x16b0   :  { %7091 = vmatpush2.bf16.msra.mxu0 %v9763_v37  ;;  %v9788_v37 = vld [vmem:[#allocation25 + $0x1ec] ss:$16 sps:$4 sm:$0xff]  }
0x16b1   :  { %7092 = vmatprep.subr.bf16.mxu0 %v9764_v39 }
0x16b4   :  { %7093 = vmatpush2.bf16.msra.mxu0 %v9765_v40  ;;  %v9791_v40 = vld [vmem:[#allocation25 + $0x2c8] ss:$16 sps:$4 sm:$0xff]  }
0x16b5   :  { %7094 = vmatprep.subr.bf16.mxu0 %v9766_v44  ;;  %v9675_v44 = vld [vmem:[#allocation26 + $0x78] sm:$0xff]  }
0x16b8   :  { %7095 = vmatpush2.bf16.msra.mxu0 %v9767_v53  ;;  %v9676_v53 = vld [vmem:[#allocation26 + $0x38] sm:$0xff]  }
0x16b9   :  { %7096 = vmatprep.subr.bf16.mxu0 %v9768_v56  ;;  %v9677_v56 = vld [vmem:[#allocation26 + $0x70] sm:$0xff]  }
0x16bc   :  { %7097 = vmatpush2.bf16.msra.mxu0 %v9769_v61  ;;  %v9678_v61 = vld [vmem:[#allocation26 + $0x30] sm:$0xff]  }
0x16bd   :  { %7098 = vmatprep.subr.bf16.mxu0 %v9770_v45  ;;  %v9794_v45 = vld [vmem:[#allocation25 + $0x28c] ss:$16 sps:$4 sm:$0xff]  }
0x16c0   :  { %7099 = vmatpush2.bf16.msra.mxu0 %v9771_v47  ;;  %v9679_v47 = vld [vmem:[#allocation26 + $0x68] sm:$0xff]  }
0x16c1   :  { %7150 = vmatprep.subr.bf16.mxu0 %v9772_v22  ;;  %v9795_v22 = vld [vmem:[#allocation25 + $0x288] ss:$16 sps:$4 sm:$0xff]  }
0x16c3   :  { %v6889_v63 = vpop.f32.mrf.mxu1 }
0x16c4   :  { %v6890_v3 = vadd.f32 %v6889_v63, %v11365_v36  ;;  %v9680_v63 = vld [vmem:[#allocation26 + $0x28] sm:$0xff]  }
0x16c5   :  { %v6891_v1 = vpop.f32.mrf.mxu1 }
0x16c6   :  { %v6892_v50 = vadd.f32 %v6891_v1, %v11368_v19  ;;  %v9796_v1 = vld [vmem:[#allocation25 + $0x26c] ss:$16 sps:$4 sm:$0xff]  }
0x16c7   :  { %v6893_v26 = vpop.f32.mrf.mxu1 }
0x16c8   :  { %v9681_v26 = vld [vmem:[#allocation26 + $0x60] sm:$0xff]  }
0x16c9   :  { %v6894_v5 = vpop.f32.mrf.mxu1 }
0x16ca   :  { %v9797_v5 = vld [vmem:[#allocation25 + $0x268] ss:$16 sps:$4 sm:$0xff]  }
0x1703   :  { %v6930_v4 = vpop.f32.mrf.mxu0  ;;  %v6971_v46 = vpop.f32.mrf.mxu1 }
0x1704   :  { %v6931_v7 = vadd.f32 %v6930_v4, %v6890_v3  ;;  %v9682_v3 = vld [vmem:[#allocation26 + $0x20] sm:$0xff]   ;;  %v9798_v4 = vld [vmem:[#allocation25 + $0x24c] ss:$16 sps:$4 sm:$0xff]  }
0x1705   :  { %v6932_v9 = vpop.f32.mrf.mxu0  ;;  %v6973_v6 = vpop.f32.mrf.mxu1 }
0x1706   :  { %v6933_v0 = vadd.f32 %v6932_v9, %v6892_v50  ;;  %v7019_v10 = vmax.f32 %v6931_v7, 0.0  ;;  %v9799_v50 = vld [vmem:[#allocation25 + $0x248] ss:$16 sps:$4 sm:$0xff]   ;;  %v9800_v9 = vld [vmem:[#allocation25 + $0x22c] ss:$16 sps:$4 sm:$0xff]  }
0x1707   :  { %v6934_v20 = vpop.f32.mrf.mxu0  ;;  %v6975_v24 = vpop.f32.mrf.mxu1  ;;  %v9684_v7 = vld [vmem:[#allocation26 + $0x18] sm:$0xff]  }
0x1708   :  { %v7020_v58 = vmax.f32 %v6933_v0, 0.0  ;;  %v11586_v62 = vpack.c.bf16 %v7019_v10, %v7019_v10  ;;  %v9801_v0 = vld [vmem:[#allocation25 + $0x228] ss:$16 sps:$4 sm:$0xff]   ;;  %v9686_v10 = vld [vmem:[#allocation26 + $0x10] sm:$0xff]   ;;  %v9802_v20 = vld [vmem:[#allocation25 + $0x20c] ss:$16 sps:$4 sm:$0xff]  }
0x1709   :  { %v6935_v42 = vpop.f32.mrf.mxu0  ;;  %v6976_v55 = vpop.f32.mrf.mxu1  ;;  %v9803_v24 = vld [vmem:[#allocation25 + $0x208] ss:$16 sps:$4 sm:$0xff]  }
0x170a   :  { %v7024_v2 = vpack.c.bf16 %v7020_v58, %v7020_v58  ;;  %v9804_v58 = vld [vmem:[#allocation25 + $0x3ec] ss:$16 sps:$4 sm:$0xff]   ;;  %v9805_v42 = vld [vmem:[#allocation25 + $0x3e8] ss:$16 sps:$4 sm:$0xff]  }
0x170b   :  { %v9806_v55 = vld [vmem:[#allocation25 + $0x3cc] ss:$16 sps:$4 sm:$0xff]  }
0x170c   :  { %7059 = vmatprep.mubr.bf16.mxu1 %v7024_v2 }
0x170d   :  { %7060 = vmatmul.mubr.bf16.vlgmr.msra.gmra.mxu1 %v11586_v62 }
0x170e   :  { %7110 = vmatpush1.bf16.msra.mxu1 %v9773_v21  ;;  %7141 = vmatprep.mubr.bf16.mxu1 %v7024_v2  ;;  %v9807_v2 = vld [vmem:[#allocation25 + $0x3c8] ss:$16 sps:$4 sm:$0xff]  }
0x170f   :  { %7111 = vmatprep.subr.bf16.mxu1 %v9774_v13  ;;  %v9809_v21 = vld [vmem:[#allocation25 + $0x3a8] ss:$16 sps:$4 sm:$0xff]   ;;  %v9810_v13 = vld [vmem:[#allocation25 + $0x38c] ss:$16 sps:$4 sm:$0xff]  }
0x1712   :  { %7112 = vmatpush1.bf16.msra.mxu1 %v9775_v38  ;;  %v9811_v38 = vld [vmem:[#allocation25 + $0x388] ss:$16 sps:$4 sm:$0xff]  }
0x1713   :  { %7113 = vmatprep.subr.bf16.mxu1 %v9776_v41  ;;  %v9812_v41 = vld [vmem:[#allocation25 + $0x36c] ss:$16 sps:$4 sm:$0xff]  }
0x1716   :  { %7114 = vmatpush1.bf16.msra.mxu1 %v9777_v8  ;;  %v9813_v8 = vld [vmem:[#allocation25 + $0x368] ss:$16 sps:$4 sm:$0xff]  }
0x1717   :  { %7115 = vmatprep.subr.bf16.mxu1 %v9778_v33  ;;  %v9814_v33 = vld [vmem:[#allocation25 + $0x34c] ss:$16 sps:$4 sm:$0xff]  }
0x171a   :  { %7116 = vmatpush1.bf16.msra.mxu1 %v9779_v34  ;;  %v9815_v34 = vld [vmem:[#allocation25 + $0x348] ss:$16 sps:$4 sm:$0xff]  }
0x171b   :  { %7117 = vmatprep.subr.bf16.mxu1 %v9780_v43  ;;  %v9816_v43 = vld [vmem:[#allocation25 + $0x32c] ss:$16 sps:$4 sm:$0xff]  }
0x171e   :  { %7118 = vmatpush1.bf16.msra.mxu1 %v9781_v49  ;;  %v9817_v49 = vld [vmem:[#allocation25 + $0x328] ss:$16 sps:$4 sm:$0xff]  }
0x171f   :  { %7119 = vmatprep.subr.bf16.mxu1 %v9782_v57  ;;  %v9818_v57 = vld [vmem:[#allocation25 + $0x30c] ss:$16 sps:$4 sm:$0xff]  }
0x1722   :  { %7120 = vmatpush1.bf16.msra.mxu1 %v9783_v48  ;;  %v9819_v48 = vld [vmem:[#allocation25 + $0x308] ss:$16 sps:$4 sm:$0xff]  }
0x1723   :  { %7121 = vmatprep.subr.bf16.mxu1 %v9784_v18  ;;  %v9687_v18 = vld [vmem:[#allocation26 + $0x48] sm:$0xff]  }
0x1726   :  { %7122 = vmatpush1.bf16.msra.mxu1 %v9785_v27  ;;  %v9688_v27 = vld [vmem:[#allocation26 + $0x8] sm:$0xff]  }
0x1727   :  { %7123 = vmatprep.subr.bf16.mxu1 %v9786_v59  ;;  %v9689_v59 = vld [vmem:[#allocation26 + $0x40] sm:$0xff]  }
0x172a   :  { %7124 = vmatpush1.bf16.msra.mxu1 %v9787_v35  ;;  %v9690_v35 = vld [vmem:[#allocation26] sm:$0xff]  }
0x172b   :  { %7125 = vmatprep.subr.bf16.mxu1 %v9788_v37  ;;  %v9691_v37 = vld [vmem:[#allocation26 + $0xf8] sm:$0xff]  }
0x172e   :  { %7126 = vmatpush2.bf16.msra.mxu1 %v12036_v29  ;;  %v6972_v29 = vadd.f32 %v6971_v46, %v12046_v52  ;;  %v9683_v46 = vld [vmem:[#allocation26 + $0x58] sm:$0xff]  }
0x172f   :  { %7127 = vmatprep.subr.bf16.mxu1 %v12037_v54 }
0x1732   :  { %7128 = vmatpush2.bf16.msra.mxu1 %v12038_v14  ;;  %v6974_v14 = vadd.f32 %v6973_v6, %v11404_v51  ;;  %v9685_v6 = vld [vmem:[#allocation26 + $0x50] sm:$0xff]  }
0x1733   :  { %7129 = vmatprep.subr.bf16.mxu1 %v12039_v16 }
0x1736   :  { %7130 = vmatpush2.bf16.msra.mxu1 %v12040_v17 }
0x1737   :  { %7131 = vmatprep.subr.bf16.mxu1 %v12041_v11 }
0x173a   :  { %7132 = vmatpush2.bf16.msra.mxu1 %v12042_v28 }
0x173b   :  { %7133 = vmatprep.subr.bf16.mxu1 %v12043_v32 }
0x173e   :  { %7134 = vmatpush2.bf16.msra.mxu1 %v12044_v30 }
0x173f   :  { %7135 = vmatprep.subr.bf16.mxu1 %v12045_v12 }
0x1742   :  { %7136 = vmatpush2.bf16.msra.mxu1 %v12047_v25 }
0x1743   :  { %v7012_v54 = vpop.f32.mrf.mxu0  ;;  %7137 = vmatprep.subr.bf16.mxu1 %v11267_v60  ;;  %v9789_v60 = vld [vmem:[#allocation25 + $0x2e8] ss:$16 sps:$4 sm:$0xff]  }
0x1744   :  { %v7013_v16 = vadd.f32 %v7012_v54, %v6972_v29  ;;  %v9692_v29 = vld [vmem:[#allocation26 + $0xb8] sm:$0xff]   ;;  %v9693_v54 = vld [vmem:[#allocation26 + $0xf0] sm:$0xff]  }
0x1745   :  { %v7014_v17 = vpop.f32.mrf.mxu0 }
0x1746   :  { %v7015_v11 = vadd.f32 %v7014_v17, %v6974_v14  ;;  %7138 = vmatpush2.bf16.msra.mxu1 %v11273_v23  ;;  %v7021_v28 = vmax.f32 %v7013_v16, 0.0  ;;  %v9790_v23 = vld [vmem:[#allocation25 + $0x2cc] ss:$16 sps:$4 sm:$0xff]   ;;  %v9694_v14 = vld [vmem:[#allocation26 + $0xb0] sm:$0xff]  }
0x1747   :  { %v7016_v32 = vpop.f32.mrf.mxu0  ;;  %7139 = vmatprep.subr.bf16.mxu1 %v11279_v15  ;;  %v9792_v15 = vld [vmem:[#allocation25 + $0x2ac] ss:$16 sps:$4 sm:$0xff]  }
0x1748   :  { %v7022_v30 = vmax.f32 %v7015_v11, 0.0  ;;  %v11606_v25 = vpack.c.bf16 %v7021_v28, %v7021_v28  ;;  %v9695_v16 = vld [vmem:[#allocation26 + $0xe8] sm:$0xff]   ;;  %v9697_v11 = vld [vmem:[#allocation26 + $0xe0] sm:$0xff]   ;;  %v9699_v32 = vld [vmem:[#allocation26 + $0xd8] sm:$0xff]  }
0x1749   :  { %v7017_v12 = vpop.f32.mrf.mxu0  ;;  %v9696_v17 = vld [vmem:[#allocation26 + $0xa8] sm:$0xff]   ;;  %v9698_v28 = vld [vmem:[#allocation26 + $0xa0] sm:$0xff]  }
0x174a   :  { %v7026_v39 = vpack.c.bf16 %v7022_v30, %v7022_v30  ;;  %7140 = vmatpush2.bf16.msra.mxu1 %v11285_v31  ;;  %v9793_v31 = vld [vmem:[#allocation25 + $0x2a8] ss:$16 sps:$4 sm:$0xff]   ;;  %v9701_v12 = vld [vmem:[#allocation26 + $0xd0] sm:$0xff]  }
0x174b   :  { %8395 = vmatprep.subr.bf16.mxu1 %v9675_v44  ;;  %v9700_v30 = vld [vmem:[#allocation26 + $0x98] sm:$0xff]   ;;  %v9705_v44 = vld [vmem:[#allocation26 + $0xc0] sm:$0xff]  }
0x174c   :  { %7100 = vmatprep.mubr.bf16.mxu0 %v7026_v39 }
0x174d   :  { %7101 = vmatmul.mubr.bf16.vlgmr.msra.gmra.mxu0 %v11606_v25  ;;  %7142 = vmatmul.mubr.bf16.vlgmr.msra.gmra.mxu1 %v11586_v62  ;;  %v9808_v62 = vld [vmem:[#allocation25 + $0x3ac] ss:$16 sps:$4 sm:$0xff]  }
0x174e   :  { %7151 = vmatpush1.bf16.msra.mxu0 %v9789_v60  ;;  %7182 = vmatprep.mubr.bf16.mxu0 %v7026_v39  ;;  %v9702_v39 = vld [vmem:[#allocation26 + $0x90] sm:$0xff]   ;;  %v9703_v60 = vld [vmem:[#allocation26 + $0xc8] sm:$0xff]  }
0x174f   :  { %7152 = vmatprep.subr.bf16.mxu0 %v9790_v23  ;;  %8396 = vmatpush3.bf16.msra.mxu1 %v9676_v53  ;;  %v9704_v23 = vld [vmem:[#allocation26 + $0x88] sm:$0xff]   ;;  %v9706_v53 = vld [vmem:[#allocation26 + $0x80] sm:$0xff]  }
0x1750   :  { %8397 = vmatprep.subr.bf16.mxu1 %v9677_v56 }
0x1752   :  { %7153 = vmatpush1.bf16.msra.mxu0 %v9791_v40 }
0x1753   :  { %7154 = vmatprep.subr.bf16.mxu0 %v9792_v15  ;;  %8398 = vmatpush3.bf16.msra.mxu1 %v9678_v61 }
0x1754   :  { %8399 = vmatprep.subr.bf16.mxu1 %v9679_v47 }
0x1756   :  { %7155 = vmatpush1.bf16.msra.mxu0 %v9793_v31 }
0x1757   :  { %7156 = vmatprep.subr.bf16.mxu0 %v9794_v45  ;;  %8400 = vmatpush3.bf16.msra.mxu1 %v9680_v63 }
0x1758   :  { %8401 = vmatprep.subr.bf16.mxu1 %v9681_v26 }
0x175a   :  { %7157 = vmatpush1.bf16.msra.mxu0 %v9795_v22 }
0x175b   :  { %7158 = vmatprep.subr.bf16.mxu0 %v9796_v1  ;;  %8402 = vmatpush3.bf16.msra.mxu1 %v9682_v3 }
0x175c   :  { %8403 = vmatprep.subr.bf16.mxu1 %v9683_v46 }
0x175e   :  { %7159 = vmatpush1.bf16.msra.mxu0 %v9797_v5 }
0x175f   :  { %7160 = vmatprep.subr.bf16.mxu0 %v9798_v4  ;;  %8404 = vmatpush3.bf16.msra.mxu1 %v9684_v7 }
0x1760   :  { %8405 = vmatprep.subr.bf16.mxu1 %v9685_v6 }
0x1762   :  { %7161 = vmatpush1.bf16.msra.mxu0 %v9799_v50 }
0x1763   :  { %7162 = vmatprep.subr.bf16.mxu0 %v9800_v9  ;;  %8406 = vmatpush3.bf16.msra.mxu1 %v9686_v10 }
0x1764   :  { %8407 = vmatprep.subr.bf16.mxu1 %v9687_v18 }
0x1766   :  { %7163 = vmatpush1.bf16.msra.mxu0 %v9801_v0 }
0x1767   :  { %7164 = vmatprep.subr.bf16.mxu0 %v9802_v20  ;;  %8408 = vmatpush3.bf16.msra.mxu1 %v9688_v27 }
0x1768   :  { %8409 = vmatprep.subr.bf16.mxu1 %v9689_v59 }
0x176a   :  { %7165 = vmatpush1.bf16.msra.mxu0 %v9803_v24 }
0x176b   :  { %7166 = vmatprep.subr.bf16.mxu0 %v9804_v58  ;;  %8410 = vmatpush3.bf16.msra.mxu1 %v9690_v35 }
0x176e   :  { %7167 = vmatpush2.bf16.msra.mxu0 %v9805_v42 }
0x176f   :  { %7168 = vmatprep.subr.bf16.mxu0 %v9806_v55 }
0x1772   :  { %7169 = vmatpush2.bf16.msra.mxu0 %v9807_v2 }
0x1773   :  { %7170 = vmatprep.subr.bf16.mxu0 %v9808_v62 }
0x1776   :  { %7171 = vmatpush2.bf16.msra.mxu0 %v9809_v21 }
0x1777   :  { %7172 = vmatprep.subr.bf16.mxu0 %v9810_v13 }
0x177a   :  { %7173 = vmatpush2.bf16.msra.mxu0 %v9811_v38 }
0x177b   :  { %7174 = vmatprep.subr.bf16.mxu0 %v9812_v41 }
0x177e   :  { %7175 = vmatpush2.bf16.msra.mxu0 %v9813_v8 }
0x177f   :  { %7176 = vmatprep.subr.bf16.mxu0 %v9814_v33 }
0x1782   :  { %7177 = vmatpush2.bf16.msra.mxu0 %v9815_v34 }
0x1783   :  { %7178 = vmatprep.subr.bf16.mxu0 %v9816_v43 }
0x1786   :  { %7179 = vmatpush2.bf16.msra.mxu0 %v9817_v49 }
0x1787   :  { %7180 = vmatprep.subr.bf16.mxu0 %v9818_v57 }
0x178a   :  { %7181 = vmatpush2.bf16.msra.mxu0 %v9819_v48 }
0x178b   :  { %8417 = vmatprep.subr.bf16.mxu0 %v9691_v37 }
0x178d   :  { %7183 = vmatmul.mubr.bf16.vlgmr.msra.gmra.mxu0 %v11606_v25 }
0x178e   :  { %8418 = vmatpush3.bf16.msra.mxu0 %v9692_v29 }
0x178f   :  { %8419 = vmatprep.subr.bf16.mxu0 %v9693_v54 }
0x1792   :  { %8420 = vmatpush3.bf16.msra.mxu0 %v9694_v14 }
0x1793   :  { %8421 = vmatprep.subr.bf16.mxu0 %v9695_v16 }
0x1796   :  { %8422 = vmatpush3.bf16.msra.mxu0 %v9696_v17 }
0x1797   :  { %8423 = vmatprep.subr.bf16.mxu0 %v9697_v11 }
0x179a   :  { %8424 = vmatpush3.bf16.msra.mxu0 %v9698_v28 }
0x179b   :  { %8425 = vmatprep.subr.bf16.mxu0 %v9699_v32 }
0x179e   :  { %8426 = vmatpush3.bf16.msra.mxu0 %v9700_v30 }
0x179f   :  { %8427 = vmatprep.subr.bf16.mxu0 %v9701_v12 }
0x17a2   :  { %8428 = vmatpush3.bf16.msra.mxu0 %v9702_v39 }
0x17a3   :  { %8429 = vmatprep.subr.bf16.mxu0 %v9703_v60 }
0x17a6   :  { %8430 = vmatpush3.bf16.msra.mxu0 %v9704_v23 }
0x17a7   :  { %8431 = vmatprep.subr.bf16.mxu0 %v9705_v44 }
0x17aa   :  { %8432 = vmatpush3.bf16.msra.mxu0 %v9706_v53 }
0x17cd   :  { %v7061_v25 = vpop.f32.mrf.mxu1 }
0x17ce   :  { %v7062_v31 = vadd.f32 %v7061_v25, %v11365_v36 }
0x17cf   :  { %v7063_v40 = vpop.f32.mrf.mxu1 }
0x17d0   :  { %v7064_v47 = vadd.f32 %v7063_v40, %v11368_v19 }
0x17d1   :  { %v7065_v15 = vpop.f32.mrf.mxu1 }
0x17d3   :  { %v7066_v56 = vpop.f32.mrf.mxu1 }
0x180d   :  { %v7102_v61 = vpop.f32.mrf.mxu0  ;;  %v7143_v45 = vpop.f32.mrf.mxu1 }
0x180e   :  { %v7103_v22 = vadd.f32 %v7102_v61, %v7062_v31  ;;  %v7144_v36 = vadd.f32 %v7143_v45, %v12046_v52  ;;  %v8165_v52 = vld [vmem:[#allocation28] ss:$0 sm:$0xff] }
0x180f   :  { %v7104_v63 = vpop.f32.mrf.mxu0  ;;  %v7145_v1 = vpop.f32.mrf.mxu1 }
0x1810   :  { %v7105_v26 = vadd.f32 %v7104_v63, %v7064_v47  ;;  %v7191_v5 = vmax.f32 %v7103_v22, 0.0  ;;  %v7146_v10 = vadd.f32 %v7145_v1, %v11404_v51 }
0x1811   :  { %v7106_v3 = vpop.f32.mrf.mxu0  ;;  %v7147_v4 = vpop.f32.mrf.mxu1 }
0x1812   :  { %v7192_v46 = vmax.f32 %v7105_v26, 0.0  ;;  %v7259_v6 = vpack.c.bf16 %v7191_v5, %v7191_v5 }
0x1813   :  { %v7107_v50 = vpop.f32.mrf.mxu0  ;;  %v7148_v7 = vpop.f32.mrf.mxu1 }
0x1814   :  { %v7260_v9 = vpack.c.bf16 %v7192_v46, %v7192_v46 }
0x1816   :  { %7494 = vmatprep.mubr.bf16.mxu1 %v7260_v9 }
0x1817   :  { %7495 = vmatmul.mubr.bf16.vlgmr.msra.gmra.mxu1 %v7259_v6 }
0x184d   :  { %v7184_v0 = vpop.f32.mrf.mxu0 }
0x184e   :  { %v7185_v19 = vadd.f32 %v7184_v0, %v7144_v36 }
0x184f   :  { %v7186_v20 = vpop.f32.mrf.mxu0 }
0x1850   :  { %v7187_v24 = vadd.f32 %v7186_v20, %v7146_v10  ;;  %v7193_v58 = vmax.f32 %v7185_v19, 0.0 }
0x1851   :  { %v7188_v42 = vpop.f32.mrf.mxu0 }
0x1852   :  { %v7194_v55 = vmax.f32 %v7187_v24, 0.0  ;;  %v7261_v21 = vpack.c.bf16 %v7193_v58, %v7193_v58 }
0x1853   :  { %v7189_v2 = vpop.f32.mrf.mxu0 }
0x1854   :  { %v7262_v62 = vpack.c.bf16 %v7194_v55, %v7194_v55 }
0x1856   :  { %7534 = vmatprep.mubr.bf16.mxu0 %v7262_v62 }
0x1857   :  { %7535 = vmatmul.mubr.bf16.vlgmr.msra.gmra.mxu0 %v7261_v21 }
0x18d7   :  { %v8411_v13 = vpop.f32.mrf.mxu1 }
0x18d9   :  { %v8412_v38 = vpop.f32.mrf.mxu1 }
0x18da   :  { %v8413_v33 = vadd.f32 %v8412_v38, %v8411_v13 }
0x18db   :  { %v8414_v41 = vpop.f32.mrf.mxu1 }
0x18dc   :  { %v7497_v51 = vadd.f32 %v8413_v33, %v8165_v52 }
0x18dd   :  { %v8415_v8 = vpop.f32.mrf.mxu1 }
0x1917   :  { %v8433_v34 = vpop.f32.mrf.mxu0 }
0x1919   :  { %v8434_v43 = vpop.f32.mrf.mxu0 }
0x191a   :  { %v8435_v49 = vadd.f32 %v8434_v43, %v8433_v34 }
0x191b   :  { %v8436_v57 = vpop.f32.mrf.mxu0 }
0x191c   :  { %v7537_v48 = vadd.f32 %v8435_v49, %v7497_v51 }
0x191d   :  { %v8437_v18 = vpop.f32.mrf.mxu0 }
0x191e   :  { %7543 = vst.msk [vmem:[#allocation29] sm:$0x3] %vm7542_vm3, %v7537_v48 }
0x191f   :  { %10171 = shalt.err (!%p10168_p5)
}
0x1920   :  { %7553 = dma.vmem_to_hbm [thread:$0]  %s7551_s25, 32, %s11639_s21, [#allocation4]  }
0x1921   :  { %10198 = dma.done.wait [#allocation4], 32  }
0x1922   :  { %10199 = vsyncadd [#allocation4], 4294967264 }
0x1923   :  { %7557 = vsyncpa [#allocation3], 1 }
0x1924   :  { %7558 = vsyncpa [#allocation6], 1 }
0x1925   :  { %7559 = vsyncpa [#allocation9], 1 }
0x1926   :  { %7560 = vsyncpa [#allocation12], 1 }
0x1927   :  { %7561 = vsyncpa [#allocation15], 1 }
0x1928   :  { %7562 = vsyncpa [#allocation18], 1 }
0x1929   :  { %7563 = vsyncpa [#allocation21], 1 }
0x192a   :  { %7564 = vsyncpa [#allocation24], 1 }
0x192b   :  { %7565 = vsyncpa [#allocation27], 1 }
0x192c   :  { %7566 = vsyncpa [#allocation4], 1 }

</bundles_post_ra>
